<compile_context>
chip_gen: v7x
topology: tpu7x:2x2x1
jax: 0.10.0
libtpu: 0.0.40
codegen_flags: <defaults>
</compile_context>

<pallas_src>
import functools

import jax
import jax.numpy as jnp
from jax.experimental import pallas as pl
from jax.experimental.pallas import tpu as pltpu

_LANE = 128


def _round_up(x, m):
    return ((x + m - 1) // m) * m


# ----------------------------- Pallas kernel --------------------------------
def rn_kernel(x_ref, q_ref,
              w0ji_ref, w0q_ref, wg1_ref, wg2_ref, wf0_ref, wf1_ref,
              bias_ref, out_ref,
              *, tb, n, h0_dim, bias_off, bias_w, elementwise_bf16):
    f32 = jnp.float32
    bf16 = jnp.bfloat16

    def bvec(k):                                      # (1, width_k) f32 bias slice
        o = bias_off[k]
        return bias_ref[:, o:o + bias_w[k]]

    x = x_ref[...]                                    # (tb*n, D)  bf16
    q = q_ref[...]                                    # (tb, Dq)   bf16

    # ---- g layer 0: fused fact matmul + hoisted query/bias add --------------
    # pair[b, i*n + j] = [x[b,j], x[b,i], q[b]]
    r = jnp.dot(x, w0ji_ref[...], preferred_element_type=f32)           # (tb*n, 2*H0)
    d = jnp.dot(q, w0q_ref[...], preferred_element_type=f32) + bvec(0)  # (tb, H0)

    r3 = r.reshape(tb, n, 2 * h0_dim)
    a3 = r3[:, :, :h0_dim]                            # j-indexed partial
    c3 = r3[:, :, h0_dim:] + d[:, None, :]            # i-indexed partial + query + bias

    if elementwise_bf16:                              # v6e/v7x: bf16 VPU path
        a3 = a3.astype(bf16)
        c3 = c3.astype(bf16)

    h0 = a3[:, None, :, :] + c3[:, :, None, :]        # (tb, n, n, H0)
    h = jax.nn.relu(h0).reshape(tb * n * n, h0_dim)
    if not elementwise_bf16:                          # v5e: f32 VPU, cast only for MXU
        h = h.astype(bf16)

    # ---- remaining g layers (nonlinear=True: ReLU after every layer) --------
    h = jax.nn.relu(jnp.dot(h, wg1_ref[...], preferred_element_type=f32) + bvec(1))
    h = jax.nn.relu(jnp.dot(h.astype(bf16), wg2_ref[...],
                            preferred_element_type=f32) + bvec(2))

    # ---- sum over all n*n pairs per batch element (torch dim=1 sum) ---------
    g_dim = h.shape[-1]
    emb = jnp.sum(h.reshape(tb, n * n, g_dim), axis=1)                  # (tb, Dg) f32

    # ---- f MLP (ReLU hidden, final layer linear; output lane-padded) --------
    z = jax.nn.relu(jnp.dot(emb.astype(bf16), wf0_ref[...],
                            preferred_element_type=f32) + bvec(3))
    z = jnp.dot(z.astype(bf16), wf1_ref[...], preferred_element_type=f32) + bvec(4)

    out_ref[...] = z.astype(out_ref.dtype)            # (tb, Dout_pad) full-lane store


# ------------------------------ wrapper --------------------------------------
def relation_network_forward(x, q, params, *, tb=None, elementwise_bf16=None):
    """x: (B, N, D) f32, q: (B, Dq) f32, params: dict of f32 weights/biases."""
    B, N, D = x.shape
    Dq = q.shape[-1]
    bf16 = jnp.bfloat16
    f32 = jnp.float32

    try:
        kind = jax.devices()[0].device_kind.lower()
    except Exception:  # pragma: no cover
        kind = ""
    if tb is None:
        # v7x has 2 TensorCores -> keep >= 2 "parallel" grid steps; v5e/v6e are
        # single-TC, so one fat step avoids the ~0.35us per-step overhead.
        tb = max(1, (B + 1) // 2) if "v7" in kind else B
    if elementwise_bf16 is None:
        # v5e VPU/EUP have no bf16 path -> keep layer-0 elementwise math in f32.
        elementwise_bf16 = "v5" not in kind

    if tb < B:                          # multi-step grid: keep sublane tiling happy
        tb = _round_up(tb, 8)
    Bp = _round_up(B, tb)
    if Bp != B:
        x = jnp.pad(x, ((0, Bp - B), (0, 0), (0, 0)))
        q = jnp.pad(q, ((0, Bp - B), (0, 0)))

    x2 = x.astype(bf16).reshape(Bp * N, D)            # contiguous (tb*N, D) block/step
    qb = q.astype(bf16)

    # wg0 concat slabs: rows [0:D] -> xi (j-indexed), [D:2D] -> xj (i-indexed), [2D:] -> q.
    wg0 = params["wg0"].astype(f32)
    H0 = wg0.shape[-1]
    w0ji = jnp.concatenate([wg0[:D], wg0[D:2 * D]], axis=1).astype(bf16)   # (D, 2*H0)
    w0q = wg0[2 * D:].astype(bf16)                                         # (Dq, H0)

    wg1 = params["wg1"].astype(bf16)
    wg2 = params["wg2"].astype(bf16)
    wf0 = params["wf0"].astype(bf16)

    # Lane-dense output: pad final layer to a multiple of 128 output lanes.
    wf1 = params["wf1"].astype(f32)
    Dg1, Dg2 = wg1.shape[-1], wg2.shape[-1]
    Df0, Dout = wf1.shape
    Dout_pad = _round_up(max(Dout, _LANE), _LANE)
    wf1p = jnp.pad(wf1, ((0, 0), (0, Dout_pad - Dout))).astype(bf16)
    bf1p = jnp.pad(params["bf1"].reshape(1, -1).astype(f32),
                   ((0, 0), (0, Dout_pad - Dout)))

    # Pack all biases into one operand, one 128-aligned slot per bias.
    raw_biases = [params["bg0"], params["bg1"], params["bg2"], params["bf0"], bf1p]
    bias_off, bias_w, parts, off = [], [], [], 0
    for b in raw_biases:
        b = jnp.asarray(b, f32).reshape(1, -1)
        w = b.shape[1]
        slot = _round_up(w, _LANE)
        parts.append(jnp.pad(b, ((0, 0), (0, slot - w))))
        bias_off.append(off)
        bias_w.append(w)
        off += slot
    bias_packed = jnp.concatenate(parts, axis=1)       # (1, total) f32

    kernel = functools.partial(
        rn_kernel, tb=tb, n=N, h0_dim=H0,
        bias_off=tuple(bias_off), bias_w=tuple(bias_w),
        elementwise_bf16=elementwise_bf16)

    flops = (2 * Bp * N * D * 2 * H0 + 2 * Bp * Dq * H0
             + 2 * Bp * N * N * (H0 + H0 * Dg1 + Dg1 * Dg2)
             + 2 * Bp * (Dg2 * Df0 + Df0 * Dout_pad))
    bytes_accessed = (x2.size * 2 + qb.size * 2
                      + (w0ji.size + w0q.size + wg1.size + wg2.size
                         + wf0.size + wf1p.size) * 2
                      + bias_packed.size * 4 + Bp * Dout_pad * 4)

    full = lambda b: (0, 0)  # whole-array blocks for resident weights / biases

    out = pl.pallas_call(
        kernel,
        out_shape=jax.ShapeDtypeStruct((Bp, Dout_pad), f32),
        grid_spec=pltpu.PrefetchScalarGridSpec(
            num_scalar_prefetch=0,
            grid=(Bp // tb,),
            in_specs=[
                pl.BlockSpec((tb * N, D), lambda b: (b, 0)),   # fact rows, contiguous
                pl.BlockSpec((tb, Dq), lambda b: (b, 0)),      # query rows
                pl.BlockSpec(w0ji.shape, full), pl.BlockSpec(w0q.shape, full),
                pl.BlockSpec(wg1.shape, full), pl.BlockSpec(wg2.shape, full),
                pl.BlockSpec(wf0.shape, full), pl.BlockSpec(wf1p.shape, full),
                pl.BlockSpec(bias_packed.shape, full),
            ],
            out_specs=pl.BlockSpec((tb, Dout_pad), lambda b: (b, 0)),
        ),
        compiler_params=pltpu.CompilerParams(
            dimension_semantics=("parallel",)),
        cost_estimate=pl.CostEstimate(flops=int(flops), transcendentals=0,
                                      bytes_accessed=int(bytes_accessed)),
    )(x2, qb, w0ji, w0q, wg1, wg2, wf0, wf1p, bias_packed)

    return out[:B, :Dout]                               # (B, out_dim_f)


# -------------------------- reference (plain JAX) -----------------------------
def relation_network_ref(x, q, params, dtype=jnp.bfloat16):
    """Mirrors the torch module (repeat/view/concat), with the same bf16-in /
    f32-accumulate numerics as the kernel."""
    B, N, D = x.shape
    P = N * N
    f32 = jnp.float32

    xi = jnp.tile(x, (1, N, 1))                        # [b, i*N+j] = x[b, j]
    xj = jnp.repeat(x, N, axis=1)                      # [b, i*N+j] = x[b, i]
    qr = jnp.tile(q[:, None, :], (1, P, 1))
    pair = jnp.concatenate([xi, xj, qr], axis=2).reshape(B * P, -1)

    def lin(h, w, b):
        return jnp.dot(h.astype(dtype), w.astype(dtype),
                       preferred_element_type=f32) + b.astype(f32)

    h = jax.nn.relu(lin(pair, params["wg0"], params["bg0"]))
    h = jax.nn.relu(lin(h, params["wg1"], params["bg1"]))
    h = jax.nn.relu(lin(h, params["wg2"], params["bg2"]))
    emb = jnp.sum(h.reshape(B, P, -1), axis=1)

    z = jax.nn.relu(lin(emb, params["wf0"], params["bf0"]))
    z = lin(z, params["wf1"], params["bf1"])
    return z


# ------------------------------- main -----------------------------------------
if __name__ == "__main__":
    # Module config (wave_penc=True => object_dim unchanged, no +40):
    object_dim = 32                  # D == query_dim
    hidden_dims_g = [64, 64]
    output_dim_g = 64
    hidden_dims_f = [64]
    output_dim_f = 16
    B, N = 16, 8                     # batch, n_facts
    input_dim_g = 2 * object_dim + object_dim   # 96

    key = jax.random.PRNGKey(0)
    keys = jax.random.split(key, 16)

    def lin_init(kw, kb, din, dout, scale=0.05):
        w = scale * jax.random.normal(kw, (din, dout), dtype=jnp.float32)
        b = scale * jax.random.normal(kb, (1, dout), dtype=jnp.float32)
        return w, b

    # g: input_dim_g -> 64 -> 64 -> output_dim_g   (all with activation)
    wg0, bg0 = lin_init(keys[0], keys[1], input_dim_g, hidden_dims_g[0])
    wg1, bg1 = lin_init(keys[2], keys[3], hidden_dims_g[0], hidden_dims_g[1])
    wg2, bg2 = lin_init(keys[4], keys[5], hidden_dims_g[1], output_dim_g)
    # f: output_dim_g -> 64 -> output_dim_f        (last layer linear)
    wf0, bf0 = lin_init(keys[6], keys[7], output_dim_g, hidden_dims_f[0])
    wf1, bf1 = lin_init(keys[8], keys[9], hidden_dims_f[0], output_dim_f)

    params = dict(wg0=wg0, bg0=bg0, wg1=wg1, bg1=bg1, wg2=wg2, bg2=bg2,
                  wf0=wf0, bf0=bf0, wf1=wf1, bf1=bf1)

    x = jax.random.normal(keys[10], (B, N, object_dim), dtype=jnp.float32)
    q = jax.random.normal(keys[11], (B, object_dim), dtype=jnp.float32)

    out = relation_network_forward(x, q, params)
    out = jax.block_until_ready(out)

    ref = relation_network_ref(x, q, params)
    assert out.shape == (B, output_dim_f)
    assert jnp.allclose(out, ref, atol=1e-2, rtol=1e-2), "mismatch vs reference"

    # TODO(synk): dropout is treated as identity (eval mode) and the q=None branch
    # of the torch module is not implemented (a query is always supplied here).
    print("KERNEL_OK")
</pallas_src>

<mosaic_0001>
module attributes {stable_mosaic.version = 11 : i64} {
  func.func @rn_kernel(%arg0: i32, %arg1: memref<128x32xbf16, #tpu.memory_space<vmem>>, %arg2: memref<16x32xbf16, #tpu.memory_space<vmem>>, %arg3: memref<32x128xbf16, #tpu.memory_space<vmem>>, %arg4: memref<32x64xbf16, #tpu.memory_space<vmem>>, %arg5: memref<64x64xbf16, #tpu.memory_space<vmem>>, %arg6: memref<64x64xbf16, #tpu.memory_space<vmem>>, %arg7: memref<64x64xbf16, #tpu.memory_space<vmem>>, %arg8: memref<64x128xbf16, #tpu.memory_space<vmem>>, %arg9: memref<1x640xf32, #tpu.memory_space<vmem>>, %arg10: memref<16x128xf32, #tpu.memory_space<vmem>>) attributes {dimension_semantics = [#tpu.dimension_semantics<parallel>], iteration_bounds = array<i64: 1>, scalar_prefetch = 0 : i64, scratch_operands = 0 : i64, tpu.core_type = #tpu.core_type<tc>, window_params = [{transform_indices = @transform_0, window_bounds = array<i64: 128, 32>}, {transform_indices = @transform_1, window_bounds = array<i64: 16, 32>}, {pipeline_mode = #tpu.pipeline_mode<synchronous>, transform_indices = @transform_2, window_bounds = array<i64: 32, 128>}, {pipeline_mode = #tpu.pipeline_mode<synchronous>, transform_indices = @transform_3, window_bounds = array<i64: 32, 64>}, {pipeline_mode = #tpu.pipeline_mode<synchronous>, transform_indices = @transform_4, window_bounds = array<i64: 64, 64>}, {pipeline_mode = #tpu.pipeline_mode<synchronous>, transform_indices = @transform_5, window_bounds = array<i64: 64, 64>}, {pipeline_mode = #tpu.pipeline_mode<synchronous>, transform_indices = @transform_6, window_bounds = array<i64: 64, 64>}, {pipeline_mode = #tpu.pipeline_mode<synchronous>, transform_indices = @transform_7, window_bounds = array<i64: 64, 128>}, {pipeline_mode = #tpu.pipeline_mode<synchronous>, transform_indices = @transform_8, window_bounds = array<i64: 1, 640>}, {transform_indices = @transform_9, window_bounds = array<i64: 16, 128>}]} {
    %c0 = arith.constant 0 : index
    %c0_0 = arith.constant 0 : index
    %0 = vector.load %arg1[%c0, %c0_0] : memref<128x32xbf16, #tpu.memory_space<vmem>>, vector<128x32xbf16>
    %c0_1 = arith.constant 0 : index
    %c0_2 = arith.constant 0 : index
    %1 = vector.load %arg2[%c0_1, %c0_2] : memref<16x32xbf16, #tpu.memory_space<vmem>>, vector<16x32xbf16>
    %c0_3 = arith.constant 0 : index
    %c0_4 = arith.constant 0 : index
    %2 = vector.load %arg3[%c0_3, %c0_4] : memref<32x128xbf16, #tpu.memory_space<vmem>>, vector<32x128xbf16>
    %cst = arith.constant dense<0.000000e+00> : vector<128x128xf32>
    %3 = tpu.matmul %0, %2, %cst {dimension_numbers = #tpu.dot_dimension_numbers<[1], [0], [0], [1], [0, 0, 1, 1], [], []>} : vector<128x32xbf16>, vector<32x128xbf16>, vector<128x128xf32> -> vector<128x128xf32>
    %c0_5 = arith.constant 0 : index
    %c0_6 = arith.constant 0 : index
    %4 = vector.load %arg4[%c0_5, %c0_6] : memref<32x64xbf16, #tpu.memory_space<vmem>>, vector<32x64xbf16>
    %cst_7 = arith.constant dense<0.000000e+00> : vector<16x64xf32>
    %5 = tpu.matmul %1, %4, %cst_7 {dimension_numbers = #tpu.dot_dimension_numbers<[1], [0], [0], [1], [0, 0, 1, 1], [], []>} : vector<16x32xbf16>, vector<32x64xbf16>, vector<16x64xf32> -> vector<16x64xf32>
    %c0_8 = arith.constant 0 : index
    %c0_9 = arith.constant 0 : index
    %6 = vector.load %arg9[%c0_8, %c0_9] : memref<1x640xf32, #tpu.memory_space<vmem>>, vector<1x64xf32>
    %7 = vector.broadcast %6 : vector<1x64xf32> to vector<16x64xf32>
    %8 = arith.addf %5, %7 : vector<16x64xf32>
    %9 = vector.shape_cast %3 : vector<128x128xf32> to vector<16x8x128xf32>
    %10 = vector.extract_strided_slice %9 {offsets = [0, 0, 0], sizes = [16, 8, 64], strides = [1, 1, 1]} : vector<16x8x128xf32> to vector<16x8x64xf32>
    %11 = vector.extract_strided_slice %9 {offsets = [0, 0, 64], sizes = [16, 8, 64], strides = [1, 1, 1]} : vector<16x8x128xf32> to vector<16x8x64xf32>
    %12 = vector.shape_cast %8 : vector<16x64xf32> to vector<16x1x64xf32>
    %13 = vector.broadcast %12 : vector<16x1x64xf32> to vector<16x8x64xf32>
    %14 = arith.addf %11, %13 : vector<16x8x64xf32>
    %15 = arith.truncf %10 : vector<16x8x64xf32> to vector<16x8x64xbf16>
    %16 = arith.truncf %14 : vector<16x8x64xf32> to vector<16x8x64xbf16>
    %17 = vector.shape_cast %15 : vector<16x8x64xbf16> to vector<16x1x8x64xbf16>
    %18 = vector.shape_cast %16 : vector<16x8x64xbf16> to vector<16x8x1x64xbf16>
    %19 = vector.broadcast %17 : vector<16x1x8x64xbf16> to vector<16x8x8x64xbf16>
    %20 = vector.broadcast %18 : vector<16x8x1x64xbf16> to vector<16x8x8x64xbf16>
    %21 = arith.addf %19, %20 : vector<16x8x8x64xbf16>
    %cst_10 = arith.constant 0.000000e+00 : bf16
    %22 = vector.broadcast %cst_10 : bf16 to vector<16x8x8x64xbf16>
    %23 = arith.maximumf %21, %22 : vector<16x8x8x64xbf16>
    %24 = vector.shape_cast %23 : vector<16x8x8x64xbf16> to vector<1024x64xbf16>
    %c0_11 = arith.constant 0 : index
    %c0_12 = arith.constant 0 : index
    %25 = vector.load %arg5[%c0_11, %c0_12] : memref<64x64xbf16, #tpu.memory_space<vmem>>, vector<64x64xbf16>
    %cst_13 = arith.constant dense<0.000000e+00> : vector<1024x64xf32>
    %26 = tpu.matmul %24, %25, %cst_13 {dimension_numbers = #tpu.dot_dimension_numbers<[1], [0], [0], [1], [0, 0, 1, 1], [], []>} : vector<1024x64xbf16>, vector<64x64xbf16>, vector<1024x64xf32> -> vector<1024x64xf32>
    %c0_14 = arith.constant 0 : index
    %c128 = arith.constant 128 : index
    %27 = vector.load %arg9[%c0_14, %c128] : memref<1x640xf32, #tpu.memory_space<vmem>>, vector<1x64xf32>
    %28 = vector.broadcast %27 : vector<1x64xf32> to vector<1024x64xf32>
    %29 = arith.addf %26, %28 : vector<1024x64xf32>
    %cst_15 = arith.constant 0.000000e+00 : f32
    %30 = vector.broadcast %cst_15 : f32 to vector<1024x64xf32>
    %31 = arith.maximumf %29, %30 : vector<1024x64xf32>
    %32 = arith.truncf %31 : vector<1024x64xf32> to vector<1024x64xbf16>
    %c0_16 = arith.constant 0 : index
    %c0_17 = arith.constant 0 : index
    %33 = vector.load %arg6[%c0_16, %c0_17] : memref<64x64xbf16, #tpu.memory_space<vmem>>, vector<64x64xbf16>
    %cst_18 = arith.constant dense<0.000000e+00> : vector<1024x64xf32>
    %34 = tpu.matmul %32, %33, %cst_18 {dimension_numbers = #tpu.dot_dimension_numbers<[1], [0], [0], [1], [0, 0, 1, 1], [], []>} : vector<1024x64xbf16>, vector<64x64xbf16>, vector<1024x64xf32> -> vector<1024x64xf32>
    %c0_19 = arith.constant 0 : index
    %c256 = arith.constant 256 : index
    %35 = vector.load %arg9[%c0_19, %c256] : memref<1x640xf32, #tpu.memory_space<vmem>>, vector<1x64xf32>
    %36 = vector.broadcast %35 : vector<1x64xf32> to vector<1024x64xf32>
    %37 = arith.addf %34, %36 : vector<1024x64xf32>
    %cst_20 = arith.constant 0.000000e+00 : f32
    %38 = vector.broadcast %cst_20 : f32 to vector<1024x64xf32>
    %39 = arith.maximumf %37, %38 : vector<1024x64xf32>
    %40 = vector.shape_cast %39 : vector<1024x64xf32> to vector<16x64x64xf32>
    %cst_21 = arith.constant dense<0.000000e+00> : vector<16x64xf32>
    %41 = vector.multi_reduction <add>, %40, %cst_21 [1] : vector<16x64x64xf32> to vector<16x64xf32>
    %42 = arith.truncf %41 : vector<16x64xf32> to vector<16x64xbf16>
    %c0_22 = arith.constant 0 : index
    %c0_23 = arith.constant 0 : index
    %43 = vector.load %arg7[%c0_22, %c0_23] : memref<64x64xbf16, #tpu.memory_space<vmem>>, vector<64x64xbf16>
    %cst_24 = arith.constant dense<0.000000e+00> : vector<16x64xf32>
    %44 = tpu.matmul %42, %43, %cst_24 {dimension_numbers = #tpu.dot_dimension_numbers<[1], [0], [0], [1], [0, 0, 1, 1], [], []>} : vector<16x64xbf16>, vector<64x64xbf16>, vector<16x64xf32> -> vector<16x64xf32>
    %c0_25 = arith.constant 0 : index
    %c384 = arith.constant 384 : index
    %45 = vector.load %arg9[%c0_25, %c384] : memref<1x640xf32, #tpu.memory_space<vmem>>, vector<1x64xf32>
    %46 = vector.broadcast %45 : vector<1x64xf32> to vector<16x64xf32>
    %47 = arith.addf %44, %46 : vector<16x64xf32>
    %cst_26 = arith.constant 0.000000e+00 : f32
    %48 = vector.broadcast %cst_26 : f32 to vector<16x64xf32>
    %49 = arith.maximumf %47, %48 : vector<16x64xf32>
    %50 = arith.truncf %49 : vector<16x64xf32> to vector<16x64xbf16>
    %c0_27 = arith.constant 0 : index
    %c0_28 = arith.constant 0 : index
    %51 = vector.load %arg8[%c0_27, %c0_28] : memref<64x128xbf16, #tpu.memory_space<vmem>>, vector<64x128xbf16>
    %cst_29 = arith.constant dense<0.000000e+00> : vector<16x128xf32>
    %52 = tpu.matmul %50, %51, %cst_29 {dimension_numbers = #tpu.dot_dimension_numbers<[1], [0], [0], [1], [0, 0, 1, 1], [], []>} : vector<16x64xbf16>, vector<64x128xbf16>, vector<16x128xf32> -> vector<16x128xf32>
    %c0_30 = arith.constant 0 : index
    %c512 = arith.constant 512 : index
    %53 = vector.load %arg9[%c0_30, %c512] : memref<1x640xf32, #tpu.memory_space<vmem>>, vector<1x128xf32>
    %54 = vector.broadcast %53 : vector<1x128xf32> to vector<16x128xf32>
    %55 = arith.addf %52, %54 : vector<16x128xf32>
    %c0_31 = arith.constant 0 : index
    %c0_32 = arith.constant 0 : index
    %56 = vector.load %arg10[%c0_31, %c0_32] : memref<16x128xf32, #tpu.memory_space<vmem>>, vector<16x128xf32>
    tpu.vector_store %arg10[%c0_31, %c0_32], %55 {strides = array<i32>} : memref<16x128xf32, #tpu.memory_space<vmem>>, vector<16x128xf32>,
    return
  }
  func.func @transform_0(%arg0: i32) -> (i32, i32) {
    %c0_i32 = arith.constant 0 : i32
    %c0_i32_0 = arith.constant 0 : i32
    return %arg0, %c0_i32 : i32, i32
  }
  func.func @transform_1(%arg0: i32) -> (i32, i32) {
    %c0_i32 = arith.constant 0 : i32
    %c0_i32_0 = arith.constant 0 : i32
    return %arg0, %c0_i32 : i32, i32
  }
  func.func @transform_2(%arg0: i32) -> (i32, i32) {
    %c0_i32 = arith.constant 0 : i32
    %c0_i32_0 = arith.constant 0 : i32
    %c0_i32_1 = arith.constant 0 : i32
    return %c0_i32, %c0_i32_0 : i32, i32
  }
  func.func @transform_3(%arg0: i32) -> (i32, i32) {
    %c0_i32 = arith.constant 0 : i32
    %c0_i32_0 = arith.constant 0 : i32
    %c0_i32_1 = arith.constant 0 : i32
    return %c0_i32, %c0_i32_0 : i32, i32
  }
  func.func @transform_4(%arg0: i32) -> (i32, i32) {
    %c0_i32 = arith.constant 0 : i32
    %c0_i32_0 = arith.constant 0 : i32
    %c0_i32_1 = arith.constant 0 : i32
    return %c0_i32, %c0_i32_0 : i32, i32
  }
  func.func @transform_5(%arg0: i32) -> (i32, i32) {
    %c0_i32 = arith.constant 0 : i32
    %c0_i32_0 = arith.constant 0 : i32
    %c0_i32_1 = arith.constant 0 : i32
    return %c0_i32, %c0_i32_0 : i32, i32
  }
  func.func @transform_6(%arg0: i32) -> (i32, i32) {
    %c0_i32 = arith.constant 0 : i32
    %c0_i32_0 = arith.constant 0 : i32
    %c0_i32_1 = arith.constant 0 : i32
    return %c0_i32, %c0_i32_0 : i32, i32
  }
  func.func @transform_7(%arg0: i32) -> (i32, i32) {
    %c0_i32 = arith.constant 0 : i32
    %c0_i32_0 = arith.constant 0 : i32
    %c0_i32_1 = arith.constant 0 : i32
    return %c0_i32, %c0_i32_0 : i32, i32
  }
  func.func @transform_8(%arg0: i32) -> (i32, i32) {
    %c0_i32 = arith.constant 0 : i32
    %c0_i32_0 = arith.constant 0 : i32
    %c0_i32_1 = arith.constant 0 : i32
    return %c0_i32, %c0_i32_0 : i32, i32
  }
  func.func @transform_9(%arg0: i32) -> (i32, i32) {
    %c0_i32 = arith.constant 0 : i32
    %c0_i32_0 = arith.constant 0 : i32
    return %arg0, %c0_i32 : i32, i32
  }
}

</mosaic_0001>

<bundles_post_ra>
// kernel: tpu_custom_call.1
= control target key start
LH: loop header
LB: loop body
LE: loop exit
PB: predicated region body
PF: predicated region fallthrough
CT: control target
= control target key end

     0   :  { %14 = vsyncpa [#allocation3], 0  ;;  %s9014_s0 = inlined_call_operand.vmem [shape: bf16[128,32], index: 0, kind: input, shape index: {}]   ;;  %s9015_s1 = inlined_call_operand.hbm [shape: bf16[16,32], index: 1, kind: input, shape index: {}]   ;;  %s9016_s2 = inlined_call_operand.hbm [shape: bf16[32,128], index: 2, kind: input, shape index: {}]   ;;  %s9017_s3 = inlined_call_operand.hbm [shape: bf16[32,64], index: 3, kind: input, shape index: {}]   ;;  %s9018_s4 = inlined_call_operand.vmem [shape: bf16[64,64], index: 4, kind: input, shape index: {}]   ;;  %s9019_s5 = inlined_call_operand.vmem [shape: bf16[64,64], index: 5, kind: input, shape index: {}]   ;;  %s9020_s6 = inlined_call_operand.vmem [shape: bf16[64,64], index: 6, kind: input, shape index: {}]   ;;  %s9021_s7 = inlined_call_operand.hbm [shape: bf16[64,128], index: 7, kind: input, shape index: {}]   ;;  %s9022_s8 = inlined_call_operand.vmem [shape: f32[1,640], index: 8, kind: input, shape index: {}]   ;;  %s9023_s9 = inlined_call_operand.hbm [shape: f32[16,128], index: 9, kind: output, shape index: {}]  }
   0x1   :  { %15 = vsyncpa [#allocation6], 0 }
   0x2   :  { %16 = vsyncpa [#allocation9], 0 }
   0x3   :  { %17 = vsyncpa [#allocation4], 0  ;;  %s7189_s30 = smov [#allocation5]   ;;  %s7190_s11 = smov [#allocation2]  }
   0x4   :  { %s37_s10 = sshll.u32 %s7189_s30, 4  ;;  %s25_s12 = sshll.u32 %s7190_s11, 4  ;;  %s38_s10 = int_to_ptr.vmem [resolvable:$true] %s37_s10  ;;  %s7252_s12 = int_to_ptr.vmem [resolvable:$true] %s25_s12 }
   0x5   :  { %s7071_s15 = scalar_lea.hbm %s9016_s2, 256 }
   0x6   :  { %p7072_p0 = scmp.ne.s32.totalorder %s9016_s2, %s7071_s15  ;;  %p7075_p1 = scmp.lt.u32.totalorder %s7071_s15, %s9016_s2 }
   0x8   :  { %p7077_p2 = pnand %p7075_p1, %p7072_p0 }
   0xa   :  { %7080 = shalt.err (!%p7077_p2)
}
   0xb   :  { %s7081_s20 = scalar_lea.vmem %s38_s10, 256  ;;  %p7086_p4 = scmp.lt.s32.totalorder %s38_s10, %s38_s10 }
   0xc   :  { %p7082_p3 = scmp.ne.s32.totalorder %s38_s10, %s7081_s20  ;;  %p7087_p5 = scmp.lt.s32.totalorder %s7081_s20, %s7081_s20 }
   0xe   :  { %p7088_p6 = por %p7087_p5, %p7086_p4 }
  0x10   :  { %p7089_p7 = pnand %p7088_p6, %p7082_p3 }
  0x12   :  { %7092 = shalt.err (!%p7089_p7)
}
  0x13   :  { %s7191_s21 = smov 64   ;;  %s7192_s22 = smov 4  }
  0x14   :  { %43 = dma.hbm_to_vmem [thread:$0]  %s9016_s2, 256, %s38_s10, [#allocation6], %s7191_s21, %s7191_s21, %s7192_s22  }
  0x15   :  { %s7093_s27 = scalar_lea.hbm %s9015_s1, 128 }
  0x16   :  { %p7094_p8 = scmp.ne.s32.totalorder %s9015_s1, %s7093_s27  ;;  %p7097_p9 = scmp.lt.u32.totalorder %s7093_s27, %s9015_s1 }
  0x18   :  { %p7099_p10 = pnand %p7097_p9, %p7094_p8 }
  0x1a   :  { %7102 = shalt.err (!%p7099_p10)
}
  0x1b   :  { %s7103_s13 = scalar_lea.vmem %s7252_s12, 128  ;;  %p7108_p12 = scmp.lt.s32.totalorder %s7252_s12, %s7252_s12 }
  0x1c   :  { %p7104_p11 = scmp.ne.s32.totalorder %s7252_s12, %s7103_s13  ;;  %p7109_p13 = scmp.lt.s32.totalorder %s7103_s13, %s7103_s13 }
  0x1e   :  { %p7110_p0 = por %p7109_p13, %p7108_p12 }
  0x20   :  { %p7111_p1 = pnand %p7110_p0, %p7104_p11 }
  0x22   :  { %7114 = shalt.err (!%p7111_p1)
}
  0x23   :  { %31 = dma.hbm_to_vmem [thread:$0]  %s9015_s1, 128, %s7252_s12, [#allocation3], %s7191_s21, %s7191_s21, %s7192_s22  }
  0x24   :  { %s7193_s14 = smov [#allocation7]   ;;  %s7194_s16 = smov [#allocation8]  }
  0x25   :  { %s49_s15 = sshll.u32 %s7193_s14, 4  ;;  %s67_s17 = sshll.u32 %s7194_s16, 4  ;;  %s50_s15 = int_to_ptr.vmem [resolvable:$true] %s49_s15  ;;  %s7289_s17 = int_to_ptr.vmem [resolvable:$true] %s67_s17 }
  0x26   :  { %s7115_s20 = scalar_lea.hbm %s9017_s3, 256 }
  0x27   :  { %p7116_p2 = scmp.ne.s32.totalorder %s9017_s3, %s7115_s20  ;;  %p7119_p3 = scmp.lt.u32.totalorder %s7115_s20, %s9017_s3 }
  0x29   :  { %p7121_p4 = pnand %p7119_p3, %p7116_p2 }
  0x2b   :  { %7124 = shalt.err (!%p7121_p4)
}
  0x2c   :  { %s7125_s1 = scalar_lea.vmem %s50_s15, 256  ;;  %p7130_p6 = scmp.lt.s32.totalorder %s50_s15, %s50_s15 }
  0x2d   :  { %p7126_p5 = scmp.ne.s32.totalorder %s50_s15, %s7125_s1  ;;  %p7131_p7 = scmp.lt.s32.totalorder %s7125_s1, %s7125_s1 }
  0x2f   :  { %p7132_p8 = por %p7131_p7, %p7130_p6 }
  0x31   :  { %p7133_p9 = pnand %p7132_p8, %p7126_p5 }
  0x33   :  { %7136 = shalt.err (!%p7133_p9)
}
  0x34   :  { %55 = dma.hbm_to_vmem [thread:$0]  %s9017_s3, 256, %s50_s15, [#allocation6], %s7191_s21, %s7191_s21, %s7192_s22  }
  0x35   :  { %s7137_s30 = scalar_lea.hbm %s9021_s7, 512 }
  0x36   :  { %p7138_p10 = scmp.ne.s32.totalorder %s9021_s7, %s7137_s30  ;;  %p7141_p11 = scmp.lt.u32.totalorder %s7137_s30, %s9021_s7 }
  0x38   :  { %p7143_p12 = pnand %p7141_p11, %p7138_p10 }
  0x3a   :  { %7146 = shalt.err (!%p7143_p12)
}
  0x3b   :  { %s7147_s14 = scalar_lea.vmem %s7289_s17, 512  ;;  %p7152_p0 = scmp.lt.s32.totalorder %s7289_s17, %s7289_s17 }
  0x3c   :  { %p7148_p13 = scmp.ne.s32.totalorder %s7289_s17, %s7147_s14  ;;  %p7153_p1 = scmp.lt.s32.totalorder %s7147_s14, %s7147_s14 }
  0x3e   :  { %p7154_p2 = por %p7153_p1, %p7152_p0 }
  0x40   :  { %p7155_p3 = pnand %p7154_p2, %p7148_p13 }
  0x42   :  { %7158 = shalt.err (!%p7155_p3)
}
  0x43   :  { %73 = dma.hbm_to_vmem [thread:$0]  %s9021_s7, 512, %s7289_s17, [#allocation9], %s7191_s21, %s7191_s21, %s7192_s22  }
  0x44   :  { %7181 = dma.done.wait [#allocation3], 128  }
  0x45   :  { %7182 = vsyncadd [#allocation3], 4294967168 }
  0x46   :  { %7183 = dma.done.wait [#allocation6], 512  }
  0x47   :  { %7184 = vsyncadd [#allocation6], 4294966784 }
  0x48   :  { %7185 = dma.done.wait [#allocation9], 512  }
  0x49   :  { %7186 = vsyncadd [#allocation9], 4294966784  ;;  %v7039_v0 = vld [vmem:[#allocation5] sm:$0xff]   ;;  %v7040_v1 = vld [vmem:[#allocation5 + $0x8] sm:$0xff]   ;;  %vm163_vm0 = vcmask 261120   ;;  %v7195_v6 = vmov 0.0   ;;  %v363_v16 = vlaneseq }
  0x4a   :  { %7022 = vmatprep.subr.bf16.mxu1 %v7039_v0  ;;  %v7041_v2 = vld [vmem:[%s9014_s0 + $0x30] sm:$0xff]   ;;  %6698 = vmatprep.subr.bf16.mxu0 %v7039_v0  ;;  %v7042_v3 = vld [vmem:[%s9014_s0 + $0x38] sm:$0xff]   ;;  %v7046_v5 = vld [vmem:[%s9014_s0] sm:$0xff]   ;;  %vm7196_vm1 = vmmov 0   ;;  %v7197_v14 = vmov 1966171168  }
  0x4b   :  { %7024 = vmatpush3.bf16.msra.mxu1 %v7039_v0  ;;  %6699 = vmatpush3.bf16.msra.mxu0 %v7039_v0  ;;  %v7043_v4 = vld [vmem:[#allocation7] sm:$0xff]   ;;  %v7047_v7 = vld [vmem:[%s9014_s0 + $0x8] sm:$0xff]   ;;  %v7048_v8 = vld [vmem:[%s9014_s0 + $0x10] sm:$0xff]   ;;  %v361_v15 = vunpack.c.l.s4 %v7197_v14  ;;  %v364_v25 = vshrl.u32 %v363_v16, 7  ;;  %vm3808_vm2 = vcmask 523264   ;;  %vm6041_vm3 = vcmask 1041409  }
  0x4c   :  { %7023 = vmatprep.subr.bf16.mxu1 %v7040_v1  ;;  %6714 = vmatprep.mubr.msk.bf16.mxu1 %vm163_vm0, %v7041_v2  ;;  %v7044_v9 = vld [vmem:[#allocation7 + $0x8] sm:$0xff]   ;;  %v7049_v11 = vld [vmem:[%s9014_s0 + $0x18] sm:$0xff]   ;;  %v7051_v13 = vld [vmem:[%s9014_s0 + $0x28] sm:$0xff]   ;;  %vm6043_vm4 = vcmask 1042434   ;;  %vm6045_vm5 = vcmask 1043459   ;;  %vm6047_vm6 = vcmask 1044484  }
  0x4d   :  { %6700 = vmatprep.subr.bf16.mxu0 %v7040_v1  ;;  %6702 = vmatprep.mubr.msk.bf16.mxu0 %vm163_vm0, %v7046_v5  ;;  %v7045_v10 = vld [vmem:[#allocation2] sm:$0xff]   ;;  %v362_v24 = vunpack.c.0.s8 %v361_v15  ;;  %v7387_v37 = vsub.s32 0, %v364_v25  ;;  %vm6049_vm7 = vcmask 1045509   ;;  %vm6051_vm8 = vcmask 1046534   ;;  %s7199_s18 = smov [#allocation10]  }
  0x4e   :  { %v7050_v12 = vld [vmem:[%s9014_s0 + $0x20] sm:$0xff]   ;;  %vm6053_vm9 = vcmask 1047559   ;;  %s6224_s7 = sshll.u32 %s7199_s18, 4  ;;  %s6225_s7 = int_to_ptr.vmem [resolvable:$true] %s6224_s7 }
  0x4f   :  { %7025 = vmatpush3.bf16.msra.mxu1 %v7040_v1  ;;  %6701 = vmatpush3.bf16.msra.mxu0 %v7040_v1  ;;  %v6256_v27 = vld [vmem:[%s9022_s8] ss:$0 sm:$0xff]  ;;  %v7382_v28 = vsub.s32 %v362_v24, %v364_v25  ;;  %s7159_s22 = scalar_lea.vmem %s6225_s7, 256  ;;  %p7164_p5 = scmp.lt.s32.totalorder %s6225_s7, %s6225_s7 }
  0x50   :  { %6718 = vmatprep.subr.bf16.mxu1 %v7195_v6  ;;  %v7052_v24 = vld [vmem:[%s9018_s4] sm:$0xff]   ;;  %p7160_p4 = scmp.ne.s32.totalorder %s6225_s7, %s7159_s22  ;;  %p7165_p6 = scmp.lt.s32.totalorder %s7159_s22, %s7159_s22 }
  0x52   :  { %6715 = vmatmul.mubr.msk.bf16.vlgmr.msra.gmra.mrb[0].mxu1 %vm163_vm0, %v7042_v3  ;;  %6703 = vmatmul.mubr.msk.bf16.vlgmr.msra.gmra.mrb[0].mxu0 %vm163_vm0, %v7047_v7  ;;  %p7166_p7 = por %p7165_p6, %p7164_p5 }
  0x53   :  { %6719 = vmatpush3.bf16.msra.mxu1 %v7043_v4  ;;  %6722 = vmatprep.mubr.msk.bf16.mxu1 %vm7196_vm1, %v7195_v6 }
  0x54   :  { %6720 = vmatprep.subr.bf16.mxu1 %v7195_v6  ;;  %6706 = vmatprep.mubr.msk.bf16.mxu0 %vm163_vm0, %v7048_v8  ;;  %p7167_p8 = pnand %p7166_p7, %p7160_p4 }
  0x57   :  { %6721 = vmatpush3.bf16.msra.mxu1 %v7044_v9 }
  0x58   :  { %6726 = vmatprep.subr.bf16.mxu1 %v7052_v24 }
  0x5a   :  { %6723 = vmatmul.mubr.msk.bf16.vlgmr.msra.gmra.mrb[4].mxu1 %vm163_vm0, %v7045_v10  ;;  %6707 = vmatmul.mubr.msk.bf16.gmra.mrb[4].mxu0 %vm163_vm0, %v7049_v11 }
  0x5b   :  { %6710 = vmatprep.mubr.msk.bf16.mxu0 %vm163_vm0, %v7050_v12  ;;  %6727 = vmatpush3.bf16.msra.mxu1 %v7052_v24 }
  0x62   :  { %6711 = vmatmul.mubr.msk.bf16.gmra.mrb[8].mxu0 %vm163_vm0, %v7051_v13 }
 0x125   :  { %v7363_v17 = vpop.f32.mrb[0].mxu1  ;;  %v7365_v18 = vpop.f32.mrb[0].mxu0 }
 0x126   :  { %v7367_v19 = vpop.f32.mrb[1].mxu1  ;;  %v7369_v20 = vpop.f32.mrb[1].mxu0 }
 0x127   :  { %v7371_v21 = vpop.f32.mrb[2].mxu1  ;;  %v7373_v22 = vpop.f32.mrb[2].mxu0 }
 0x128   :  { %v7375_v23 = vpop.f32.mrb[3].mxu1  ;;  %v7377_v26 = vpop.f32.mrb[3].mxu0 }
 0x12d   :  { %v350_v29 = vpop.f32.mrb[4].mxu1  ;;  %v7389_v38 = vpop.f32.mrb[4].mxu0 }
 0x12e   :  { %v351_v30 = vadd.f32 %v6256_v27, %v350_v29  ;;  %v6724_v31 = vpop.f32.mrb[5].mxu1  ;;  %v7391_v40 = vpop.f32.mrb[5].mxu0 }
 0x12f   :  { %v353_v32 = vpop.f32.mrb[6].mxu1  ;;  %v7395_v43 = vpop.f32.mrb[6].mxu0 }
 0x130   :  { %v359_v33 = vcombine.high %v351_v30, %v351_v30  ;;  %v366_v34 = vrot.slane %v351_v30, %v7382_v28  ;;  %v7385_v35 = vadd.f32 %v6256_v27, %v353_v32  ;;  %v6725_v36 = vpop.f32.mrb[7].mxu1  ;;  %v7398_v45 = vpop.f32.mrb[7].mxu0 }
 0x132   :  { %v374_v39 = vcombine.high %v366_v34, %v366_v34  ;;  %v373_v41 = vrot.slane %v359_v33, %v7382_v28  ;;  %v382_v42 = vrot.slane %v366_v34, %v7382_v28  ;;  %v7053_v34 = vld [vmem:[%s9018_s4 + $0x8] sm:$0xff]  }
 0x133   :  { %6728 = vmatprep.subr.bf16.mxu1 %v7053_v34 }
 0x134   :  { %v396_v44 = vrot.slane %v374_v39, %v7382_v28  ;;  %v460_v46 = vrot.slane %v382_v42, %v7387_v37  ;;  %v404_v47 = vcombine.high %v382_v42, %v382_v42  ;;  %v375_v50 = vcombine.high %v373_v41, %v373_v41  ;;  %6729 = vmatpush3.bf16.msra.mxu1 %v7053_v34 }
 0x135   :  { %v389_v52 = vrot.slane %v373_v41, %v7382_v28 }
 0x136   :  { %521 = vrot.lane.b32.xlu0 %v460_v46, %s7191_s21  ;;  %v468_v48 = vrot.slane %v404_v47, %v7387_v37  ;;  %v406_v49 = vcombine.high %v396_v44, %v396_v44  ;;  %v464_v51 = vrot.slane %v396_v44, %v7387_v37  ;;  %v403_v54 = vrot.slane %v375_v50, %v7382_v28 }
 0x137   :  { %v476_v55 = vrot.slane %v389_v52, %v7387_v37  ;;  %v405_v56 = vcombine.high %v389_v52, %v389_v52 }
 0x138   :  { %525 = vrot.lane.b32.xlu1 %v468_v48, %s7191_s21  ;;  %v472_v53 = vrot.slane %v406_v49, %v7387_v37  ;;  %v480_v57 = vrot.slane %v403_v54, %v7387_v37  ;;  %v407_v58 = vcombine.high %v403_v54, %v403_v54 }
 0x139   :  { %v484_v59 = vrot.slane %v405_v56, %v7387_v37 }
 0x13a   :  { %523 = vrot.lane.b32.xlu0 %v464_v51, %s7191_s21  ;;  %v488_v60 = vrot.slane %v407_v58, %v7387_v37 }
 0x13c   :  { %527 = vrot.lane.b32.xlu1 %v472_v53, %s7191_s21 }
 0x13e   :  { %529 = vrot.lane.b32.xlu0 %v476_v55, %s7191_s21 }
 0x140   :  { %531 = vrot.lane.b32.xlu1 %v480_v57, %s7191_s21 }
 0x142   :  { %533 = vrot.lane.b32.xlu0 %v484_v59, %s7191_s21  ;;  %v7054_v59 = vld [vmem:[%s9018_s4 + $0x10] sm:$0xff]  }
 0x143   :  { %6730 = vmatprep.subr.bf16.mxu1 %v7054_v59 }
 0x144   :  { %535 = vrot.lane.b32.xlu1 %v488_v60, %s7191_s21  ;;  %6731 = vmatpush3.bf16.msra.mxu1 %v7054_v59 }
 0x1a8   :  { %v522_v61 = vpop.permute.xlu0 %521 }
 0x1a9   :  { %v569_v62 = vadd.f32 %v522_v61, %v7369_v20 }
 0x1aa   :  { %v526_v63 = vpop.permute.xlu1 %525 }
 0x1ab   :  { %v601_v0 = vpack.c.bf16 %v569_v62, %v569_v62  ;;  %v571_v1 = vadd.f32 %v7365_v18, %v526_v63 }
 0x1ac   :  { %v524_v2 = vpop.permute.xlu0 %523 }
 0x1ad   :  { %v639_v3 = vrot.slane %v601_v0, %v7382_v28  ;;  %v570_v4 = vadd.f32 %v524_v2, %v7377_v26  ;;  %v603_v8 = vpack.c.bf16 %v571_v1, %v571_v1 }
 0x1ae   :  { %v528_v60 = vpop.permute.xlu1 %527 }
 0x1af   :  { %v640_v5 = vcombine.high %v639_v3, %v639_v3  ;;  %v647_v7 = vrot.slane %v639_v3, %v7382_v28  ;;  %v602_v9 = vpack.c.bf16 %v570_v4, %v570_v4  ;;  %v687_v13 = vrot.slane %v603_v8, %v7382_v28 }
 0x1b1   :  { %v654_v10 = vrot.slane %v640_v5, %v7382_v28  ;;  %v6261_v11 = vpack.i.b16 %v647_v7, %v647_v7  ;;  %v1018_v12 = vunpack.i.h.s16 %v647_v7  ;;  %v663_v16 = vrot.slane %v602_v9, %v7382_v28 }
 0x1b2   :  { %v7432_v30 = vrot.slane %v687_v13, %v7382_v28  ;;  %v688_v32 = vcombine.high %v687_v13, %v687_v13  ;;  %v655_v41 = vcombine.high %v647_v7, %v647_v7 }
 0x1b3   :  { %v1276_v14 = vrot.slane %v6261_v11, %v7387_v37  ;;  %v1146_v15 = vpack.i.b16 %v1018_v12, %v1018_v12  ;;  %v6262_v27 = vpack.i.b16 %v654_v10, %v654_v10  ;;  %v671_v33 = vrot.slane %v663_v16, %v7382_v28 }
 0x1b4   :  { %v664_v42 = vcombine.high %v663_v16, %v663_v16  ;;  %v6263_v47 = vpack.i.b16 %v655_v41, %v655_v41  ;;  %v6269_v48 = vpack.i.b16 %v7432_v30, %v7432_v30  ;;  %v7445_v49 = vrot.slane %v688_v32, %v7382_v28 }
 0x1b5   :  { %v1786_v25 = vpack.i.b16 %v1276_v14, %v1276_v14  ;;  %v1280_v29 = vrot.slane %v1146_v15, %v7387_v37  ;;  %v1284_v39 = vrot.slane %v6262_v27, %v7387_v37  ;;  %v6265_v50 = vpack.i.b16 %v671_v33, %v671_v33  ;;  %v7055_v14 = vld [vmem:[%s9018_s4 + $0x18] sm:$0xff]  }
 0x1b6   :  { %v1292_v52 = vrot.slane %v6263_v47, %v7387_v37  ;;  %v1340_v53 = vrot.slane %v6269_v48, %v7387_v37  ;;  %v1022_v54 = vunpack.i.h.s16 %v655_v41  ;;  %v7452_v55 = vrot.slane %v664_v42, %v7382_v28  ;;  %6732 = vmatprep.subr.bf16.mxu1 %v7055_v14 }
 0x1b7   :  { %v1791_v31 = vrot.slane %v1786_v25, %v7387_v37  ;;  %v1793_v36 = vpack.i.b16 %v1280_v29, %v1280_v29  ;;  %v1800_v46 = vpack.i.b16 %v1284_v39, %v1284_v39  ;;  %v1308_v56 = vrot.slane %v6265_v50, %v7387_v37  ;;  %6733 = vmatpush3.bf16.msra.mxu1 %v7055_v14 }
 0x1b8   :  { %v1020_v57 = vunpack.i.h.s16 %v654_v10  ;;  %v1026_v58 = vunpack.i.h.s16 %v671_v33  ;;  %v1814_v61 = vpack.i.b16 %v1292_v52, %v1292_v52  ;;  %v1898_v62 = vpack.i.b16 %v1340_v53, %v1340_v53  ;;  %6998 = vmatprep.subr.bf16.mxu1 %v7195_v6 }
 0x1b9   :  { %2809 = vrot.lane.b32.xlu1 %v1791_v31, %s7191_s21  ;;  %v1798_v44 = vrot.slane %v1793_v36, %v7387_v37  ;;  %v1805_v51 = vrot.slane %v1800_v46, %v7387_v37  ;;  %v1150_v63 = vpack.i.b16 %v1022_v54, %v1022_v54  ;;  %v656_v0 = vcombine.high %v654_v10, %v654_v10 }
 0x1ba   :  { %v1842_v1 = vpack.i.b16 %v1308_v56, %v1308_v56  ;;  %v1148_v2 = vpack.i.b16 %v1020_v57, %v1020_v57  ;;  %v1154_v3 = vpack.i.b16 %v1026_v58, %v1026_v58  ;;  %v679_v4 = vcombine.high %v671_v33, %v671_v33  ;;  %v530_v58 = vpop.permute.xlu0 %529 }
 0x1bb   :  { %2811 = vrot.lane.b32.xlu0 %v1798_v44, %s7191_s21  ;;  %v1819_v5 = vrot.slane %v1814_v61, %v7387_v37  ;;  %v1903_v7 = vrot.slane %v1898_v62, %v7387_v37  ;;  %v1296_v8 = vrot.slane %v1150_v63, %v7387_v37  ;;  %v6264_v9 = vpack.i.b16 %v656_v0, %v656_v0 }
 0x1bc   :  { %v572_v11 = vadd.f32 %v7373_v22, %v528_v60  ;;  %v1288_v12 = vrot.slane %v1148_v2, %v7387_v37  ;;  %v1312_v13 = vrot.slane %v1154_v3, %v7387_v37  ;;  %v6267_v10 = vpack.i.b16 %v679_v4, %v679_v4 }
 0x1bd   :  { %2813 = vrot.lane.b32.xlu1 %v1805_v51, %s7191_s21  ;;  %v1821_v15 = vpack.i.b16 %v1296_v8, %v1296_v8  ;;  %v1300_v16 = vrot.slane %v6264_v9, %v7387_v37  ;;  %v6266_v24 = vpack.i.b16 %v7452_v55, %v7452_v55  ;;  %v1847_v25 = vrot.slane %v1842_v1, %v7387_v37 }
 0x1be   :  { %v1807_v27 = vpack.i.b16 %v1288_v12, %v1288_v12  ;;  %v1034_v29 = vunpack.i.h.s16 %v7432_v30  ;;  %v1849_v32 = vpack.i.b16 %v1312_v13, %v1312_v13  ;;  %v1324_v33 = vrot.slane %v6267_v10, %v7387_v37 }
 0x1bf   :  { %2817 = vrot.lane.b32.xlu0 %v1819_v5, %s7191_s21  ;;  %v1826_v31 = vrot.slane %v1821_v15, %v7387_v37  ;;  %v6270_v34 = vpack.i.b16 %v7445_v49, %v7445_v49  ;;  %v604_v36 = vpack.c.bf16 %v572_v11, %v572_v11  ;;  %v1828_v39 = vpack.i.b16 %v1300_v16, %v1300_v16 }
 0x1c0   :  { %v1316_v41 = vrot.slane %v6266_v24, %v7387_v37  ;;  %v1024_v42 = vunpack.i.h.s16 %v656_v0  ;;  %v1812_v44 = vrot.slane %v1807_v27, %v7387_v37  ;;  %v1162_v46 = vpack.i.b16 %v1034_v29, %v1034_v29 }
 0x1c1   :  { %2841 = vrot.lane.b32.xlu1 %v1903_v7, %s7191_s21  ;;  %v703_v47 = vcombine.high %v7432_v30, %v7432_v30  ;;  %v1028_v48 = vunpack.i.h.s16 %v7452_v55  ;;  %v1854_v50 = vrot.slane %v1849_v32, %v7387_v37  ;;  %v1870_v51 = vpack.i.b16 %v1324_v33, %v1324_v33 }
 0x1c2   :  { %v1348_v52 = vrot.slane %v6270_v34, %v7387_v37  ;;  %v1152_v53 = vpack.i.b16 %v1024_v42, %v1024_v42  ;;  %v7490_v54 = vrot.slane %v604_v36, %v7382_v28  ;;  %v1833_v56 = vrot.slane %v1828_v39, %v7387_v37 }
 0x1c3   :  { %2825 = vrot.lane.b32.xlu0 %v1847_v25, %s7191_s21  ;;  %v1030_v57 = vunpack.i.h.s16 %v679_v4  ;;  %v1856_v30 = vpack.i.b16 %v1316_v41, %v1316_v41  ;;  %v6271_v59 = vpack.i.b16 %v703_v47, %v703_v47  ;;  %v1156_v60 = vpack.i.b16 %v1028_v48, %v1028_v48 }
 0x1c4   :  { %v680_v61 = vcombine.high %v7452_v55, %v7452_v55  ;;  %v1875_v62 = vrot.slane %v1870_v51, %v7387_v37  ;;  %v1912_v63 = vpack.i.b16 %v1348_v52, %v1348_v52  ;;  %v1344_v0 = vrot.slane %v1162_v46, %v7387_v37 }
 0x1c5   :  { %2819 = vrot.lane.b32.xlu1 %v1826_v31, %s7191_s21  ;;  %v1304_v1 = vrot.slane %v1152_v53, %v7387_v37  ;;  %v7502_v2 = vrot.slane %v7490_v54, %v7382_v28  ;;  %v573_v3 = vadd.f32 %v530_v58, %v7391_v40  ;;  %v1158_v4 = vpack.i.b16 %v1030_v57, %v1030_v57 }
 0x1c6   :  { %v1036_v55 = vunpack.i.h.s16 %v7445_v49  ;;  %v1356_v5 = vrot.slane %v6271_v59, %v7387_v37  ;;  %v1320_v7 = vrot.slane %v1156_v60, %v7387_v37  ;;  %v6268_v8 = vpack.i.b16 %v680_v61, %v680_v61 }
 0x1c7   :  { %2815 = vrot.lane.b32.xlu0 %v1812_v44, %s7191_s21  ;;  %v1038_v9 = vunpack.i.h.s16 %v703_v47  ;;  %v1861_v11 = vrot.slane %v1856_v30, %v7387_v37  ;;  %v1917_v12 = vrot.slane %v1912_v63, %v7387_v37  ;;  %v1905_v13 = vpack.i.b16 %v1344_v0, %v1344_v0 }
 0x1c8   :  { %v1835_v10 = vpack.i.b16 %v1304_v1, %v1304_v1  ;;  %v605_v14 = vpack.c.bf16 %v573_v3, %v573_v3  ;;  %v1328_v15 = vrot.slane %v1158_v4, %v7387_v37  ;;  %v1164_v16 = vpack.i.b16 %v1036_v55, %v1036_v55 }
 0x1c9   :  { %2827 = vrot.lane.b32.xlu1 %v1854_v50, %s7191_s21  ;;  %v1926_v24 = vpack.i.b16 %v1356_v5, %v1356_v5  ;;  %v1863_v25 = vpack.i.b16 %v1320_v7, %v1320_v7  ;;  %v1332_v27 = vrot.slane %v6268_v8, %v7387_v37  ;;  %v1166_v29 = vpack.i.b16 %v1038_v9, %v1038_v9 }
 0x1ca   :  { %v1910_v31 = vrot.slane %v1905_v13, %v7387_v37  ;;  %v1840_v32 = vrot.slane %v1835_v10, %v7387_v37  ;;  %v7520_v33 = vcombine.high %v7445_v49, %v7445_v49  ;;  %v1042_v34 = vunpack.i.h.s16 %v7502_v2 }
 0x1cb   :  { %2821 = vrot.lane.b32.xlu0 %v1833_v56, %s7191_s21  ;;  %v735_v36 = vrot.slane %v605_v14, %v7382_v28  ;;  %v1877_v39 = vpack.i.b16 %v1328_v15, %v1328_v15  ;;  %v1352_v41 = vrot.slane %v1164_v16, %v7387_v37  ;;  %v1931_v42 = vrot.slane %v1926_v24, %v7387_v37 }
 0x1cc   :  { %v1868_v44 = vrot.slane %v1863_v25, %v7387_v37  ;;  %v1884_v46 = vpack.i.b16 %v1332_v27, %v1332_v27  ;;  %v1360_v47 = vrot.slane %v1166_v29, %v7387_v37  ;;  %v6272_v49 = vpack.i.b16 %v7520_v33, %v7520_v33  ;;  %v532_v27 = vpop.permute.xlu1 %531 }
 0x1cd   :  { %2833 = vrot.lane.b32.xlu1 %v1875_v62, %s7191_s21  ;;  %v1170_v48 = vpack.i.b16 %v1042_v34, %v1042_v34  ;;  %v1032_v50 = vunpack.i.h.s16 %v680_v61  ;;  %v7534_v51 = vcombine.high %v7502_v2, %v7502_v2  ;;  %v712_v52 = vcombine.high %v7490_v54, %v7490_v54 }
 0x1ce   :  { %v736_v53 = vcombine.high %v735_v36, %v735_v36  ;;  %v743_v56 = vrot.slane %v735_v36, %v7382_v28  ;;  %v1882_v57 = vrot.slane %v1877_v39, %v7387_v37  ;;  %v1889_v58 = vrot.slane %v1884_v46, %v7387_v37 }
 0x1cf   :  { %2829 = vrot.lane.b32.xlu0 %v1861_v11, %s7191_s21  ;;  %v1919_v30 = vpack.i.b16 %v1352_v41, %v1352_v41  ;;  %v1933_v59 = vpack.i.b16 %v1360_v47, %v1360_v47  ;;  %v1364_v60 = vrot.slane %v6272_v49, %v7387_v37  ;;  %v1376_v61 = vrot.slane %v1170_v48, %v7387_v37 }
 0x1d0   :  { %v1160_v62 = vpack.i.b16 %v1032_v50, %v1032_v50  ;;  %v6275_v54 = vpack.i.b16 %v7534_v51, %v7534_v51  ;;  %v7548_v63 = vrot.slane %v712_v52, %v7382_v28  ;;  %v7551_v0 = vrot.slane %v736_v53, %v7382_v28 }
 0x1d1   :  { %2845 = vrot.lane.b32.xlu1 %v1917_v12, %s7191_s21  ;;  %v1924_v1 = vrot.slane %v1919_v30, %v7387_v37  ;;  %v1938_v3 = vrot.slane %v1933_v59, %v7387_v37  ;;  %v6273_v4 = vpack.i.b16 %v7502_v2, %v7502_v2  ;;  %v6277_v55 = vpack.i.b16 %v743_v56, %v743_v56 }
 0x1d2   :  { %v1940_v5 = vpack.i.b16 %v1364_v60, %v1364_v60  ;;  %v1961_v7 = vpack.i.b16 %v1376_v61, %v1376_v61  ;;  %v1336_v8 = vrot.slane %v1160_v62, %v7387_v37  ;;  %v1388_v9 = vrot.slane %v6275_v54, %v7387_v37 }
 0x1d3   :  { %2843 = vrot.lane.b32.xlu0 %v1910_v31, %s7191_s21  ;;  %v1040_v11 = vunpack.i.h.s16 %v7520_v33  ;;  %v1372_v12 = vrot.slane %v6273_v4, %v7387_v37  ;;  %v1404_v13 = vrot.slane %v6277_v55, %v7387_v37  ;;  %v6274_v2 = vpack.i.b16 %v7548_v63, %v7548_v63  ;;  %v7575_v33 = vpop.f32.mrb[8].mxu0 }
 0x1d4   :  { %v6278_v10 = vpack.i.b16 %v7551_v0, %v7551_v0  ;;  %v1945_v14 = vrot.slane %v1940_v5, %v7387_v37  ;;  %v1966_v15 = vrot.slane %v1961_v7, %v7387_v37  ;;  %v1891_v16 = vpack.i.b16 %v1336_v8, %v1336_v8 }
 0x1d5   :  { %2823 = vrot.lane.b32.xlu1 %v1840_v32, %s7191_s21  ;;  %v1982_v24 = vpack.i.b16 %v1388_v9, %v1388_v9  ;;  %v1050_v25 = vunpack.i.h.s16 %v743_v56  ;;  %v1954_v29 = vpack.i.b16 %v1372_v12, %v1372_v12  ;;  %v2010_v31 = vpack.i.b16 %v1404_v13, %v1404_v13 }
 0x1d6   :  { %v1380_v32 = vrot.slane %v6274_v2, %v7387_v37  ;;  %v1896_v34 = vrot.slane %v1891_v16, %v7387_v37  ;;  %v1412_v39 = vrot.slane %v6278_v10, %v7387_v37  ;;  %v1168_v41 = vpack.i.b16 %v1040_v11, %v1040_v11 }
 0x1d7   :  { %2849 = vrot.lane.b32.xlu0 %v1931_v42, %s7191_s21  ;;  %v1987_v36 = vrot.slane %v1982_v24, %v7387_v37  ;;  %v7580_v42 = vpop.f32.mrb[9].mxu0  ;;  %v574_v47 = vadd.f32 %v532_v27, %v7398_v45  ;;  %v1178_v49 = vpack.i.b16 %v1050_v25, %v1050_v25  ;;  %v1959_v48 = vrot.slane %v1954_v29, %v7387_v37 }
 0x1d8   :  { %v7584_v46 = vpop.f32.mrb[10].mxu0  ;;  %v2015_v50 = vrot.slane %v2010_v31, %v7387_v37  ;;  %v1968_v52 = vpack.i.b16 %v1380_v32, %v1380_v32  ;;  %v1052_v53 = vunpack.i.h.s16 %v7551_v0  ;;  %v1044_v30 = vunpack.i.h.s16 %v7548_v63 }
 0x1d9   :  { %2831 = vrot.lane.b32.xlu1 %v1868_v44, %s7191_s21  ;;  %v415_v44 = vrot.slane %v7385_v35, %v7382_v28  ;;  %v751_v59 = vcombine.high %v743_v56, %v743_v56  ;;  %v606_v61 = vpack.c.bf16 %v574_v47, %v574_v47  ;;  %v7605_v8 = vpop.f32.mrb[11].mxu0  ;;  %v1046_v12 = vunpack.i.h.s16 %v7534_v51 }
 0x1da   :  { %v1973_v54 = vrot.slane %v1968_v52, %v7387_v37  ;;  %v1172_v5 = vpack.i.b16 %v1044_v30, %v1044_v30  ;;  %v752_v25 = vcombine.high %v7551_v0, %v7551_v0 }
 0x1db   :  { %2835 = vrot.lane.b32.xlu0 %v1882_v57, %s7191_s21  ;;  %v2024_v57 = vpack.i.b16 %v1412_v39, %v1412_v39  ;;  %v423_v60 = vcombine.high %v415_v44, %v415_v44  ;;  %v7597_v62 = vrot.slane %v415_v44, %v7382_v28  ;;  %v1054_v7 = vunpack.i.h.s16 %v751_v59 }
 0x1dc   :  { %v759_v9 = vrot.slane %v606_v61, %v7382_v28  ;;  %v6279_v10 = vpack.i.b16 %v751_v59, %v751_v59  ;;  %v1384_v16 = vrot.slane %v1172_v5, %v7387_v37  ;;  %v1174_v31 = vpack.i.b16 %v1046_v12, %v1046_v12 }
 0x1dd   :  { %2837 = vrot.lane.b32.xlu1 %v1889_v58, %s7191_s21  ;;  %v1368_v58 = vrot.slane %v1168_v41, %v7387_v37  ;;  %v2029_v4 = vrot.slane %v2024_v57, %v7387_v37  ;;  %v7603_v56 = vrot.slane %v423_v60, %v7382_v28  ;;  %v492_v11 = vrot.slane %v7597_v62, %v7387_v37 }
 0x1de   :  { %v1182_v24 = vpack.i.b16 %v1054_v7, %v1054_v7  ;;  %v760_v29 = vcombine.high %v759_v9, %v759_v9  ;;  %v767_v51 = vrot.slane %v759_v9, %v7382_v28  ;;  %v1975_v39 = vpack.i.b16 %v1384_v16, %v1384_v16 }
 0x1df   :  { %2847 = vrot.lane.b32.xlu0 %v1924_v1, %s7191_s21  ;;  %v1408_v1 = vrot.slane %v1178_v49, %v7387_v37  ;;  %v1947_v55 = vpack.i.b16 %v1368_v58, %v1368_v58  ;;  %v496_v27 = vrot.slane %v7603_v56, %v7387_v37  ;;  %v1056_v44 = vunpack.i.h.s16 %v752_v25 }
 0x1e0   :  { %v1424_v0 = vrot.slane %v1182_v24, %v7387_v37  ;;  %v774_v47 = vrot.slane %v760_v29, %v7382_v28  ;;  %v1058_v49 = vunpack.i.h.s16 %v767_v51  ;;  %v1980_v58 = vrot.slane %v1975_v39, %v7387_v37 }
 0x1e1   :  { %2851 = vrot.lane.b32.xlu1 %v1938_v3, %s7191_s21  ;;  %v1180_v3 = vpack.i.b16 %v1052_v53, %v1052_v53  ;;  %v2017_v13 = vpack.i.b16 %v1408_v1, %v1408_v1  ;;  %v1392_v53 = vrot.slane %v1174_v31, %v7387_v37  ;;  %v1184_v60 = vpack.i.b16 %v1056_v44, %v1056_v44 }
 0x1e2   :  { %v2045_v30 = vpack.i.b16 %v1424_v0, %v1424_v0  ;;  %v6282_v39 = vpack.i.b16 %v774_v47, %v774_v47 }
 0x1e3   :  { %2853 = vrot.lane.b32.xlu0 %v1945_v14, %s7191_s21  ;;  %v1416_v2 = vrot.slane %v1180_v3, %v7387_v37  ;;  %v728_v14 = vcombine.high %v7548_v63, %v7548_v63  ;;  %v2022_v63 = vrot.slane %v2017_v13, %v7387_v37  ;;  %v1989_v3 = vpack.i.b16 %v1392_v53, %v1392_v53 }
 0x1e4   :  { %v2050_v5 = vrot.slane %v2045_v30, %v7387_v37  ;;  %v1432_v9 = vrot.slane %v1184_v60, %v7387_v37 }
 0x1e5   :  { %2859 = vrot.lane.b32.xlu1 %v1966_v15, %s7191_s21  ;;  %v1952_v15 = vrot.slane %v1947_v55, %v7387_v37  ;;  %v2031_v32 = vpack.i.b16 %v1416_v2, %v1416_v2  ;;  %v6276_v41 = vpack.i.b16 %v728_v14, %v728_v14  ;;  %v6280_v55 = vpack.i.b16 %v752_v25, %v752_v25 }
 0x1e6   :  { %v1994_v2 = vrot.slane %v1989_v3, %v7387_v37  ;;  %v2059_v24 = vpack.i.b16 %v1432_v9, %v1432_v9 }
 0x1e7   :  { %2839 = vrot.lane.b32.xlu0 %v1896_v34, %s7191_s21  ;;  %v1420_v34 = vrot.slane %v6279_v10, %v7387_v37  ;;  %v1396_v59 = vrot.slane %v6276_v41, %v7387_v37 }
 0x1e8   :  { %v2064_v0 = vrot.slane %v2059_v24, %v7387_v37 }
 0x1e9   :  { %2865 = vrot.lane.b32.xlu1 %v1987_v36, %s7191_s21  ;;  %v1048_v36 = vunpack.i.h.s16 %v728_v14  ;;  %v2038_v52 = vpack.i.b16 %v1420_v34, %v1420_v34  ;;  %v1996_v7 = vpack.i.b16 %v1396_v59, %v1396_v59  ;;  %v1428_v14 = vrot.slane %v6280_v55, %v7387_v37 }
 0x1eb   :  { %2857 = vrot.lane.b32.xlu0 %v1959_v48, %s7191_s21  ;;  %v534_v48 = vpop.permute.xlu0 %533  ;;  %v1176_v57 = vpack.i.b16 %v1048_v36, %v1048_v36  ;;  %v2043_v1 = vrot.slane %v2038_v52, %v7387_v37  ;;  %v2001_v16 = vrot.slane %v1996_v7, %v7387_v37  ;;  %v2052_v34 = vpack.i.b16 %v1428_v14, %v1428_v14 }
 0x1ec   :  { %v575_v61 = vadd.f32 %v7389_v38, %v534_v48 }
 0x1ed   :  { %2873 = vrot.lane.b32.xlu1 %v2015_v50, %s7191_s21  ;;  %v2036_v50 = vrot.slane %v2031_v32, %v7387_v37  ;;  %v2057_v52 = vrot.slane %v2052_v34, %v7387_v37 }
 0x1ee   :  { %v607_v12 = vpack.c.bf16 %v575_v61, %v575_v61 }
 0x1ef   :  { %2861 = vrot.lane.b32.xlu0 %v1973_v54, %s7191_s21  ;;  %v1186_v54 = vpack.i.b16 %v1058_v49, %v1058_v49 }
 0x1f0   :  { %v783_v29 = vrot.slane %v607_v12, %v7382_v28 }
 0x1f1   :  { %2877 = vrot.lane.b32.xlu1 %v2029_v4, %s7191_s21  ;;  %v1400_v4 = vrot.slane %v1176_v57, %v7387_v37  ;;  %v1440_v13 = vrot.slane %v1186_v54, %v7387_v37 }
 0x1f2   :  { %v784_v49 = vcombine.high %v783_v29, %v783_v29  ;;  %v791_v48 = vrot.slane %v783_v29, %v7382_v28 }
 0x1f3   :  { %537 = vrot.lane.b32.xlu0 %v492_v11, %s7191_s21  ;;  %v1060_v11 = vunpack.i.h.s16 %v774_v47  ;;  %v2003_v10 = vpack.i.b16 %v1400_v4, %v1400_v4  ;;  %v2073_v31 = vpack.i.b16 %v1440_v13, %v1440_v13  ;;  %v453_v13 = vcombine.high %v7597_v62, %v7597_v62 }
 0x1f4   :  { %v1066_v54 = vunpack.i.h.s16 %v791_v48  ;;  %v6285_v55 = vpack.i.b16 %v791_v48, %v791_v48  ;;  %v799_v29 = vcombine.high %v791_v48, %v791_v48 }
 0x1f5   :  { %2855 = vrot.lane.b32.xlu1 %v1952_v15, %s7191_s21  ;;  %v6281_v15 = vpack.i.b16 %v767_v51, %v767_v51  ;;  %v1188_v25 = vpack.i.b16 %v1060_v11, %v1060_v11  ;;  %v2008_v32 = vrot.slane %v2003_v10, %v7387_v37  ;;  %v2078_v53 = vrot.slane %v2073_v31, %v7387_v37 }
 0x1f6   :  { %v1468_v14 = vrot.slane %v6285_v55, %v7387_v37  ;;  %v500_v31 = vrot.slane %v453_v13, %v7387_v37 }
 0x1f7   :  { %2875 = vrot.lane.b32.xlu0 %v2022_v63, %s7191_s21  ;;  %v536_v63 = vpop.permute.xlu1 %535  ;;  %v1436_v36 = vrot.slane %v6281_v15, %v7387_v37  ;;  %v1448_v41 = vrot.slane %v1188_v25, %v7387_v37 }
 0x1f9   :  { %539 = vrot.lane.b32.xlu1 %v496_v27, %s7191_s21  ;;  %v775_v27 = vcombine.high %v767_v51, %v767_v51  ;;  %v776_v51 = vcombine.high %v774_v47, %v774_v47  ;;  %v2066_v57 = vpack.i.b16 %v1436_v36, %v1436_v36  ;;  %v2087_v30 = vpack.i.b16 %v1448_v41, %v1448_v41 }
 0x1fb   :  { %2879 = vrot.lane.b32.xlu0 %v2036_v50, %s7191_s21  ;;  %v6283_v44 = vpack.i.b16 %v775_v27, %v775_v27  ;;  %v576_v50 = vadd.f32 %v7395_v43, %v536_v63  ;;  %v6284_v47 = vpack.i.b16 %v776_v51, %v776_v51  ;;  %v1062_v60 = vunpack.i.h.s16 %v775_v27 }
 0x1fc   :  { %v2071_v3 = vrot.slane %v2066_v57, %v7387_v37  ;;  %v1064_v41 = vunpack.i.h.s16 %v776_v51 }
 0x1fd   :  { %2863 = vrot.lane.b32.xlu1 %v1980_v58, %s7191_s21  ;;  %v1444_v58 = vrot.slane %v6282_v39, %v7387_v37  ;;  %v1452_v59 = vrot.slane %v6283_v44, %v7387_v37  ;;  %v608_v61 = vpack.c.bf16 %v576_v50, %v576_v50  ;;  %v1460_v9 = vrot.slane %v6284_v47, %v7387_v37 }
 0x1fe   :  { %v1190_v11 = vpack.i.b16 %v1062_v60, %v1062_v60  ;;  %v1070_v44 = vunpack.i.h.s16 %v799_v29 }
 0x1ff   :  { %2881 = vrot.lane.b32.xlu0 %v2043_v1, %s7191_s21  ;;  %v798_v1 = vrot.slane %v784_v49, %v7382_v28  ;;  %v2080_v4 = vpack.i.b16 %v1444_v58, %v1444_v58  ;;  %v2094_v7 = vpack.i.b16 %v1452_v59, %v1452_v59  ;;  %v807_v12 = vrot.slane %v608_v61, %v7382_v28 }
 0x200   :  { %v2108_v25 = vpack.i.b16 %v1460_v9, %v1460_v9  ;;  %v1456_v27 = vrot.slane %v1190_v11, %v7387_v37  ;;  %v1192_v58 = vpack.i.b16 %v1064_v41, %v1064_v41  ;;  %v455_v59 = vcombine.high %v7603_v56, %v7603_v56 }
 0x201   :  { %2883 = vrot.lane.b32.xlu1 %v2050_v5, %s7191_s21  ;;  %v2092_v5 = vrot.slane %v2087_v30, %v7387_v37  ;;  %v2085_v10 = vrot.slane %v2080_v4, %v7387_v37  ;;  %v6286_v15 = vpack.i.b16 %v798_v1, %v798_v1  ;;  %v2099_v24 = vrot.slane %v2094_v7, %v7387_v37 }
 0x202   :  { %v815_v63 = vrot.slane %v807_v12, %v7382_v28  ;;  %v2113_v39 = vrot.slane %v2108_v25, %v7387_v37  ;;  %v1198_v30 = vpack.i.b16 %v1070_v44, %v1070_v44  ;;  %v800_v61 = vcombine.high %v798_v1, %v798_v1 }
 0x203   :  { %2867 = vrot.lane.b32.xlu0 %v1994_v2, %s7191_s21  ;;  %v1194_v2 = vpack.i.b16 %v1066_v54, %v1066_v54  ;;  %v1476_v34 = vrot.slane %v6286_v15, %v7387_v37  ;;  %v1464_v4 = vrot.slane %v1192_v58, %v7387_v37  ;;  %v808_v7 = vcombine.high %v807_v12, %v807_v12 }
 0x204   :  { %v7695_v54 = vcombine.high %v815_v63, %v815_v63  ;;  %v1488_v55 = vrot.slane %v1198_v30, %v7387_v37  ;;  %v504_v9 = vrot.slane %v455_v59, %v7387_v37  ;;  %v6288_v11 = vpack.i.b16 %v800_v61, %v800_v61 }
 0x205   :  { %2869 = vrot.lane.b32.xlu1 %v2001_v16, %s7191_s21  ;;  %v1068_v16 = vunpack.i.h.s16 %v798_v1  ;;  %v1472_v62 = vrot.slane %v1194_v2, %v7387_v37  ;;  %v2136_v48 = vpack.i.b16 %v1476_v34, %v1476_v34  ;;  %v2115_v2 = vpack.i.b16 %v1464_v4, %v1464_v4 }
 0x206   :  { %v6291_v13 = vpack.i.b16 %v7695_v54, %v7695_v54  ;;  %v1072_v15 = vunpack.i.h.s16 %v800_v61  ;;  %v7709_v12 = vrot.slane %v808_v7, %v7382_v28 }
 0x207   :  { %2871 = vrot.lane.b32.xlu0 %v2008_v32, %s7191_s21  ;;  %v2122_v32 = vpack.i.b16 %v1468_v14, %v1468_v14  ;;  %v1196_v36 = vpack.i.b16 %v1068_v16, %v1068_v16  ;;  %v2129_v49 = vpack.i.b16 %v1472_v62, %v1472_v62 }
 0x208   :  { %v1516_v25 = vrot.slane %v6291_v13, %v7387_v37 }
 0x209   :  { %2887 = vrot.lane.b32.xlu1 %v2064_v0, %s7191_s21  ;;  %v2101_v0 = vpack.i.b16 %v1456_v27, %v1456_v27  ;;  %v1480_v50 = vrot.slane %v1196_v36, %v7387_v37  ;;  %v2127_v57 = vrot.slane %v2122_v32, %v7387_v37  ;;  %v2134_v51 = vrot.slane %v2129_v49, %v7387_v37 }
 0x20a   :  { %v6289_v27 = vpack.i.b16 %v815_v63, %v815_v63  ;;  %v1200_v32 = vpack.i.b16 %v1072_v15, %v1072_v15  ;;  %v7721_v36 = vpack.c.bf16 %v7369_v20, %v7369_v20  ;;  %v2206_v44 = vpack.i.b16 %v1516_v25, %v1516_v25 }
 0x20b   :  { %2885 = vrot.lane.b32.xlu0 %v2057_v52, %s7191_s21  ;;  %v1074_v52 = vunpack.i.h.s16 %v815_v63  ;;  %v2143_v47 = vpack.i.b16 %v1480_v50, %v1480_v50  ;;  %v408_v20 = vcombine.high %v7385_v35, %v7385_v35 }
 0x20c   :  { %v1500_v63 = vrot.slane %v6289_v27, %v7387_v37  ;;  %v1496_v49 = vrot.slane %v1200_v32, %v7387_v37 }
 0x20d   :  { %2891 = vrot.lane.b32.xlu1 %v2078_v53, %s7191_s21  ;;  %v2106_v53 = vrot.slane %v2101_v0, %v7387_v37  ;;  %v1202_v60 = vpack.i.b16 %v1074_v52, %v1074_v52  ;;  %v2148_v56 = vrot.slane %v2143_v47, %v7387_v37  ;;  %v7743_v4 = vrot.slane %v408_v20, %v7382_v28 }
 0x20e   :  { %v2171_v59 = vpack.i.b16 %v1496_v49, %v1496_v49 }
 0x20f   :  { %2889 = vrot.lane.b32.xlu0 %v2071_v3, %s7191_s21  ;;  %v2141_v3 = vrot.slane %v2136_v48, %v7387_v37  ;;  %v1504_v1 = vrot.slane %v1202_v60, %v7387_v37  ;;  %v6290_v48 = vpack.i.b16 %v7709_v12, %v7709_v12  ;;  %v7198_v60 = vmov 0  }
 0x211   :  { %2895 = vrot.lane.b32.xlu1 %v2092_v5, %s7191_s21  ;;  %v6287_v5 = vpack.i.b16 %v799_v29, %v799_v29  ;;  %v2185_v16 = vpack.i.b16 %v1504_v1, %v1504_v1  ;;  %v2120_v29 = vrot.slane %v2115_v2, %v7387_v37  ;;  %v1508_v47 = vrot.slane %v6290_v48, %v7387_v37 }
 0x212   :  { %v7755_v2 = vrot.slane %v7743_v4, %v7382_v28 }
 0x213   :  { %2893 = vrot.lane.b32.xlu0 %v2085_v10, %s7191_s21  ;;  %v2157_v10 = vpack.i.b16 %v1488_v55, %v1488_v55  ;;  %v1484_v14 = vrot.slane %v6287_v5, %v7387_v37 }
 0x214   :  { %v508_v25 = vrot.slane %v7755_v2, %v7387_v37 }
 0x215   :  { %2897 = vrot.lane.b32.xlu1 %v2099_v24, %s7191_s21  ;;  %v1492_v24 = vrot.slane %v6288_v11, %v7387_v37  ;;  %v2150_v62 = vpack.i.b16 %v1484_v14, %v1484_v14 }
 0x217   :  { %541 = vrot.lane.b32.xlu0 %v500_v31, %s7191_s21  ;;  %v2162_v31 = vrot.slane %v2157_v10, %v7387_v37  ;;  %v2164_v0 = vpack.i.b16 %v1492_v24, %v1492_v24  ;;  %v2155_v41 = vrot.slane %v2150_v62, %v7387_v37 }
 0x219   :  { %2901 = vrot.lane.b32.xlu1 %v2113_v39, %s7191_s21  ;;  %v2190_v39 = vrot.slane %v2185_v16, %v7387_v37  ;;  %v2169_v30 = vrot.slane %v2164_v0, %v7387_v37 }
 0x21b   :  { %2899 = vrot.lane.b32.xlu0 %v2106_v53, %s7191_s21 }
 0x21d   :  { %2905 = vrot.lane.b32.xlu1 %v2127_v57, %s7191_s21  ;;  %v2178_v57 = vpack.i.b16 %v1500_v63, %v1500_v63 }
 0x21f   :  { %2907 = vrot.lane.b32.xlu0 %v2134_v51, %s7191_s21  ;;  %v2211_v51 = vrot.slane %v2206_v44, %v7387_v37  ;;  %v2183_v7 = vrot.slane %v2178_v57, %v7387_v37 }
 0x221   :  { %2909 = vrot.lane.b32.xlu1 %v2141_v3, %s7191_s21 }
 0x223   :  { %2911 = vrot.lane.b32.xlu0 %v2148_v56, %s7191_s21  ;;  %v2192_v56 = vpack.i.b16 %v1508_v47, %v1508_v47 }
 0x225   :  { %543 = vrot.lane.b32.xlu1 %v504_v9, %s7191_s21  ;;  %v2176_v9 = vrot.slane %v2171_v59, %v7387_v37  ;;  %v2197_v13 = vrot.slane %v2192_v56, %v7387_v37 }
 0x227   :  { %2903 = vrot.lane.b32.xlu0 %v2120_v29, %s7191_s21 }
 0x229   :  { %2915 = vrot.lane.b32.xlu1 %v2162_v31, %s7191_s21 }
 0x22b   :  { %v2810_v34 = vpop.permute.xlu1 %2809  ;;  %2913 = vrot.lane.b32.xlu0 %v2155_v41, %s7191_s21  ;;  %v586_v41 = vpack.c.bf16 %v7377_v26, %v7377_v26 }
 0x22c   :  { %v3193_v50 = vadd.bf16 %v2810_v34, %v7721_v36 }
 0x22d   :  { %v2812_v52 = vpop.permute.xlu0 %2811  ;;  %2923 = vrot.lane.b32.xlu1 %v2190_v39, %s7191_s21 }
 0x22e   :  { %v3194_v53 = vadd.bf16 %v2812_v52, %v7721_v36  ;;  %v3321_v61 = vmax.bf16 %v7198_v60, %v3193_v50 }
 0x22f   :  { %v2814_v58 = vpop.permute.xlu1 %2813  ;;  %2917 = vrot.lane.b32.xlu0 %v2169_v30, %s7191_s21 }
 0x230   :  { %v3322_v3 = vmax.bf16 %v7198_v60, %v3194_v53  ;;  %v3195_v14 = vadd.bf16 %v2814_v58, %v7721_v36 }
 0x231   :  { %2929 = vrot.lane.b32.xlu1 %v2211_v51, %s7191_s21  ;;  %v2818_v55 = vpop.permute.xlu0 %2817 }
 0x232   :  { %v6326_v35 = vcombine.low %v3321_v61, %v3322_v3  ;;  %v3197_v15 = vadd.bf16 %v2818_v55, %v7721_v36  ;;  %v3323_v31 = vmax.bf16 %v7198_v60, %v3195_v14 }
 0x233   :  { %v7745_v5 = vpop.permute.xlu1 %2841  ;;  %2921 = vrot.lane.b32.xlu0 %v2183_v7, %s7191_s21 }
 0x234   :  { %6734 = vmatprep.mubr.msk.bf16.mxu1 %vm3808_vm2, %v6326_v35  ;;  %v3325_v32 = vmax.bf16 %v7198_v60, %v3197_v15 }
 0x235   :  { %2919 = vrot.lane.b32.xlu1 %v2176_v9, %s7191_s21  ;;  %v2826_v1 = vpop.permute.xlu0 %2825 }
 0x236   :  { %v3201_v52 = vadd.bf16 %v2826_v1, %v586_v41 }
 0x237   :  { %v2820_v11 = vpop.permute.xlu1 %2819  ;;  %2925 = vrot.lane.b32.xlu0 %v2197_v13, %s7191_s21 }
 0x238   :  { %v3198_v10 = vadd.bf16 %v2820_v11, %v7721_v36  ;;  %v3329_v26 = vmax.bf16 %v7198_v60, %v3201_v52 }
 0x239   :  { %v2816_v16 = vpop.permute.xlu0 %2815 }
 0x23a   :  { %v3196_v27 = vadd.bf16 %v2816_v16, %v7721_v36  ;;  %v3326_v29 = vmax.bf16 %v7198_v60, %v3198_v10 }
 0x23b   :  { %v2828_v24 = vpop.permute.xlu1 %2827  ;;  %545 = vrot.lane.b32.xlu0 %v508_v25, %s7191_s21  ;;  %v587_v25 = vpack.c.bf16 %v7365_v18, %v7365_v18 }
 0x23c   :  { %v3324_v62 = vmax.bf16 %v7198_v60, %v3196_v27  ;;  %v6328_v63 = vcombine.low %v3325_v32, %v3326_v29  ;;  %v3202_v48 = vadd.bf16 %v2828_v24, %v586_v41 }
 0x23d   :  { %v2822_v34 = vpop.permute.xlu0 %2821  ;;  %v3209_v32 = vadd.bf16 %v7745_v5, %v587_v25 }
 0x23e   :  { %v6327_v0 = vcombine.low %v3323_v31, %v3324_v62  ;;  %v3199_v50 = vadd.bf16 %v2822_v34, %v7721_v36  ;;  %v3330_v58 = vmax.bf16 %v7198_v60, %v3202_v48 }
 0x23f   :  { %v2834_v39 = vpop.permute.xlu1 %2833  ;;  %v3337_v18 = vmax.bf16 %v7198_v60, %v3209_v32 }
 0x240   :  { %6735 = vmatmul.mubr.msk.bf16.vlgmr.msra.gmra.mrb[8].mxu1 %vm3808_vm2, %v6327_v0  ;;  %v3327_v30 = vmax.bf16 %v7198_v60, %v3199_v50  ;;  %v6330_v35 = vcombine.low %v3329_v26, %v3330_v58  ;;  %v3205_v7 = vadd.bf16 %v2834_v39, %v586_v41 }
 0x241   :  { %6738 = vmatprep.mubr.msk.bf16.mxu1 %vm3808_vm2, %v6328_v63  ;;  %v2830_v44 = vpop.permute.xlu0 %2829 }
 0x242   :  { %v3203_v55 = vadd.bf16 %v2830_v44, %v586_v41  ;;  %v3333_v10 = vmax.bf16 %v7198_v60, %v3205_v7  ;;  %v1078_v7 = vunpack.i.h.s16 %v7695_v54 }
 0x243   :  { %v2846_v49 = vpop.permute.xlu1 %2845 }
 0x244   :  { %v3331_v11 = vmax.bf16 %v7198_v60, %v3203_v55  ;;  %v3211_v5 = vadd.bf16 %v2846_v49, %v587_v25  ;;  %v1076_v55 = vunpack.i.h.s16 %v7709_v12 }
 0x245   :  { %v2844_v20 = vpop.permute.xlu0 %2843 }
 0x246   :  { %v3210_v31 = vadd.bf16 %v2844_v20, %v587_v25 }
 0x247   :  { %v2824_v53 = vpop.permute.xlu1 %2823 }
 0x248   :  { %v3200_v57 = vadd.bf16 %v2824_v53, %v7721_v36  ;;  %v3338_v63 = vmax.bf16 %v7198_v60, %v3210_v31 }
 0x249   :  { %v2850_v59 = vpop.permute.xlu0 %2849 }
 0x24a   :  { %v3328_v51 = vmax.bf16 %v7198_v60, %v3200_v57  ;;  %v6334_v57 = vcombine.low %v3337_v18, %v3338_v63  ;;  %v424_v18 = vcombine.high %v7743_v4, %v7743_v4 }
 0x24b   :  { %v2832_v47 = vpop.permute.xlu1 %2831 }
 0x24c   :  { %v6329_v61 = vcombine.low %v3327_v30, %v3328_v51  ;;  %v3204_v3 = vadd.bf16 %v2832_v47, %v586_v41  ;;  %v3213_v30 = vadd.bf16 %v2850_v59, %v587_v25 }
 0x24d   :  { %v2836_v9 = vpop.permute.xlu0 %2835 }
 0x24e   :  { %6739 = vmatmul.mubr.msk.bf16.gmra.mrb[12].mxu1 %vm3808_vm2, %v6329_v61  ;;  %v3332_v56 = vmax.bf16 %v7198_v60, %v3204_v3  ;;  %v3206_v1 = vadd.bf16 %v2836_v9, %v586_v41  ;;  %v7808_v61 = vpack.c.bf16 %v7373_v22, %v7373_v22  ;;  %v3339_v3 = vmax.bf16 %v7198_v60, %v3211_v5 }
 0x24f   :  { %6742 = vmatprep.mubr.msk.bf16.mxu1 %vm3808_vm2, %v6330_v35  ;;  %v2838_v36 = vpop.permute.xlu1 %2837  ;;  %v3341_v49 = vmax.bf16 %v7198_v60, %v3213_v30  ;;  %v824_v9 = vcombine.high %v7709_v12, %v7709_v12  ;;  %v1206_v12 = vpack.i.b16 %v1078_v7, %v1078_v7 }
 0x250   :  { %v3334_v13 = vmax.bf16 %v7198_v60, %v3206_v1  ;;  %v6331_v16 = vcombine.low %v3331_v11, %v3332_v56  ;;  %v3207_v62 = vadd.bf16 %v2838_v36, %v586_v41 }
 0x251   :  { %v2848_v14 = vpop.permute.xlu0 %2847  ;;  %v1080_v32 = vunpack.i.h.s16 %v824_v9  ;;  %v6292_v4 = vpack.i.b16 %v824_v9, %v824_v9 }
 0x252   :  { %v6332_v24 = vcombine.low %v3333_v10, %v3334_v13  ;;  %v3335_v44 = vmax.bf16 %v7198_v60, %v3207_v62  ;;  %v3212_v53 = vadd.bf16 %v2848_v14, %v587_v25 }
 0x253   :  { %v2852_v15 = vpop.permute.xlu1 %2851 }
 0x254   :  { %v3214_v58 = vadd.bf16 %v2852_v15, %v587_v25  ;;  %v3340_v26 = vmax.bf16 %v7198_v60, %v3212_v53 }
 0x255   :  { %v2854_v27 = vpop.permute.xlu0 %2853 }
 0x256   :  { %6743 = vmatmul.mubr.msk.bf16.gmra.mrb[16].mxu1 %vm3808_vm2, %v6331_v16  ;;  %v3342_v47 = vmax.bf16 %v7198_v60, %v3214_v58  ;;  %v6335_v36 = vcombine.low %v3339_v3, %v3340_v26  ;;  %v3215_v13 = vadd.bf16 %v2854_v27, %v587_v25  ;;  %v1204_v16 = vpack.i.b16 %v1076_v55, %v1076_v55 }
 0x257   :  { %6746 = vmatprep.mubr.msk.bf16.mxu1 %vm3808_vm2, %v6332_v24  ;;  %v2860_v29 = vpop.permute.xlu1 %2859 }
 0x258   :  { %v6336_v11 = vcombine.low %v3341_v49, %v3342_v47  ;;  %v3218_v10 = vadd.bf16 %v2860_v29, %v7808_v61  ;;  %v7840_v47 = vpack.c.bf16 %v7391_v40, %v7391_v40 }
 0x259   :  { %v2840_v34 = vpop.permute.xlu0 %2839 }
 0x25a   :  { %v3208_v0 = vadd.bf16 %v2840_v34, %v586_v41  ;;  %v3346_v27 = vmax.bf16 %v7198_v60, %v3218_v10 }
 0x25b   :  { %v7790_v39 = vpop.permute.xlu1 %2865 }
 0x25c   :  { %v3336_v48 = vmax.bf16 %v7198_v60, %v3208_v0  ;;  %v3221_v10 = vadd.bf16 %v7790_v39, %v7808_v61 }
 0x25d   :  { %v2858_v50 = vpop.permute.xlu0 %2857 }
 0x25e   :  { %v6333_v20 = vcombine.low %v3335_v44, %v3336_v48  ;;  %v3217_v56 = vadd.bf16 %v2858_v50, %v7808_v61  ;;  %v1512_v44 = vrot.slane %v1204_v16, %v7387_v37  ;;  %v1520_v48 = vrot.slane %v1206_v12, %v7387_v37 }
 0x25f   :  { %v7796_v52 = vpop.permute.xlu1 %2873 }
 0x260   :  { %6747 = vmatmul.mubr.msk.bf16.gmra.mrb[20].mxu1 %vm3808_vm2, %v6333_v20  ;;  %v3345_v24 = vmax.bf16 %v7198_v60, %v3217_v56  ;;  %v2199_v7 = vpack.i.b16 %v1512_v44, %v1512_v44  ;;  %v2213_v56 = vpack.i.b16 %v1520_v48, %v1520_v48  ;;  %v3225_v44 = vadd.bf16 %v7796_v52, %v7840_v47 }
 0x261   :  { %6750 = vmatprep.mubr.msk.bf16.mxu1 %vm3808_vm2, %v6334_v57  ;;  %v7800_v41 = vpop.permute.xlu0 %2861  ;;  %v1208_v57 = vpack.i.b16 %v1080_v32, %v1080_v32 }
 0x262   :  { %v6338_v50 = vcombine.low %v3345_v24, %v3346_v27  ;;  %v3219_v3 = vadd.bf16 %v7800_v41, %v7808_v61  ;;  %v7854_v41 = vrot.slane %v424_v18, %v7382_v28  ;;  %v2204_v32 = vrot.slane %v2199_v7, %v7387_v37 }
 0x263   :  { %v7802_v51 = vpop.permute.xlu1 %2877 }
 0x265   :  { %v538_v35 = vpop.permute.xlu0 %537 }
 0x266   :  { %v577_v1 = vadd.f32 %v538_v35, %v7580_v42 }
 0x267   :  { %v2856_v59 = vpop.permute.xlu1 %2855 }
 0x268   :  { %v3216_v22 = vadd.bf16 %v2856_v59, %v587_v25  ;;  %v609_v14 = vpack.c.bf16 %v577_v1, %v577_v1  ;;  %6751 = vmatmul.mubr.msk.bf16.gmra.mrb[24].mxu1 %vm3808_vm2, %v6335_v36  ;;  %v3343_v25 = vmax.bf16 %v7198_v60, %v3215_v13  ;;  %v1528_v1 = vrot.slane %v1208_v57, %v7387_v37 }
 0x269   :  { %6754 = vmatprep.mubr.msk.bf16.mxu1 %vm3808_vm2, %v6336_v11  ;;  %v7821_v15 = vpop.permute.xlu0 %2875 }
 0x26a   :  { %v831_v31 = vrot.slane %v609_v14, %v7382_v28  ;;  %v3344_v62 = vmax.bf16 %v7198_v60, %v3216_v22  ;;  %v3347_v14 = vmax.bf16 %v7198_v60, %v3219_v3  ;;  %v3226_v27 = vadd.bf16 %v7821_v15, %v7840_v47 }
 0x26b   :  { %v540_v54 = vpop.permute.xlu1 %539 }
 0x26c   :  { %v832_v29 = vcombine.high %v831_v31, %v831_v31  ;;  %v839_v34 = vrot.slane %v831_v31, %v7382_v28  ;;  %v6337_v20 = vcombine.low %v3343_v25, %v3344_v62  ;;  %v578_v58 = vadd.f32 %v540_v54, %v7605_v8 }
 0x26d   :  { %v7829_v0 = vpop.permute.xlu0 %2879  ;;  %v1524_v54 = vrot.slane %v6292_v4, %v7387_v37  ;;  %v3354_v4 = vmax.bf16 %v7198_v60, %v3226_v27 }
 0x26e   :  { %v846_v53 = vrot.slane %v832_v29, %v7382_v28  ;;  %v6293_v30 = vpack.i.b16 %v839_v34, %v839_v34  ;;  %v1082_v26 = vunpack.i.h.s16 %v839_v34  ;;  %v610_v9 = vpack.c.bf16 %v578_v58, %v578_v58 }
 0x26f   :  { %v2864_v63 = vpop.permute.xlu1 %2863  ;;  %v847_v16 = vcombine.high %v839_v34, %v839_v34 }
 0x270   :  { %v3220_v5 = vadd.bf16 %v2864_v63, %v7808_v61  ;;  %6755 = vmatmul.mubr.msk.bf16.gmra.mrb[28].mxu1 %vm3808_vm2, %v6337_v20  ;;  %v1532_v59 = vrot.slane %v6293_v30, %v7387_v37  ;;  %v1210_v55 = vpack.i.b16 %v1082_v26, %v1082_v26  ;;  %v6294_v36 = vpack.i.b16 %v846_v53, %v846_v53 }
 0x271   :  { %6758 = vmatprep.mubr.msk.bf16.mxu1 %vm3808_vm2, %v6338_v50  ;;  %v7846_v49 = vpop.permute.xlu0 %2881  ;;  %v1084_v13 = vunpack.i.h.s16 %v846_v53  ;;  %v2227_v63 = vpack.i.b16 %v1528_v1, %v1528_v1  ;;  %v855_v34 = vrot.slane %v610_v9, %v7382_v28  ;;  %v3349_v50 = vmax.bf16 %v7198_v60, %v3221_v10 }
 0x272   :  { %v3348_v40 = vmax.bf16 %v7198_v60, %v3220_v5  ;;  %v2234_v22 = vpack.i.b16 %v1532_v59, %v1532_v59  ;;  %v1536_v11 = vrot.slane %v1210_v55, %v7387_v37  ;;  %v1540_v25 = vrot.slane %v6294_v36, %v7387_v37 }
 0x273   :  { %v7848_v35 = vpop.permute.xlu1 %2883  ;;  %v1212_v18 = vpack.i.b16 %v1084_v13, %v1084_v13  ;;  %v1086_v57 = vunpack.i.h.s16 %v847_v16  ;;  %v2218_v5 = vrot.slane %v2213_v56, %v7387_v37  ;;  %v2220_v26 = vpack.i.b16 %v1524_v54, %v1524_v54 }
 0x274   :  { %v2239_v24 = vrot.slane %v2234_v22, %v7387_v37  ;;  %v2241_v62 = vpack.i.b16 %v1536_v11, %v1536_v11  ;;  %v6339_v29 = vcombine.low %v3347_v14, %v3348_v40  ;;  %v2248_v30 = vpack.i.b16 %v1540_v25, %v1540_v25 }
 0x275   :  { %v2868_v12 = vpop.permute.xlu0 %2867  ;;  %v848_v3 = vcombine.high %v846_v53, %v846_v53  ;;  %v6295_v7 = vpack.i.b16 %v847_v16, %v847_v16  ;;  %v3353_v36 = vmax.bf16 %v7198_v60, %v3225_v44  ;;  %v7884_v40 = vrot.slane %v855_v34, %v7382_v28 }
 0x276   :  { %v3222_v39 = vadd.bf16 %v2868_v12, %v7808_v61  ;;  %2937 = vrot.lane.b32.xlu1 %v2239_v24, %s7191_s21  ;;  %v2246_v48 = vrot.slane %v2241_v62, %v7387_v37  ;;  %v2232_v1 = vrot.slane %v2227_v63, %v7387_v37  ;;  %v1544_v56 = vrot.slane %v1212_v18, %v7387_v37 }
 0x277   :  { %v2870_v31 = vpop.permute.xlu1 %2869  ;;  %v3228_v53 = vadd.bf16 %v7829_v0, %v7840_v47  ;;  %v856_v11 = vcombine.high %v855_v34, %v855_v34  ;;  %v3230_v13 = vadd.bf16 %v7848_v35, %v7840_v47  ;;  %v2253_v14 = vrot.slane %v2248_v30, %v7387_v37 }
 0x278   :  { %v3350_v20 = vmax.bf16 %v7198_v60, %v3222_v39  ;;  %v3223_v15 = vadd.bf16 %v2870_v31, %v7808_v61  ;;  %6759 = vmatmul.mubr.msk.bf16.gmra.mrb[32].mxu1 %vm3808_vm2, %v6339_v29  ;;  %2939 = vrot.lane.b32.xlu0 %v2246_v48, %s7191_s21  ;;  %v1088_v16 = vunpack.i.h.s16 %v848_v3  ;;  %v3227_v0 = vadd.bf16 %v7802_v51, %v7840_v47 }
 0x279   :  { %v2872_v58 = vpop.permute.xlu0 %2871  ;;  %v6342_v12 = vcombine.low %v3353_v36, %v3354_v4  ;;  %v1548_v31 = vrot.slane %v6295_v7, %v7387_v37  ;;  %v3229_v62 = vadd.bf16 %v7846_v49, %v7840_v47  ;;  %v2255_v35 = vpack.i.b16 %v1544_v56, %v1544_v56 }
 0x27a   :  { %v6340_v59 = vcombine.low %v3349_v50, %v3350_v20  ;;  %v3224_v55 = vadd.bf16 %v2872_v58, %v7808_v61  ;;  %2927 = vrot.lane.b32.xlu1 %v2204_v32, %s7191_s21  ;;  %v3351_v9 = vmax.bf16 %v7198_v60, %v3223_v15  ;;  %v1214_v61 = vpack.i.b16 %v1086_v57, %v1086_v57 }
 0x27b   :  { %v7877_v52 = vpop.permute.xlu1 %2887  ;;  %v6296_v32 = vpack.i.b16 %v848_v3, %v848_v3  ;;  %v1090_v25 = vunpack.i.h.s16 %v7884_v40  ;;  %v3356_v27 = vmax.bf16 %v7198_v60, %v3228_v53  ;;  %v2225_v29 = vrot.slane %v2220_v26, %v7387_v37 }
 0x27c   :  { %v3352_v22 = vmax.bf16 %v7198_v60, %v3224_v55  ;;  %6762 = vmatprep.mubr.msk.bf16.mxu1 %vm3808_vm2, %v6340_v59  ;;  %2931 = vrot.lane.b32.xlu0 %v2218_v5, %s7191_s21  ;;  %v1552_v51 = vrot.slane %v1214_v61, %v7387_v37  ;;  %v6297_v39 = vpack.i.b16 %v7884_v40, %v7884_v40 }
 0x27d   :  { %v2886_v10 = vpop.permute.xlu0 %2885  ;;  %v870_v63 = vrot.slane %v856_v11, %v7382_v28  ;;  %v3358_v49 = vmax.bf16 %v7198_v60, %v3230_v13  ;;  %v1216_v48 = vpack.i.b16 %v1088_v16, %v1088_v16  ;;  %v7921_v18 = vpack.c.bf16 %v7398_v45, %v7398_v45 }
 0x27e   :  { %v6341_v24 = vcombine.low %v3351_v9, %v3352_v22  ;;  %2941 = vrot.lane.b32.xlu1 %v2253_v14, %s7191_s21  ;;  %v3355_v50 = vmax.bf16 %v7198_v60, %v3227_v0  ;;  %v2262_v20 = vpack.i.b16 %v1548_v31, %v1548_v31  ;;  %v3357_v15 = vmax.bf16 %v7198_v60, %v3229_v62 }
 0x27f   :  { %v7898_v54 = vpop.permute.xlu1 %2891  ;;  %v2260_v57 = vrot.slane %v2255_v35, %v7387_v37  ;;  %v1556_v58 = vrot.slane %v6296_v32, %v7387_v37  ;;  %v1218_v5 = vpack.i.b16 %v1090_v25, %v1090_v25  ;;  %v3231_v30 = vadd.bf16 %v2886_v10, %v7840_v47 }
 0x280   :  { %6763 = vmatmul.mubr.msk.bf16.gmra.mrb[36].mxu1 %vm3808_vm2, %v6341_v24  ;;  %2935 = vrot.lane.b32.xlu0 %v2232_v1, %s7191_s21  ;;  %v512_v26 = vrot.slane %v7854_v41, %v7387_v37  ;;  %v2269_v3 = vpack.i.b16 %v1552_v51, %v1552_v51  ;;  %v1564_v45 = vrot.slane %v6297_v39, %v7387_v37  ;;  %v1092_v1 = vunpack.i.h.s16 %v870_v63 }
 0x281   :  { %6766 = vmatprep.mubr.msk.bf16.mxu1 %vm3808_vm2, %v6342_v12  ;;  %v2890_v44 = vpop.permute.xlu0 %2889  ;;  %v6343_v4 = vcombine.low %v3355_v50, %v3356_v27  ;;  %v6344_v59 = vcombine.low %v3357_v15, %v3358_v49  ;;  %v1560_v36 = vrot.slane %v1216_v48, %v7387_v37  ;;  %v3232_v56 = vadd.bf16 %v7877_v52, %v7840_v47 }
 0x282   :  { %2933 = vrot.lane.b32.xlu1 %v2225_v29, %s7191_s21  ;;  %v3234_v53 = vadd.bf16 %v7898_v54, %v7921_v18  ;;  %v2267_v9 = vrot.slane %v2262_v20, %v7387_v37  ;;  %v6298_v22 = vpack.i.b16 %v870_v63, %v870_v63  ;;  %v3233_v61 = vadd.bf16 %v2890_v44, %v7921_v18 }
 0x283   :  { %v7917_v34 = vpop.permute.xlu1 %2895  ;;  %v2276_v11 = vpack.i.b16 %v1556_v58, %v1556_v58  ;;  %v1568_v13 = vrot.slane %v1218_v5, %v7387_v37  ;;  %v871_v10 = vcombine.high %v7884_v40, %v7884_v40  ;;  %v3359_v14 = vmax.bf16 %v7198_v60, %v3231_v30 }
 0x284   :  { %2943 = vrot.lane.b32.xlu0 %v2260_v57, %s7191_s21  ;;  %v2274_v47 = vrot.slane %v2269_v3, %v7387_v37  ;;  %v2290_v52 = vpack.i.b16 %v1564_v45, %v1564_v45  ;;  %v454_v54 = vcombine.high %v7755_v2, %v7755_v2  ;;  %v2283_v12 = vpack.i.b16 %v1560_v36, %v1560_v36 }
 0x285   :  { %v2894_v55 = vpop.permute.xlu0 %2893  ;;  %v1220_v24 = vpack.i.b16 %v1092_v1, %v1092_v1  ;;  %v872_v40 = vcombine.high %v870_v63, %v870_v63  ;;  %v3360_v31 = vmax.bf16 %v7198_v60, %v3232_v56  ;;  %v3362_v62 = vmax.bf16 %v7198_v60, %v3234_v53 }
 0x286   :  { %547 = vrot.lane.b32.xlu1 %v512_v26, %s7191_s21  ;;  %v1572_v32 = vrot.slane %v6298_v22, %v7387_v37  ;;  %v3361_v2 = vmax.bf16 %v7198_v60, %v3233_v61  ;;  %v2281_v25 = vrot.slane %v2276_v11, %v7387_v37  ;;  %v2297_v27 = vpack.i.b16 %v1568_v13, %v1568_v13 }
 0x287   :  { %v7933_v7 = vpop.permute.xlu1 %2897  ;;  %v1094_v29 = vunpack.i.h.s16 %v871_v10  ;;  %v6345_v51 = vcombine.low %v3359_v14, %v3360_v31  ;;  %v2295_v63 = vrot.slane %v2290_v52, %v7387_v37  ;;  %v6299_v49 = vpack.i.b16 %v871_v10, %v871_v10  ;;  %v7056_v31 = vld [vmem:[%s9019_s5] sm:$0xff]  }
 0x288   :  { %6767 = vmatmul.mubr.msk.bf16.gmra.mrb[40].mxu1 %vm3808_vm2, %v6343_v4  ;;  %2945 = vrot.lane.b32.xlu0 %v2267_v9, %s7191_s21  ;;  %v3235_v44 = vadd.bf16 %v2894_v55, %v7921_v18  ;;  %v2288_v50 = vrot.slane %v2283_v12, %v7387_v37  ;;  %v1576_v15 = vrot.slane %v1220_v24, %v7387_v37  ;;  %v1096_v57 = vunpack.i.h.s16 %v872_v40 }
 0x289   :  { %6770 = vmatprep.mubr.msk.bf16.mxu1 %vm3808_vm2, %v6344_v59  ;;  %v542_v16 = vpop.permute.xlu0 %541  ;;  %v3236_v58 = vadd.bf16 %v7917_v34, %v7921_v18  ;;  %v2304_v30 = vpack.i.b16 %v1572_v32, %v1572_v32  ;;  %v6300_v26 = vpack.i.b16 %v872_v40, %v872_v40  ;;  %v6346_v3 = vcombine.low %v3361_v2, %v3362_v62 }
 0x28a   :  { %v579_v35 = vadd.f32 %v7575_v33, %v542_v16  ;;  %2947 = vrot.lane.b32.xlu1 %v2274_v47, %s7191_s21  ;;  %v2302_v4 = vrot.slane %v2297_v27, %v7387_v37  ;;  %v1222_v59 = vpack.i.b16 %v1094_v29, %v1094_v29  ;;  %v3237_v55 = vadd.bf16 %v7933_v7, %v7921_v18 }
 0x28b   :  { %v7953_v0 = vpop.permute.xlu1 %2901  ;;  %v1580_v34 = vrot.slane %v6299_v49, %v7387_v37  ;;  %v3363_v56 = vmax.bf16 %v7198_v60, %v3235_v44  ;;  %v2311_v22 = vpack.i.b16 %v1576_v15, %v1576_v15  ;;  %v1224_v61 = vpack.i.b16 %v1096_v57, %v1096_v57  ;;  %6862 = vmatprep.subr.bf16.mxu0 %v7056_v31  ;;  %v7057_v57 = vld [vmem:[%s9019_s5 + $0x8] sm:$0xff]  }
 0x28c   :  { %v611_v39 = vpack.c.bf16 %v579_v35, %v579_v35  ;;  %2949 = vrot.lane.b32.xlu0 %v2281_v25, %s7191_s21  ;;  %v3364_v7 = vmax.bf16 %v7198_v60, %v3236_v58  ;;  %v1588_v13 = vrot.slane %v6300_v26, %v7387_v37  ;;  %v2309_v14 = vrot.slane %v2304_v30, %v7387_v37 }
 0x28d   :  { %v2900_v48 = vpop.permute.xlu0 %2899  ;;  %v1584_v47 = vrot.slane %v1222_v59, %v7387_v37  ;;  %v7996_v16 = vpack.c.bf16 %v7389_v38, %v7389_v38  ;;  %v3365_v12 = vmax.bf16 %v7198_v60, %v3237_v55  ;;  %v516_v24 = vrot.slane %v454_v54, %v7387_v37  ;;  %6863 = vmatpush3.bf16.msra.mxu0 %v7056_v31 }
 0x28e   :  { %v879_v5 = vrot.slane %v611_v39, %v7382_v28  ;;  %v3238_v45 = vadd.bf16 %v2900_v48, %v7921_v18  ;;  %2951 = vrot.lane.b32.xlu1 %v2288_v50, %s7191_s21  ;;  %v2318_v40 = vpack.i.b16 %v1580_v34, %v1580_v34  ;;  %v6347_v62 = vcombine.low %v3363_v56, %v3364_v7  ;;  %v7058_v34 = vld [vmem:[%s9019_s5 + $0x10] sm:$0xff]  }
 0x28f   :  { %v7966_v20 = vpop.permute.xlu1 %2905  ;;  %v2316_v32 = vrot.slane %v2311_v22, %v7387_v37  ;;  %v1592_v38 = vrot.slane %v1224_v61, %v7387_v37  ;;  %v3239_v27 = vadd.bf16 %v7953_v0, %v7921_v18  ;;  %v2332_v29 = vpack.i.b16 %v1588_v13, %v1588_v13  ;;  %6864 = vmatprep.subr.bf16.mxu0 %v7057_v57 }
 0x290   :  { %v880_v36 = vcombine.high %v879_v5, %v879_v5  ;;  %v887_v1 = vrot.slane %v879_v5, %v7382_v28  ;;  %6771 = vmatmul.mubr.msk.bf16.gmra.mrb[44].mxu1 %vm3808_vm2, %v6345_v51  ;;  %2953 = vrot.lane.b32.xlu0 %v2295_v63, %s7191_s21  ;;  %v3366_v10 = vmax.bf16 %v7198_v60, %v3238_v45 }
 0x291   :  { %6774 = vmatprep.mubr.msk.bf16.mxu1 %vm3808_vm2, %v6346_v3  ;;  %v2908_v53 = vpop.permute.xlu0 %2907  ;;  %v2325_v49 = vpack.i.b16 %v1584_v47, %v1584_v47  ;;  %v3241_v50 = vadd.bf16 %v7966_v20, %v7996_v16  ;;  %v2323_v0 = vrot.slane %v2318_v40, %v7387_v37  ;;  %v2339_v26 = vpack.i.b16 %v1592_v38, %v1592_v38 }
 0x292   :  { %v7987_v11 = vrot.slane %v880_v36, %v7382_v28  ;;  %2955 = vrot.lane.b32.xlu1 %v2302_v4, %s7191_s21  ;;  %v1098_v52 = vunpack.i.h.s16 %v887_v1  ;;  %v6301_v25 = vpack.i.b16 %v887_v1, %v887_v1  ;;  %v6348_v39 = vcombine.low %v3365_v12, %v3366_v10  ;;  %6865 = vmatpush3.bf16.msra.mxu0 %v7057_v57 }
 0x293   :  { %v7983_v9 = vpop.permute.xlu1 %2909  ;;  %v3242_v63 = vadd.bf16 %v2908_v53, %v7996_v16  ;;  %v895_v48 = vcombine.high %v887_v1, %v887_v1  ;;  %v3367_v3 = vmax.bf16 %v7198_v60, %v3239_v27  ;;  %v2330_v55 = vrot.slane %v2325_v49, %v7387_v37  ;;  %6866 = vmatprep.subr.bf16.mxu0 %v7058_v34 }
 0x294   :  { %2957 = vrot.lane.b32.xlu0 %v2309_v14, %s7191_s21  ;;  %v1100_v51 = vunpack.i.h.s16 %v7987_v11  ;;  %v1226_v44 = vpack.i.b16 %v1098_v52, %v1098_v52  ;;  %v6302_v15 = vpack.i.b16 %v7987_v11, %v7987_v11  ;;  %v1596_v20 = vrot.slane %v6301_v25, %v7387_v37  ;;  %v7059_v25 = vld [vmem:[%s9019_s5 + $0x18] sm:$0xff]  }
 0x295   :  { %v8004_v35 = vpop.permute.xlu0 %2911  ;;  %v3370_v59 = vmax.bf16 %v7198_v60, %v3242_v63  ;;  %v2337_v36 = vrot.slane %v2332_v29, %v7387_v37  ;;  %v3369_v56 = vmax.bf16 %v7198_v60, %v3241_v50  ;;  %v1102_v22 = vunpack.i.h.s16 %v895_v48 }
 0x296   :  { %2959 = vrot.lane.b32.xlu1 %v2316_v32, %s7191_s21  ;;  %v1228_v4 = vpack.i.b16 %v1100_v51, %v1100_v51  ;;  %v1600_v1 = vrot.slane %v1226_v44, %v7387_v37  ;;  %v1604_v53 = vrot.slane %v6302_v15, %v7387_v37  ;;  %v2344_v10 = vrot.slane %v2339_v26, %v7387_v37 }
 0x297   :  { %v544_v2 = vpop.permute.xlu1 %543  ;;  %v2346_v14 = vpack.i.b16 %v1596_v20, %v1596_v20  ;;  %v896_v47 = vcombine.high %v7987_v11, %v7987_v11  ;;  %v3244_v52 = vadd.bf16 %v8004_v35, %v7996_v16  ;;  %v6303_v40 = vpack.i.b16 %v895_v48, %v895_v48  ;;  %6867 = vmatpush3.bf16.msra.mxu0 %v7058_v34 }
 0x298   :  { %v580_v54 = vadd.f32 %v7584_v46, %v544_v2  ;;  %6775 = vmatmul.mubr.msk.bf16.gmra.mrb[48].mxu1 %vm3808_vm2, %v6347_v62  ;;  %549 = vrot.lane.b32.xlu0 %v516_v24, %s7191_s21  ;;  %v1608_v24 = vrot.slane %v1228_v4, %v7387_v37  ;;  %v6350_v31 = vcombine.low %v3369_v56, %v3370_v59 }
 0x299   :  { %6778 = vmatprep.mubr.msk.bf16.mxu1 %vm3808_vm2, %v6348_v39  ;;  %v2904_v5 = vpop.permute.xlu0 %2903  ;;  %v2353_v32 = vpack.i.b16 %v1600_v1, %v1600_v1  ;;  %v3243_v2 = vadd.bf16 %v7983_v9, %v7996_v16  ;;  %v2360_v35 = vpack.i.b16 %v1604_v53, %v1604_v53  ;;  %v1230_v38 = vpack.i.b16 %v1102_v22, %v1102_v22 }
 0x29a   :  { %v612_v58 = vpack.c.bf16 %v580_v54, %v580_v54  ;;  %v3240_v45 = vadd.bf16 %v2904_v5, %v7921_v18  ;;  %2961 = vrot.lane.b32.xlu1 %v2323_v0, %s7191_s21  ;;  %v2351_v9 = vrot.slane %v2346_v14, %v7387_v37  ;;  %v1104_v39 = vunpack.i.h.s16 %v896_v47  ;;  %6868 = vmatprep.subr.bf16.mxu0 %v7059_v25 }
 0x29b   :  { %v2916_v30 = vpop.permute.xlu1 %2915  ;;  %v3372_v63 = vmax.bf16 %v7198_v60, %v3244_v52  ;;  %v2367_v49 = vpack.i.b16 %v1608_v24, %v1608_v24  ;;  %v1612_v44 = vrot.slane %v6303_v40, %v7387_v37  ;;  %v8068_v48 = vpack.c.bf16 %v7395_v43, %v7395_v43  ;;  %6869 = vmatpush3.bf16.msra.mxu0 %v7059_v25 }
 0x29c   :  { %v3368_v18 = vmax.bf16 %v7198_v60, %v3240_v45  ;;  %v903_v61 = vrot.slane %v612_v58, %v7382_v28  ;;  %2963 = vrot.lane.b32.xlu0 %v2330_v55, %s7191_s21  ;;  %v3246_v11 = vadd.bf16 %v2916_v30, %v7996_v16  ;;  %v2358_v0 = vrot.slane %v2353_v32, %v7387_v37 }
 0x29d   :  { %v2914_v7 = vpop.permute.xlu0 %2913  ;;  %v6304_v15 = vpack.i.b16 %v896_v47, %v896_v47  ;;  %v456_v57 = vcombine.high %v7854_v41, %v7854_v41  ;;  %v3371_v58 = vmax.bf16 %v7198_v60, %v3243_v2  ;;  %v2365_v30 = vrot.slane %v2360_v35, %v7387_v37  ;;  %7010 = vmatprep.subr.bf16.mxu0 %v7195_v6 }
 0x29e   :  { %v6349_v12 = vcombine.low %v3367_v3, %v3368_v18  ;;  %v3245_v62 = vadd.bf16 %v2914_v7, %v7996_v16  ;;  %2965 = vrot.lane.b32.xlu1 %v2337_v36, %s7191_s21  ;;  %v904_v27 = vcombine.high %v903_v61, %v903_v61  ;;  %v911_v54 = vrot.slane %v903_v61, %v7382_v28 }
 0x29f   :  { %v8041_v13 = vpop.permute.xlu1 %2923  ;;  %v3374_v5 = vmax.bf16 %v7198_v60, %v3246_v11  ;;  %v1616_v3 = vrot.slane %v1230_v38, %v7387_v37  ;;  %v1232_v45 = vpack.i.b16 %v1104_v39, %v1104_v39  ;;  %v6351_v59 = vcombine.low %v3371_v58, %v3372_v63 }
 0x2a0   :  { %6779 = vmatmul.mubr.msk.bf16.gmra.mrb[52].mxu1 %vm3808_vm2, %v6349_v12  ;;  %2967 = vrot.lane.b32.xlu0 %v2344_v10, %s7191_s21  ;;  %v3373_v50 = vmax.bf16 %v7198_v60, %v3245_v62  ;;  %v918_v43 = vrot.slane %v904_v27, %v7382_v28  ;;  %v1106_v4 = vunpack.i.h.s16 %v911_v54  ;;  %v2372_v55 = vrot.slane %v2367_v49, %v7387_v37 }
 0x2a1   :  { %6782 = vmatprep.mubr.msk.bf16.mxu1 %vm3808_vm2, %v6350_v31  ;;  %v2918_v29 = vpop.permute.xlu0 %2917  ;;  %v2374_v36 = vpack.i.b16 %v1612_v44, %v1612_v44  ;;  %v1620_v56 = vrot.slane %v6304_v15, %v7387_v37  ;;  %v6305_v18 = vpack.i.b16 %v911_v54, %v911_v54  ;;  %v919_v53 = vcombine.high %v911_v54, %v911_v54 }
 0x2a2   :  { %2969 = vrot.lane.b32.xlu1 %v2351_v9, %s7191_s21  ;;  %v6352_v1 = vcombine.low %v3373_v50, %v3374_v5  ;;  %v3250_v22 = vadd.bf16 %v8041_v13, %v8068_v48  ;;  %v3247_v61 = vadd.bf16 %v2918_v29, %v7996_v16  ;;  %v520_v7 = vrot.slane %v456_v57, %v7387_v37 }
 0x2a3   :  { %v8062_v51 = vpop.permute.xlu1 %2929  ;;  %v2381_v14 = vpack.i.b16 %v1616_v3, %v1616_v3  ;;  %v1624_v47 = vrot.slane %v1232_v45, %v7387_v37  ;;  %v1234_v52 = vpack.i.b16 %v1106_v4, %v1106_v4  ;;  %v1108_v12 = vunpack.i.h.s16 %v918_v43 }
 0x2a4   :  { %2971 = vrot.lane.b32.xlu0 %v2358_v0, %s7191_s21  ;;  %v6306_v13 = vpack.i.b16 %v918_v43, %v918_v43  ;;  %v2379_v40 = vrot.slane %v2374_v36, %v7387_v37  ;;  %v2388_v31 = vpack.i.b16 %v1620_v56, %v1620_v56  ;;  %v1628_v62 = vrot.slane %v6305_v18, %v7387_v37 }
 0x2a5   :  { %v2922_v26 = vpop.permute.xlu0 %2921  ;;  %v3378_v32 = vmax.bf16 %v7198_v60, %v3250_v22  ;;  %v3375_v2 = vmax.bf16 %v7198_v60, %v3247_v61  ;;  %v1110_v11 = vunpack.i.h.s16 %v919_v53  ;;  %v920_v35 = vcombine.high %v918_v43, %v918_v43 }
 0x2a6   :  { %v3249_v34 = vadd.bf16 %v2922_v26, %v8068_v48  ;;  %2973 = vrot.lane.b32.xlu1 %v2365_v30, %s7191_s21  ;;  %v2386_v25 = vrot.slane %v2381_v14, %v7387_v37  ;;  %v2395_v27 = vpack.i.b16 %v1624_v47, %v1624_v47  ;;  %v1632_v54 = vrot.slane %v1234_v52, %v7387_v37 }
 0x2a7   :  { %v2920_v20 = vpop.permute.xlu1 %2919  ;;  %v1236_v29 = vpack.i.b16 %v1108_v12, %v1108_v12  ;;  %v1636_v63 = vrot.slane %v6306_v13, %v7387_v37  ;;  %v2393_v44 = vrot.slane %v2388_v31, %v7387_v37  ;;  %v2402_v50 = vpack.i.b16 %v1628_v62, %v1628_v62 }
 0x2a8   :  { %v3248_v41 = vadd.bf16 %v2920_v20, %v7996_v16  ;;  %6783 = vmatmul.mubr.msk.bf16.gmra.mrb[56].mxu1 %vm3808_vm2, %v6351_v59  ;;  %2975 = vrot.lane.b32.xlu0 %v2372_v55, %s7191_s21  ;;  %v3377_v16 = vmax.bf16 %v7198_v60, %v3249_v34  ;;  %v6307_v0 = vpack.i.b16 %v919_v53, %v919_v53  ;;  %v1112_v58 = vunpack.i.h.s16 %v920_v35 }
 0x2a9   :  { %6786 = vmatprep.mubr.msk.bf16.mxu1 %vm3808_vm2, %v6352_v1  ;;  %v8093_v10 = vpop.permute.xlu0 %2925  ;;  %v1238_v57 = vpack.i.b16 %v1110_v11, %v1110_v11  ;;  %v2400_v5 = vrot.slane %v2395_v27, %v7387_v37  ;;  %v2409_v30 = vpack.i.b16 %v1632_v54, %v1632_v54  ;;  %v1640_v43 = vrot.slane %v1236_v29, %v7387_v37 }
 0x2aa   :  { %v3376_v24 = vmax.bf16 %v7198_v60, %v3248_v41  ;;  %551 = vrot.lane.b32.xlu1 %v520_v7, %s7191_s21  ;;  %v6354_v49 = vcombine.low %v3377_v16, %v3378_v32  ;;  %v2407_v20 = vrot.slane %v2402_v50, %v7387_v37  ;;  %v2416_v3 = vpack.i.b16 %v1636_v63, %v1636_v63 }
 0x2ab   :  { %v1644_v45 = vrot.slane %v6307_v0, %v7387_v37  ;;  %v6308_v4 = vpack.i.b16 %v920_v35, %v920_v35  ;;  %v1648_v55 = vrot.slane %v1238_v57, %v7387_v37  ;;  %v1240_v36 = vpack.i.b16 %v1112_v58, %v1112_v58 }
 0x2ac   :  { %2977 = vrot.lane.b32.xlu0 %v2379_v40, %s7191_s21  ;;  %v6353_v9 = vcombine.low %v3375_v2, %v3376_v24  ;;  %v2414_v1 = vrot.slane %v2409_v30, %v7387_v37  ;;  %v2423_v34 = vpack.i.b16 %v1640_v43, %v1640_v43  ;;  %v2421_v53 = vrot.slane %v2416_v3, %v7387_v37 }
 0x2ad   :  { %v546_v38 = vpop.permute.xlu0 %545  ;;  %v2430_v22 = vpack.i.b16 %v1644_v45, %v1644_v45  ;;  %v1652_v61 = vrot.slane %v6308_v4, %v7387_v37  ;;  %v2437_v14 = vpack.i.b16 %v1648_v55, %v1648_v55  ;;  %v1656_v47 = vrot.slane %v1240_v36, %v7387_v37 }
 0x2ae   :  { %v581_v39 = vadd.f32 %v546_v38, %v7367_v19  ;;  %2979 = vrot.lane.b32.xlu1 %v2386_v25, %s7191_s21  ;;  %v2428_v12 = vrot.slane %v2423_v34, %v7387_v37 }
 0x2af   :  { %v2435_v16 = vrot.slane %v2430_v22, %v7387_v37  ;;  %v2444_v40 = vpack.i.b16 %v1652_v61, %v1652_v61  ;;  %v2442_v32 = vrot.slane %v2437_v14, %v7387_v37  ;;  %v2451_v2 = vpack.i.b16 %v1656_v47, %v1656_v47 }
 0x2b0   :  { %v613_v15 = vpack.c.bf16 %v581_v39, %v581_v39  ;;  %6787 = vmatmul.mubr.msk.bf16.gmra.mrb[60].mxu1 %vm3808_vm2, %v6353_v9  ;;  %2981 = vrot.lane.b32.xlu0 %v2393_v44, %s7191_s21  ;;  %v3251_v61 = vadd.bf16 %v8093_v10, %v8068_v48  ;;  %v3253_v14 = vadd.bf16 %v8062_v51, %v8068_v48 }
 0x2b1   :  { %6790 = vmatprep.mubr.msk.bf16.mxu1 %vm3808_vm2, %v6354_v49  ;;  %v2449_v27 = vrot.slane %v2444_v40, %v7387_v37  ;;  %v2456_v39 = vrot.slane %v2451_v2, %v7387_v37 }
 0x2b2   :  { %v927_v26 = vrot.slane %v613_v15, %v7382_v28  ;;  %2983 = vrot.lane.b32.xlu1 %v2400_v5, %s7191_s21  ;;  %v3381_v10 = vmax.bf16 %v7198_v60, %v3253_v14 }
 0x2b4   :  { %v928_v59 = vcombine.high %v927_v26, %v927_v26  ;;  %v935_v41 = vrot.slane %v927_v26, %v7382_v28  ;;  %2985 = vrot.lane.b32.xlu0 %v2407_v20, %s7191_s21 }
 0x2b6   :  { %v942_v56 = vrot.slane %v928_v59, %v7382_v28  ;;  %v1114_v18 = vunpack.i.h.s16 %v935_v41  ;;  %2987 = vrot.lane.b32.xlu1 %v2414_v1, %s7191_s21  ;;  %v6309_v7 = vpack.i.b16 %v935_v41, %v935_v41  ;;  %v943_v52 = vcombine.high %v935_v41, %v935_v41 }
 0x2b8   :  { %2989 = vrot.lane.b32.xlu0 %v2421_v53, %s7191_s21  ;;  %v1242_v24 = vpack.i.b16 %v1114_v18, %v1114_v18  ;;  %v1116_v13 = vunpack.i.h.s16 %v942_v56  ;;  %v1660_v31 = vrot.slane %v6309_v7, %v7387_v37  ;;  %v6310_v62 = vpack.i.b16 %v942_v56, %v942_v56 }
 0x2b9   :  { %v1118_v38 = vunpack.i.h.s16 %v943_v52  ;;  %v944_v25 = vcombine.high %v942_v56, %v942_v56  ;;  %v6311_v9 = vpack.i.b16 %v943_v52, %v943_v52 }
 0x2ba   :  { %2991 = vrot.lane.b32.xlu1 %v2428_v12, %s7191_s21  ;;  %v1664_v11 = vrot.slane %v1242_v24, %v7387_v37  ;;  %v1244_v35 = vpack.i.b16 %v1116_v13, %v1116_v13  ;;  %v2458_v54 = vpack.i.b16 %v1660_v31, %v1660_v31  ;;  %v1668_v29 = vrot.slane %v6310_v62, %v7387_v37 }
 0x2bb   :  { %v1246_v44 = vpack.i.b16 %v1118_v38, %v1118_v38  ;;  %v1120_v50 = vunpack.i.h.s16 %v944_v25  ;;  %v1676_v57 = vrot.slane %v6311_v9, %v7387_v37  ;;  %v6312_v58 = vpack.i.b16 %v944_v25, %v944_v25 }
 0x2bc   :  { %2993 = vrot.lane.b32.xlu0 %v2435_v16, %s7191_s21  ;;  %v2465_v63 = vpack.i.b16 %v1664_v11, %v1664_v11  ;;  %v1672_v49 = vrot.slane %v1244_v35, %v7387_v37  ;;  %v2463_v0 = vrot.slane %v2458_v54, %v7387_v37  ;;  %v2472_v15 = vpack.i.b16 %v1668_v29, %v1668_v29 }
 0x2bd   :  { %v1680_v43 = vrot.slane %v1246_v44, %v7387_v37  ;;  %v1248_v26 = vpack.i.b16 %v1120_v50, %v1120_v50  ;;  %v2486_v3 = vpack.i.b16 %v1676_v57, %v1676_v57  ;;  %v1684_v45 = vrot.slane %v6312_v58, %v7387_v37 }
 0x2be   :  { %2995 = vrot.lane.b32.xlu1 %v2442_v32, %s7191_s21  ;;  %v2470_v5 = vrot.slane %v2465_v63, %v7387_v37  ;;  %v2479_v30 = vpack.i.b16 %v1672_v49, %v1672_v49  ;;  %v2477_v20 = vrot.slane %v2472_v15, %v7387_v37  ;;  %v3379_v12 = vmax.bf16 %v7198_v60, %v3251_v61 }
 0x2bf   :  { %v2493_v59 = vpack.i.b16 %v1680_v43, %v1680_v43  ;;  %v1688_v41 = vrot.slane %v1248_v26, %v7387_v37  ;;  %v2491_v55 = vrot.slane %v2486_v3, %v7387_v37  ;;  %v2500_v36 = vpack.i.b16 %v1684_v45, %v1684_v45 }
 0x2c0   :  { %2997 = vrot.lane.b32.xlu0 %v2449_v27, %s7191_s21  ;;  %v2484_v4 = vrot.slane %v2479_v30, %v7387_v37  ;;  %v8174_v16 = vpack.c.bf16 %v7580_v42, %v7580_v42 }
 0x2c1   :  { %v2498_v1 = vrot.slane %v2493_v59, %v7387_v37  ;;  %v2507_v34 = vpack.i.b16 %v1688_v41, %v1688_v41  ;;  %v2505_v56 = vrot.slane %v2500_v36, %v7387_v37  ;;  %v8203_v41 = vpack.c.bf16 %v7605_v8, %v7605_v8 }
 0x2c2   :  { %2999 = vrot.lane.b32.xlu1 %v2456_v39, %s7191_s21 }
 0x2c3   :  { %v2512_v18 = vrot.slane %v2507_v34, %v7387_v37 }
 0x2c4   :  { %3001 = vrot.lane.b32.xlu0 %v2463_v0, %s7191_s21 }
 0x2c6   :  { %3003 = vrot.lane.b32.xlu1 %v2470_v5, %s7191_s21 }
 0x2c8   :  { %3005 = vrot.lane.b32.xlu0 %v2477_v20, %s7191_s21 }
 0x2ca   :  { %3007 = vrot.lane.b32.xlu1 %v2484_v4, %s7191_s21 }
 0x2cc   :  { %3009 = vrot.lane.b32.xlu0 %v2491_v55, %s7191_s21 }
 0x2ce   :  { %3011 = vrot.lane.b32.xlu1 %v2498_v1, %s7191_s21 }
 0x2d0   :  { %3013 = vrot.lane.b32.xlu0 %v2505_v56, %s7191_s21 }
 0x2d2   :  { %3015 = vrot.lane.b32.xlu1 %v2512_v18, %s7191_s21 }
 0x2e8   :  { %v2938_v53 = vpop.permute.xlu1 %2937 }
 0x2e9   :  { %v3257_v35 = vadd.bf16 %v2938_v53, %v8174_v16 }
 0x2ea   :  { %v2940_v22 = vpop.permute.xlu0 %2939 }
 0x2eb   :  { %v3258_v51 = vadd.bf16 %v2940_v22, %v8174_v16  ;;  %v3385_v9 = vmax.bf16 %v7198_v60, %v3257_v35 }
 0x2ec   :  { %v2928_v7 = vpop.permute.xlu1 %2927 }
 0x2ed   :  { %v3252_v47 = vadd.bf16 %v2928_v7, %v8068_v48  ;;  %v3386_v25 = vmax.bf16 %v7198_v60, %v3258_v51 }
 0x2ee   :  { %v2932_v52 = vpop.permute.xlu0 %2931 }
 0x2ef   :  { %v3380_v24 = vmax.bf16 %v7198_v60, %v3252_v47  ;;  %v3254_v13 = vadd.bf16 %v2932_v52, %v8068_v48  ;;  %v6358_v50 = vcombine.low %v3385_v9, %v3386_v25 }
 0x2f0   :  { %v2942_v40 = vpop.permute.xlu1 %2941 }
 0x2f1   :  { %v6355_v31 = vcombine.low %v3379_v12, %v3380_v24  ;;  %v3382_v62 = vmax.bf16 %v7198_v60, %v3254_v13 }
 0x2f2   :  { %v2936_v32 = vpop.permute.xlu0 %2935 }
 0x2f3   :  { %v6356_v2 = vcombine.low %v3381_v10, %v3382_v62  ;;  %v3256_v11 = vadd.bf16 %v2936_v32, %v8068_v48  ;;  %6791 = vmatmul.mubr.msk.bf16.gmra.mrb[64].mxu1 %vm3808_vm2, %v6355_v31 }
 0x2f4   :  { %v2934_v38 = vpop.permute.xlu1 %2933 }
 0x2f5   :  { %v3255_v42 = vadd.bf16 %v2934_v38, %v8068_v48  ;;  %6794 = vmatprep.mubr.msk.bf16.mxu1 %vm3808_vm2, %v6356_v2  ;;  %v3384_v54 = vmax.bf16 %v7198_v60, %v3256_v11  ;;  %v3259_v48 = vadd.bf16 %v2942_v40, %v8174_v16 }
 0x2f6   :  { %v2944_v27 = vpop.permute.xlu0 %2943 }
 0x2f7   :  { %v3383_v29 = vmax.bf16 %v7198_v60, %v3255_v42  ;;  %v3260_v49 = vadd.bf16 %v2944_v27, %v8174_v16  ;;  %v3387_v26 = vmax.bf16 %v7198_v60, %v3259_v48 }
 0x2f8   :  { %v548_v39 = vpop.permute.xlu1 %547 }
 0x2f9   :  { %v6357_v63 = vcombine.low %v3383_v29, %v3384_v54  ;;  %v582_v44 = vadd.f32 %v548_v39, %v7375_v23  ;;  %v3388_v5 = vmax.bf16 %v7198_v60, %v3260_v49 }
 0x2fa   :  { %v2946_v0 = vpop.permute.xlu0 %2945 }
 0x2fb   :  { %v614_v15 = vpack.c.bf16 %v582_v44, %v582_v44  ;;  %v3261_v57 = vadd.bf16 %v2946_v0, %v8174_v16  ;;  %6795 = vmatmul.mubr.msk.bf16.gmra.mrb[68].mxu1 %vm3808_vm2, %v6357_v63  ;;  %v6359_v36 = vcombine.low %v3387_v26, %v3388_v5 }
 0x2fc   :  { %6798 = vmatprep.mubr.msk.bf16.mxu1 %vm3808_vm2, %v6358_v50  ;;  %v2948_v58 = vpop.permute.xlu1 %2947 }
 0x2fd   :  { %v951_v30 = vrot.slane %v614_v15, %v7382_v28  ;;  %v3262_v43 = vadd.bf16 %v2948_v58, %v8174_v16  ;;  %v3389_v4 = vmax.bf16 %v7198_v60, %v3261_v57 }
 0x2fe   :  { %v2950_v20 = vpop.permute.xlu0 %2949 }
 0x2ff   :  { %v952_v3 = vcombine.high %v951_v30, %v951_v30  ;;  %v959_v45 = vrot.slane %v951_v30, %v7382_v28  ;;  %v3390_v59 = vmax.bf16 %v7198_v60, %v3262_v43  ;;  %v3263_v18 = vadd.bf16 %v2950_v20, %v8174_v16 }
 0x300   :  { %v2952_v55 = vpop.permute.xlu1 %2951 }
 0x301   :  { %v966_v1 = vrot.slane %v952_v3, %v7382_v28  ;;  %v967_v34 = vcombine.high %v959_v45, %v959_v45  ;;  %v6360_v56 = vcombine.low %v3389_v4, %v3390_v59  ;;  %v3264_v53 = vadd.bf16 %v2952_v55, %v8174_v16 }
 0x302   :  { %v2954_v22 = vpop.permute.xlu0 %2953  ;;  %v6313_v61 = vpack.i.b16 %v959_v45, %v959_v45  ;;  %v1122_v7 = vunpack.i.h.s16 %v959_v45  ;;  %v3391_v51 = vmax.bf16 %v7198_v60, %v3263_v18  ;;  %v8235_v3 = vpack.c.bf16 %v7367_v19, %v7367_v19 }
 0x303   :  { %v3265_v14 = vadd.bf16 %v2954_v22, %v8203_v41  ;;  %6799 = vmatmul.mubr.msk.bf16.gmra.mrb[72].mxu1 %vm3808_vm2, %v6359_v36  ;;  %v6314_v47 = vpack.i.b16 %v966_v1, %v966_v1  ;;  %v1124_v8 = vunpack.i.h.s16 %v966_v1  ;;  %v6315_v52 = vpack.i.b16 %v967_v34, %v967_v34 }
 0x304   :  { %6802 = vmatprep.mubr.msk.bf16.mxu1 %vm3808_vm2, %v6360_v56  ;;  %v2956_v12 = vpop.permute.xlu1 %2955  ;;  %v1692_v24 = vrot.slane %v6313_v61, %v7387_v37  ;;  %v1250_v13 = vpack.i.b16 %v1122_v7, %v1122_v7  ;;  %v1126_v40 = vunpack.i.h.s16 %v967_v34  ;;  %v3392_v10 = vmax.bf16 %v7198_v60, %v3264_v53 }
 0x305   :  { %v3266_v16 = vadd.bf16 %v2956_v12, %v8203_v41  ;;  %v1700_v31 = vrot.slane %v6314_v47, %v7387_v37  ;;  %v1252_v62 = vpack.i.b16 %v1124_v8, %v1124_v8  ;;  %v3393_v35 = vmax.bf16 %v7198_v60, %v3265_v14 }
 0x306   :  { %v2958_v32 = vpop.permute.xlu0 %2957  ;;  %v2514_v2 = vpack.i.b16 %v1692_v24, %v1692_v24  ;;  %v1696_v11 = vrot.slane %v1250_v13, %v7387_v37  ;;  %v1708_v25 = vrot.slane %v6315_v52, %v7387_v37  ;;  %v1254_v39 = vpack.i.b16 %v1126_v40, %v1126_v40  ;;  %v8257_v13 = vld [vmem:[%s9022_s8 + $0x1] ss:$0 sm:$0xff] }
 0x307   :  { %v3394_v38 = vmax.bf16 %v7198_v60, %v3266_v16  ;;  %v1704_v42 = vrot.slane %v1252_v62, %v7387_v37  ;;  %v2528_v9 = vpack.i.b16 %v1700_v31, %v1700_v31  ;;  %v6361_v63 = vcombine.low %v3391_v51, %v3392_v10 }
 0x308   :  { %v2960_v27 = vpop.permute.xlu1 %2959  ;;  %v2519_v54 = vrot.slane %v2514_v2, %v7387_v37  ;;  %v2521_v29 = vpack.i.b16 %v1696_v11, %v1696_v11  ;;  %v3267_v50 = vadd.bf16 %v2958_v32, %v8203_v41  ;;  %v1712_v57 = vrot.slane %v1254_v39, %v7387_v37 }
 0x309   :  { %v6362_v49 = vcombine.low %v3393_v35, %v3394_v38  ;;  %v3268_v44 = vadd.bf16 %v2960_v27, %v8203_v41  ;;  %v2535_v15 = vpack.i.b16 %v1704_v42, %v1704_v42  ;;  %v968_v5 = vcombine.high %v966_v1, %v966_v1 }
 0x30a   :  { %3017 = vrot.lane.b32.xlu0 %v2519_v54, %s7191_s21  ;;  %v550_v48 = vpop.permute.xlu0 %549  ;;  %v2526_v0 = vrot.slane %v2521_v29, %v7387_v37  ;;  %v2533_v26 = vrot.slane %v2528_v9, %v7387_v37  ;;  %v2542_v20 = vpack.i.b16 %v1708_v25, %v1708_v25  ;;  %v3395_v55 = vmax.bf16 %v7198_v60, %v3267_v50 }
 0x30b   :  { %v583_v58 = vadd.f32 %v7363_v17, %v550_v48  ;;  %6803 = vmatmul.mubr.msk.bf16.gmra.mrb[76].mxu1 %vm3808_vm2, %v6361_v63  ;;  %v3396_v30 = vmax.bf16 %v7198_v60, %v3268_v44  ;;  %v6316_v59 = vpack.i.b16 %v968_v5, %v968_v5  ;;  %v2540_v1 = vrot.slane %v2535_v15, %v7387_v37 }
 0x30c   :  { %3019 = vrot.lane.b32.xlu1 %v2526_v0, %s7191_s21  ;;  %6806 = vmatprep.mubr.msk.bf16.mxu1 %vm3808_vm2, %v6362_v49  ;;  %v2962_v43 = vpop.permute.xlu1 %2961  ;;  %v2549_v34 = vpack.i.b16 %v1712_v57, %v1712_v57  ;;  %v1128_v56 = vunpack.i.h.s16 %v968_v5  ;;  %v8243_v18 = vpack.c.bf16 %v7575_v33, %v7575_v33  ;;  %v2547_v47 = vrot.slane %v2542_v20, %v7387_v37 }
 0x30d   :  { %v615_v45 = vpack.c.bf16 %v583_v58, %v583_v58  ;;  %v3269_v4 = vadd.bf16 %v2962_v43, %v8203_v41  ;;  %v1716_v22 = vrot.slane %v6316_v59, %v7387_v37  ;;  %v6363_v61 = vcombine.low %v3395_v55, %v3396_v30 }
 0x30e   :  { %3021 = vrot.lane.b32.xlu0 %v2533_v26, %s7191_s21  ;;  %v2964_v36 = vpop.permute.xlu0 %2963  ;;  %v1256_v8 = vpack.i.b16 %v1128_v56, %v1128_v56  ;;  %v8261_v40 = vpack.c.bf16 %v7584_v46, %v7584_v46  ;;  %v2554_v31 = vrot.slane %v2549_v34, %v7387_v37 }
 0x30f   :  { %v975_v19 = vrot.slane %v615_v45, %v7382_v28  ;;  %v3270_v53 = vadd.bf16 %v2964_v36, %v8203_v41  ;;  %v3397_v7 = vmax.bf16 %v7198_v60, %v3269_v4  ;;  %v2556_v62 = vpack.i.b16 %v1716_v22, %v1716_v22 }
 0x310   :  { %3023 = vrot.lane.b32.xlu1 %v2540_v1, %s7191_s21  ;;  %v2966_v14 = vpop.permute.xlu1 %2965  ;;  %v1720_v51 = vrot.slane %v1256_v8, %v7387_v37 }
 0x311   :  { %v976_v52 = vcombine.high %v975_v19, %v975_v19  ;;  %v983_v12 = vrot.slane %v975_v19, %v7382_v28  ;;  %v3398_v33 = vmax.bf16 %v7198_v60, %v3270_v53  ;;  %v3271_v24 = vadd.bf16 %v2966_v14, %v8203_v41 }
 0x312   :  { %3025 = vrot.lane.b32.xlu0 %v2547_v47, %s7191_s21  ;;  %v2968_v10 = vpop.permute.xlu0 %2967  ;;  %v2561_v29 = vrot.slane %v2556_v62, %v7387_v37  ;;  %v2563_v49 = vpack.i.b16 %v1720_v51, %v1720_v51 }
 0x313   :  { %v6736_v16 = vpop.f32.mrb[8].mxu1  ;;  %v8267_v32 = vrot.slane %v976_v52, %v7382_v28  ;;  %v8269_v2 = vcombine.high %v983_v12, %v983_v12  ;;  %v6364_v11 = vcombine.low %v3397_v7, %v3398_v33  ;;  %v3399_v35 = vmax.bf16 %v7198_v60, %v3271_v24  ;;  %6807 = vmatmul.mubr.msk.bf16.gmra.mrb[80].mxu1 %vm3808_vm2, %v6363_v61 }
 0x314   :  { %v4035_v46 = vpop.f32.mrb[9].mxu1  ;;  %v3272_v38 = vadd.bf16 %v2968_v10, %v8203_v41  ;;  %v4044_v42 = vadd.f32 %v6736_v16, %v8257_v13  ;;  %3027 = vrot.lane.b32.xlu1 %v2554_v31, %s7191_s21  ;;  %v2970_v27 = vpop.permute.xlu1 %2969  ;;  %v6317_v44 = vpack.i.b16 %v983_v12, %v983_v12  ;;  %v2568_v30 = vrot.slane %v2563_v49, %v7387_v37 }
 0x315   :  { %v4036_v25 = vadd.f32 %v8257_v13, %v4035_v46  ;;  %v6737_v54 = vpop.f32.mrb[10].mxu1  ;;  %v3273_v9 = vadd.bf16 %v2970_v27, %v8243_v18  ;;  %6810 = vmatprep.mubr.msk.bf16.mxu1 %vm3808_vm2, %v6364_v11  ;;  %v1130_v4 = vunpack.i.h.s16 %v983_v12  ;;  %v6318_v1 = vpack.i.b16 %v8267_v32, %v8267_v32 }
 0x316   :  { %v4047_v39 = vadd.f32 %v6737_v54, %v8257_v13  ;;  %v4038_v63 = vpop.f32.mrb[11].mxu1  ;;  %v3400_v41 = vmax.bf16 %v7198_v60, %v3272_v38  ;;  %v4548_v50 = vmax.f32 %v4044_v42, 0.0  ;;  %3029 = vrot.lane.b32.xlu0 %v2561_v29, %s7191_s21  ;;  %v2972_v15 = vpop.permute.xlu0 %2971  ;;  %v1724_v45 = vrot.slane %v6317_v44, %v7387_v37 }
 0x317   :  { %v4546_v48 = vmax.f32 %v4036_v25, 0.0  ;;  %v4039_v0 = vadd.f32 %v8257_v13, %v4038_v63  ;;  %v3401_v57 = vmax.bf16 %v7198_v60, %v3273_v9  ;;  %v3274_v5 = vadd.bf16 %v2972_v15, %v8243_v18 }
 0x318   :  { %v4549_v58 = vmax.f32 %v4047_v39, 0.0  ;;  %v6365_v43 = vcombine.low %v3399_v35, %v3400_v41  ;;  %v2974_v20 = vpop.permute.xlu1 %2973  ;;  %3031 = vrot.lane.b32.xlu1 %v2568_v30, %s7191_s21  ;;  %v2570_v19 = vpack.i.b16 %v1724_v45, %v1724_v45  ;;  %v1258_v53 = vpack.i.b16 %v1130_v4, %v1130_v4 }
 0x319   :  { %v4547_v26 = vmax.f32 %v4039_v0, 0.0  ;;  %v3402_v55 = vmax.bf16 %v7198_v60, %v3274_v5  ;;  %v3275_v36 = vadd.bf16 %v2974_v20, %v8243_v18  ;;  %v1132_v22 = vunpack.i.h.s16 %v8267_v32 }
 0x31a   :  { %v4675_v59 = vpack.c.bf16 %v4549_v58, %v4548_v50  ;;  %v2976_v56 = vpop.permute.xlu0 %2975  ;;  %v1732_v47 = vrot.slane %v6318_v1, %v7387_v37  ;;  %v2575_v8 = vrot.slane %v2570_v19, %v7387_v37  ;;  %v1728_v12 = vrot.slane %v1258_v53, %v7387_v37 }
 0x31b   :  { %v4674_v34 = vpack.c.bf16 %v4547_v26, %v4546_v48  ;;  %v6366_v61 = vcombine.low %v3401_v57, %v3402_v55  ;;  %v3403_v7 = vmax.bf16 %v7198_v60, %v3275_v36  ;;  %v3276_v14 = vadd.bf16 %v2976_v56, %v8243_v18  ;;  %6811 = vmatmul.mubr.msk.bf16.gmra.mrb[84].mxu1 %vm3808_vm2, %v6365_v43 }
 0x31c   :  { %v552_v52 = vpop.permute.xlu1 %551  ;;  %v1260_v33 = vpack.i.b16 %v1132_v22, %v1132_v22  ;;  %v6319_v24 = vpack.i.b16 %v8269_v2, %v8269_v2  ;;  %v2584_v31 = vpack.i.b16 %v1732_v47, %v1732_v47  ;;  %v1134_v62 = vunpack.i.h.s16 %v8269_v2  ;;  %3033 = vrot.lane.b32.xlu0 %v2575_v8, %s7191_s21 }
 0x31d   :  { %6870 = vmatprep.mubr.msk.bf16.mxu0 %vm3808_vm2, %v4674_v34  ;;  %v3404_v10 = vmax.bf16 %v7198_v60, %v3276_v14  ;;  %v584_v16 = vadd.f32 %v7371_v21, %v552_v52  ;;  %6814 = vmatprep.mubr.msk.bf16.mxu1 %vm3808_vm2, %v6366_v61  ;;  %v2577_v51 = vpack.i.b16 %v1728_v12, %v1728_v12 }
 0x31e   :  { %6871 = vmatmul.mubr.msk.bf16.vlgmr.msra.gmra.mrb[12].mxu0 %vm3808_vm2, %v4675_v59  ;;  %v2978_v11 = vpop.permute.xlu0 %2977  ;;  %v1736_v46 = vrot.slane %v1260_v33, %v7387_v37  ;;  %v1740_v38 = vrot.slane %v6319_v24, %v7387_v37  ;;  %v8313_v42 = vcombine.high %v8267_v32, %v8267_v32  ;;  %v2589_v29 = vrot.slane %v2584_v31, %v7387_v37 }
 0x31f   :  { %v6367_v25 = vcombine.low %v3403_v7, %v3404_v10  ;;  %v616_v27 = vpack.c.bf16 %v584_v16, %v584_v16  ;;  %v3277_v54 = vadd.bf16 %v2978_v11, %v8243_v18  ;;  %v2582_v9 = vrot.slane %v2577_v51, %v7387_v37 }
 0x320   :  { %v2980_v39 = vpop.permute.xlu1 %2979  ;;  %v2591_v49 = vpack.i.b16 %v1736_v46, %v1736_v46  ;;  %3037 = vrot.lane.b32.xlu0 %v2589_v29, %s7191_s21  ;;  %v2598_v43 = vpack.i.b16 %v1740_v38, %v1740_v38  ;;  %v1262_v34 = vpack.i.b16 %v1134_v62, %v1134_v62  ;;  %v6320_v12 = vpack.i.b16 %v8313_v42, %v8313_v42 }
 0x321   :  { %v6740_v35 = vpop.f32.mrb[12].mxu1  ;;  %v999_v50 = vrot.slane %v616_v27, %v7382_v28  ;;  %v3405_v32 = vmax.bf16 %v7198_v60, %v3277_v54  ;;  %v3278_v48 = vadd.bf16 %v2980_v39, %v8243_v18  ;;  %3035 = vrot.lane.b32.xlu1 %v2582_v9, %s7191_s21  ;;  %v1136_v24 = vunpack.i.h.s16 %v8313_v42 }
 0x322   :  { %v4051_v2 = vpop.f32.mrb[13].mxu1  ;;  %v4060_v63 = vadd.f32 %v6740_v35, %v8257_v13  ;;  %v2596_v58 = vrot.slane %v2591_v49, %v7387_v37  ;;  %v2982_v30 = vpop.permute.xlu0 %2981  ;;  %v2603_v55 = vrot.slane %v2598_v43, %v7387_v37  ;;  %v1744_v47 = vrot.slane %v1262_v34, %v7387_v37 }
 0x323   :  { %v4052_v44 = vadd.f32 %v8257_v13, %v4051_v2  ;;  %v6741_v41 = vpop.f32.mrb[14].mxu1  ;;  %v1000_v26 = vcombine.high %v999_v50, %v999_v50  ;;  %v8328_v20 = vrot.slane %v999_v50, %v7382_v28  ;;  %v3406_v45 = vmax.bf16 %v7198_v60, %v3278_v48  ;;  %6815 = vmatmul.mubr.msk.bf16.gmra.mrb[88].mxu1 %vm3808_vm2, %v6367_v25 }
 0x324   :  { %v4063_v0 = vadd.f32 %v6741_v41, %v8257_v13  ;;  %v4054_v15 = vpop.f32.mrb[15].mxu1  ;;  %v4552_v57 = vmax.f32 %v4060_v63, 0.0  ;;  %v3279_v4 = vadd.bf16 %v2982_v30, %v8243_v18  ;;  %v2984_v1 = vpop.permute.xlu1 %2983  ;;  %3041 = vrot.lane.b32.xlu0 %v2603_v55, %s7191_s21  ;;  %v1748_v46 = vrot.slane %v6320_v12, %v7387_v37 }
 0x325   :  { %v4550_v5 = vmax.f32 %v4052_v44, 0.0  ;;  %v4055_v36 = vadd.f32 %v8257_v13, %v4054_v15  ;;  %v8336_v56 = vrot.slane %v1000_v26, %v7382_v28  ;;  %v8340_v19 = vcombine.high %v8328_v20, %v8328_v20  ;;  %3039 = vrot.lane.b32.xlu1 %v2596_v58, %s7191_s21 }
 0x326   :  { %v4553_v59 = vmax.f32 %v4063_v0, 0.0  ;;  %v6368_v53 = vcombine.low %v3405_v32, %v3406_v45  ;;  %v3407_v22 = vmax.bf16 %v7198_v60, %v3279_v4  ;;  %v3280_v14 = vadd.bf16 %v2984_v1, %v8243_v18  ;;  %v2986_v8 = vpop.permute.xlu0 %2985 }
 0x327   :  { %v4551_v7 = vmax.f32 %v4055_v36, 0.0  ;;  %v3281_v52 = vadd.bf16 %v2986_v8, %v8261_v40  ;;  %v2605_v18 = vpack.i.b16 %v1744_v47, %v1744_v47  ;;  %v1264_v29 = vpack.i.b16 %v1136_v24, %v1136_v24 }
 0x328   :  { %v4677_v61 = vpack.c.bf16 %v4553_v59, %v4552_v57  ;;  %6818 = vmatprep.mubr.msk.bf16.mxu1 %vm3808_vm2, %v6368_v53  ;;  %v3408_v31 = vmax.bf16 %v7198_v60, %v3280_v14  ;;  %v2988_v62 = vpop.permute.xlu1 %2987  ;;  %v2612_v39 = vpack.i.b16 %v1748_v46, %v1748_v46  ;;  %v6321_v48 = vpack.i.b16 %v8328_v20, %v8328_v20 }
 0x329   :  { %v6744_v28 = vpop.f32.mrb[16].mxu1  ;;  %v4676_v16 = vpack.c.bf16 %v4551_v7, %v4550_v5  ;;  %v3409_v35 = vmax.bf16 %v7198_v60, %v3281_v52  ;;  %v3282_v38 = vadd.bf16 %v2988_v62, %v8261_v40  ;;  %v2610_v42 = vrot.slane %v2605_v18, %v7387_v37 }
 0x32a   :  { %v4076_v33 = vadd.f32 %v6744_v28, %v8257_v13  ;;  %v4067_v10 = vpop.f32.mrb[17].mxu1  ;;  %v6369_v54 = vcombine.low %v3407_v22, %v3408_v31  ;;  %v2990_v9 = vpop.permute.xlu0 %2989  ;;  %v1752_v41 = vrot.slane %v1264_v29, %v7387_v37  ;;  %v1138_v0 = vunpack.i.h.s16 %v8328_v20 }
 0x32b   :  { %v4068_v51 = vadd.f32 %v8257_v13, %v4067_v10  ;;  %v6745_v11 = vpop.f32.mrb[18].mxu1  ;;  %6874 = vmatprep.mubr.msk.bf16.mxu0 %vm3808_vm2, %v4676_v16  ;;  %v3410_v63 = vmax.bf16 %v7198_v60, %v3282_v38  ;;  %v3283_v49 = vadd.bf16 %v2990_v9, %v8261_v40  ;;  %3043 = vrot.lane.b32.xlu1 %v2610_v42, %s7191_s21  ;;  %v1140_v20 = vunpack.i.h.s16 %v8336_v56 }
 0x32c   :  { %v4556_v25 = vmax.f32 %v4076_v33, 0.0  ;;  %v4070_v27 = vpop.f32.mrb[19].mxu1  ;;  %v4079_v44 = vadd.f32 %v6745_v11, %v8257_v13  ;;  %6875 = vmatmul.mubr.msk.bf16.gmra.mrb[16].mxu0 %vm3808_vm2, %v4677_v61  ;;  %6819 = vmatmul.mubr.msk.bf16.gmra.mrb[92].mxu1 %vm3808_vm2, %v6369_v54  ;;  %v2992_v32 = vpop.permute.xlu1 %2991  ;;  %v2617_v15 = vrot.slane %v2612_v39, %v7387_v37  ;;  %v2619_v30 = vpack.i.b16 %v1752_v41, %v1752_v41 }
 0x32d   :  { %v4554_v2 = vmax.f32 %v4068_v51, 0.0  ;;  %v4071_v50 = vadd.f32 %v8257_v13, %v4070_v27  ;;  %v6370_v57 = vcombine.low %v3409_v35, %v3410_v63  ;;  %v3411_v58 = vmax.bf16 %v7198_v60, %v3283_v49 }
 0x32e   :  { %v4557_v5 = vmax.f32 %v4079_v44, 0.0  ;;  %v3284_v26 = vadd.bf16 %v2992_v32, %v8261_v40  ;;  %v1756_v45 = vrot.slane %v6321_v48, %v7387_v37  ;;  %v2994_v4 = vpop.permute.xlu0 %2993  ;;  %3045 = vrot.lane.b32.xlu0 %v2617_v15, %s7191_s21  ;;  %v1266_v36 = vpack.i.b16 %v1138_v0, %v1138_v0 }
 0x32f   :  { %v4555_v43 = vmax.f32 %v4071_v50, 0.0  ;;  %v3285_v55 = vadd.bf16 %v2994_v4, %v8261_v40  ;;  %6822 = vmatprep.mubr.msk.bf16.mxu1 %vm3808_vm2, %v6370_v57  ;;  %v2624_v1 = vrot.slane %v2619_v30, %v7387_v37  ;;  %v6322_v8 = vpack.i.b16 %v8336_v56, %v8336_v56 }
 0x330   :  { %v4679_v59 = vpack.c.bf16 %v4557_v5, %v4556_v25  ;;  %v3412_v53 = vmax.bf16 %v7198_v60, %v3284_v26  ;;  %v2626_v22 = vpack.i.b16 %v1756_v45, %v1756_v45  ;;  %v2996_v61 = vpop.permute.xlu1 %2995  ;;  %v1760_v14 = vrot.slane %v1266_v36, %v7387_v37 }
 0x331   :  { %v4678_v34 = vpack.c.bf16 %v4555_v43, %v4554_v2  ;;  %v3413_v7 = vmax.bf16 %v7198_v60, %v3285_v55  ;;  %v3286_v47 = vadd.bf16 %v2996_v61, %v8261_v40  ;;  %3047 = vrot.lane.b32.xlu1 %v2624_v1, %s7191_s21  ;;  %v1268_v24 = vpack.i.b16 %v1140_v20, %v1140_v20 }
 0x332   :  { %v6371_v28 = vcombine.low %v3411_v58, %v3412_v53  ;;  %v2631_v52 = vrot.slane %v2626_v22, %v7387_v37  ;;  %v2998_v12 = vpop.permute.xlu0 %2997  ;;  %v2633_v10 = vpack.i.b16 %v1760_v14, %v1760_v14  ;;  %v1764_v31 = vrot.slane %v6322_v8, %v7387_v37 }
 0x333   :  { %v6748_v33 = vpop.f32.mrb[20].mxu1  ;;  %6878 = vmatprep.mubr.msk.bf16.mxu0 %vm3808_vm2, %v4678_v34  ;;  %v3414_v16 = vmax.bf16 %v7198_v60, %v3286_v47  ;;  %v3287_v18 = vadd.bf16 %v2998_v12, %v8261_v40  ;;  %v1768_v11 = vrot.slane %v1268_v24, %v7387_v37  ;;  %v1142_v25 = vunpack.i.h.s16 %v8340_v19 }
 0x334   :  { %v4083_v62 = vpop.f32.mrb[21].mxu1  ;;  %6879 = vmatmul.mubr.msk.bf16.gmra.mrb[20].mxu0 %vm3808_vm2, %v4679_v59  ;;  %3049 = vrot.lane.b32.xlu0 %v2631_v52, %s7191_s21  ;;  %v4092_v51 = vadd.f32 %v6748_v33, %v8257_v13  ;;  %v3000_v46 = vpop.permute.xlu1 %2999  ;;  %v2638_v27 = vrot.slane %v2633_v10, %v7387_v37  ;;  %v2640_v42 = vpack.i.b16 %v1764_v31, %v1764_v31 }
 0x335   :  { %6823 = vmatmul.mubr.msk.bf16.gmra.mrb[96].mxu1 %vm3808_vm2, %v6371_v28  ;;  %v4084_v35 = vadd.f32 %v8257_v13, %v4083_v62  ;;  %v6749_v38 = vpop.f32.mrb[22].mxu1  ;;  %v6372_v54 = vcombine.low %v3413_v7, %v3414_v16  ;;  %v3415_v29 = vmax.bf16 %v7198_v60, %v3287_v18  ;;  %v2647_v39 = vpack.i.b16 %v1768_v11, %v1768_v11 }
 0x336   :  { %v4086_v2 = vpop.f32.mrb[23].mxu1  ;;  %v4560_v9 = vmax.f32 %v4092_v51, 0.0  ;;  %v3288_v49 = vadd.bf16 %v3000_v46, %v8261_v40  ;;  %v3002_v44 = vpop.permute.xlu0 %3001  ;;  %3051 = vrot.lane.b32.xlu1 %v2638_v27, %s7191_s21  ;;  %v2645_v41 = vrot.slane %v2640_v42, %v7387_v37  ;;  %v4095_v50 = vadd.f32 %v6749_v38, %v8257_v13 }
 0x337   :  { %v4558_v63 = vmax.f32 %v4084_v35, 0.0  ;;  %v6323_v32 = vpack.i.b16 %v8340_v19, %v8340_v19  ;;  %v4087_v48 = vadd.f32 %v8257_v13, %v4086_v2  ;;  %v2652_v0 = vrot.slane %v2647_v39, %v7387_v37  ;;  %6826 = vmatprep.mubr.msk.bf16.mxu1 %vm3808_vm2, %v6372_v54 }
 0x338   :  { %v3416_v15 = vmax.bf16 %v7198_v60, %v3288_v49  ;;  %v3289_v57 = vadd.bf16 %v3002_v44, %v8235_v3  ;;  %v1270_v58 = vpack.i.b16 %v1142_v25, %v1142_v25  ;;  %v3004_v40 = vpop.permute.xlu1 %3003  ;;  %3053 = vrot.lane.b32.xlu0 %v2645_v41, %s7191_s21  ;;  %v4561_v5 = vmax.f32 %v4095_v50, 0.0 }
 0x339   :  { %v1772_v30 = vrot.slane %v6323_v32, %v7387_v37  ;;  %v4559_v43 = vmax.f32 %v4087_v48, 0.0  ;;  %v3290_v19 = vadd.bf16 %v3004_v40, %v8235_v3  ;;  %v1016_v59 = vcombine.high %v8336_v56, %v8336_v56 }
 0x33a   :  { %v6373_v26 = vcombine.low %v3415_v29, %v3416_v15  ;;  %v3417_v45 = vmax.bf16 %v7198_v60, %v3289_v57  ;;  %v1776_v4 = vrot.slane %v1270_v58, %v7387_v37  ;;  %v3006_v55 = vpop.permute.xlu0 %3005  ;;  %3055 = vrot.lane.b32.xlu1 %v2652_v0, %s7191_s21  ;;  %v4681_v20 = vpack.c.bf16 %v4561_v5, %v4560_v9 }
 0x33b   :  { %v6752_v36 = vpop.f32.mrb[24].mxu1  ;;  %v2654_v1 = vpack.i.b16 %v1772_v30, %v1772_v30  ;;  %v4680_v34 = vpack.c.bf16 %v4559_v43, %v4558_v63  ;;  %v3418_v53 = vmax.bf16 %v7198_v60, %v3290_v19  ;;  %v6324_v7 = vpack.i.b16 %v1016_v59, %v1016_v59 }
 0x33c   :  { %v4099_v22 = vpop.f32.mrb[25].mxu1  ;;  %v2661_v61 = vpack.i.b16 %v1776_v4, %v1776_v4  ;;  %v3291_v14 = vadd.bf16 %v3006_v55, %v8235_v3  ;;  %v4108_v47 = vadd.f32 %v6752_v36, %v8257_v13  ;;  %v3008_v8 = vpop.permute.xlu1 %3007  ;;  %v1144_v12 = vunpack.i.h.s16 %v1016_v59 }
 0x33d   :  { %6827 = vmatmul.mubr.msk.bf16.gmra.mrb[100].mxu1 %vm3808_vm2, %v6373_v26  ;;  %v6753_v56 = vpop.f32.mrb[26].mxu1  ;;  %v2659_v28 = vrot.slane %v2654_v1, %v7387_v37  ;;  %v6374_v52 = vcombine.low %v3417_v45, %v3418_v53  ;;  %6882 = vmatprep.mubr.msk.bf16.mxu0 %vm3808_vm2, %v4680_v34  ;;  %v1780_v10 = vrot.slane %v6324_v7, %v7387_v37 }
 0x33e   :  { %v4102_v33 = vpop.f32.mrb[27].mxu1  ;;  %v2666_v24 = vrot.slane %v2661_v61, %v7387_v37  ;;  %v3419_v16 = vmax.bf16 %v7198_v60, %v3291_v14  ;;  %v4100_v31 = vadd.f32 %v8257_v13, %v4099_v22  ;;  %6883 = vmatmul.mubr.msk.bf16.gmra.mrb[24].mxu0 %vm3808_vm2, %v4681_v20  ;;  %v3010_v18 = vpop.permute.xlu0 %3009  ;;  %v1272_v62 = vpack.i.b16 %v1144_v12, %v1144_v12 }
 0x33f   :  { %3057 = vrot.lane.b32.xlu0 %v2659_v28, %s7191_s21  ;;  %v3292_v51 = vadd.bf16 %v3008_v8, %v8235_v3  ;;  %v4111_v11 = vadd.f32 %v6753_v56, %v8257_v13  ;;  %6830 = vmatprep.mubr.msk.bf16.mxu1 %vm3808_vm2, %v6374_v52  ;;  %v2668_v35 = vpack.i.b16 %v1780_v10, %v1780_v10  ;;  %v4564_v46 = vmax.f32 %v4108_v47, 0.0 }
 0x340   :  { %3059 = vrot.lane.b32.xlu1 %v2666_v24, %s7191_s21  ;;  %v4103_v38 = vadd.f32 %v8257_v13, %v4102_v33  ;;  %v3293_v25 = vadd.bf16 %v3010_v18, %v8235_v3  ;;  %v3012_v27 = vpop.permute.xlu1 %3011  ;;  %v1784_v54 = vrot.slane %v1272_v62, %v7387_v37  ;;  %v4562_v39 = vmax.f32 %v4100_v31, 0.0 }
 0x341   :  { %v3420_v42 = vmax.bf16 %v7198_v60, %v3292_v51  ;;  %v4565_v29 = vmax.f32 %v4111_v11, 0.0  ;;  %v3294_v2 = vadd.bf16 %v3012_v27, %v8235_v3  ;;  %v2673_v9 = vrot.slane %v2668_v35, %v7387_v37 }
 0x342   :  { %v4563_v63 = vmax.f32 %v4103_v38, 0.0  ;;  %v3421_v49 = vmax.bf16 %v7198_v60, %v3293_v25  ;;  %v3014_v44 = vpop.permute.xlu0 %3013  ;;  %v2675_v50 = vpack.i.b16 %v1784_v54, %v1784_v54 }
 0x343   :  { %v6756_v41 = vpop.f32.mrb[28].mxu1  ;;  %v6375_v32 = vcombine.low %v3419_v16, %v3420_v42  ;;  %v4683_v48 = vpack.c.bf16 %v4565_v29, %v4564_v46  ;;  %v3422_v0 = vmax.bf16 %v7198_v60, %v3294_v2  ;;  %3061 = vrot.lane.b32.xlu0 %v2673_v9, %s7191_s21  ;;  %v3295_v58 = vadd.bf16 %v3014_v44, %v8235_v3 }
 0x344   :  { %v4115_v15 = vpop.f32.mrb[29].mxu1  ;;  %v4682_v57 = vpack.c.bf16 %v4563_v63, %v4562_v39  ;;  %v4124_v40 = vadd.f32 %v6756_v41, %v8257_v13  ;;  %v3016_v30 = vpop.permute.xlu1 %3015  ;;  %v2680_v19 = vrot.slane %v2675_v50, %v7387_v37 }
 0x345   :  { %v4116_v5 = vadd.f32 %v8257_v13, %v4115_v15  ;;  %v6757_v43 = vpop.f32.mrb[30].mxu1  ;;  %v6376_v26 = vcombine.low %v3421_v49, %v3422_v0  ;;  %6831 = vmatmul.mubr.msk.bf16.gmra.mrb[104].mxu1 %vm3808_vm2, %v6375_v32  ;;  %v3296_v45 = vadd.bf16 %v3016_v30, %v8235_v3  ;;  %v3423_v36 = vmax.bf16 %v7198_v60, %v3295_v58 }
 0x346   :  { %v4127_v4 = vadd.f32 %v6757_v43, %v8257_v13  ;;  %v4118_v59 = vpop.f32.mrb[31].mxu1  ;;  %6886 = vmatprep.mubr.msk.bf16.mxu0 %vm3808_vm2, %v4682_v57  ;;  %3063 = vrot.lane.b32.xlu1 %v2680_v19, %s7191_s21  ;;  %v4568_v20 = vmax.f32 %v4124_v40, 0.0 }
 0x347   :  { %v4119_v55 = vadd.f32 %v8257_v13, %v4118_v59  ;;  %v3424_v1 = vmax.bf16 %v7198_v60, %v3296_v45  ;;  %6887 = vmatmul.mubr.msk.bf16.gmra.mrb[28].mxu0 %vm3808_vm2, %v4683_v48  ;;  %v4566_v34 = vmax.f32 %v4116_v5, 0.0  ;;  %6834 = vmatprep.mubr.msk.bf16.mxu1 %vm3808_vm2, %v6376_v26 }
 0x348   :  { %v4569_v37 = vmax.f32 %v4127_v4, 0.0 }
 0x349   :  { %v4567_v53 = vmax.f32 %v4119_v55, 0.0  ;;  %v6377_v3 = vcombine.low %v3423_v36, %v3424_v1 }
 0x34a   :  { %v4685_v22 = vpack.c.bf16 %v4569_v37, %v4568_v20 }
 0x34b   :  { %v4684_v61 = vpack.c.bf16 %v4567_v53, %v4566_v34  ;;  %v6760_v7 = vpop.f32.mrb[32].mxu1 }
 0x34c   :  { %v4140_v14 = vadd.f32 %v6760_v7, %v8257_v13  ;;  %v4131_v47 = vpop.f32.mrb[33].mxu1 }
 0x34d   :  { %v4132_v8 = vadd.f32 %v8257_v13, %v4131_v47  ;;  %v6761_v56 = vpop.f32.mrb[34].mxu1  ;;  %6890 = vmatprep.mubr.msk.bf16.mxu0 %vm3808_vm2, %v4684_v61  ;;  %6835 = vmatmul.mubr.msk.bf16.gmra.mrb[108].mxu1 %vm3808_vm2, %v6377_v3 }
 0x34e   :  { %v4143_v28 = vadd.f32 %v6761_v56, %v8257_v13  ;;  %v4134_v52 = vpop.f32.mrb[35].mxu1  ;;  %v4572_v33 = vmax.f32 %v4140_v14, 0.0 }
 0x34f   :  { %v4135_v12 = vadd.f32 %v8257_v13, %v4134_v52  ;;  %6891 = vmatmul.mubr.msk.bf16.gmra.mrb[32].mxu0 %vm3808_vm2, %v4685_v22  ;;  %v4570_v10 = vmax.f32 %v4132_v8, 0.0 }
 0x350   :  { %v4573_v24 = vmax.f32 %v4143_v28, 0.0 }
 0x351   :  { %v4571_v16 = vmax.f32 %v4135_v12, 0.0 }
 0x352   :  { %v4687_v31 = vpack.c.bf16 %v4573_v24, %v4572_v33 }
 0x353   :  { %v4686_v18 = vpack.c.bf16 %v4571_v16, %v4570_v10  ;;  %v6764_v62 = vpop.f32.mrb[36].mxu1 }
 0x354   :  { %v4156_v51 = vadd.f32 %v6764_v62, %v8257_v13  ;;  %v4147_v11 = vpop.f32.mrb[37].mxu1 }
 0x355   :  { %v4148_v35 = vadd.f32 %v8257_v13, %v4147_v11  ;;  %v6765_v46 = vpop.f32.mrb[38].mxu1  ;;  %6894 = vmatprep.mubr.msk.bf16.mxu0 %vm3808_vm2, %v4686_v18 }
 0x356   :  { %v4159_v38 = vadd.f32 %v6765_v46, %v8257_v13  ;;  %v4150_v25 = vpop.f32.mrb[39].mxu1  ;;  %v4576_v54 = vmax.f32 %v4156_v51, 0.0 }
 0x357   :  { %v4151_v27 = vadd.f32 %v8257_v13, %v4150_v25  ;;  %6895 = vmatmul.mubr.msk.bf16.gmra.mrb[36].mxu0 %vm3808_vm2, %v4687_v31  ;;  %v4574_v29 = vmax.f32 %v4148_v35, 0.0 }
 0x358   :  { %v4577_v42 = vmax.f32 %v4159_v38, 0.0 }
 0x359   :  { %v4575_v2 = vmax.f32 %v4151_v27, 0.0 }
 0x35a   :  { %v4689_v9 = vpack.c.bf16 %v4577_v42, %v4576_v54 }
 0x35b   :  { %v4688_v39 = vpack.c.bf16 %v4575_v2, %v4574_v29  ;;  %v6768_v63 = vpop.f32.mrb[40].mxu1 }
 0x35c   :  { %v4172_v49 = vadd.f32 %v6768_v63, %v8257_v13  ;;  %v4163_v44 = vpop.f32.mrb[41].mxu1 }
 0x35d   :  { %v4164_v41 = vadd.f32 %v8257_v13, %v4163_v44  ;;  %v6769_v50 = vpop.f32.mrb[42].mxu1  ;;  %6898 = vmatprep.mubr.msk.bf16.mxu0 %vm3808_vm2, %v4688_v39  ;;  %v8498_v39 = vpack.c.bf16 %v7375_v23, %v7375_v23 }
 0x35e   :  { %v4175_v32 = vadd.f32 %v6769_v50, %v8257_v13  ;;  %v4166_v48 = vpop.f32.mrb[43].mxu1  ;;  %v4580_v15 = vmax.f32 %v4172_v49, 0.0 }
 0x35f   :  { %v4167_v0 = vadd.f32 %v8257_v13, %v4166_v48  ;;  %6899 = vmatmul.mubr.msk.bf16.gmra.mrb[40].mxu0 %vm3808_vm2, %v4689_v9  ;;  %v4578_v58 = vmax.f32 %v4164_v41, 0.0 }
 0x360   :  { %v4581_v57 = vmax.f32 %v4175_v32, 0.0 }
 0x361   :  { %v4579_v40 = vmax.f32 %v4167_v0, 0.0 }
 0x362   :  { %v4691_v5 = vpack.c.bf16 %v4581_v57, %v4580_v15 }
 0x363   :  { %v4690_v30 = vpack.c.bf16 %v4579_v40, %v4578_v58  ;;  %v6772_v43 = vpop.f32.mrb[44].mxu1 }
 0x364   :  { %v4188_v19 = vadd.f32 %v6772_v43, %v8257_v13  ;;  %v4179_v26 = vpop.f32.mrb[45].mxu1 }
 0x365   :  { %v4180_v45 = vadd.f32 %v8257_v13, %v4179_v26  ;;  %v6773_v4 = vpop.f32.mrb[46].mxu1  ;;  %6902 = vmatprep.mubr.msk.bf16.mxu0 %vm3808_vm2, %v4690_v30 }
 0x366   :  { %v4191_v59 = vadd.f32 %v6773_v4, %v8257_v13  ;;  %v4182_v55 = vpop.f32.mrb[47].mxu1  ;;  %v4584_v20 = vmax.f32 %v4188_v19, 0.0 }
 0x367   :  { %v4183_v36 = vadd.f32 %v8257_v13, %v4182_v55  ;;  %6903 = vmatmul.mubr.msk.bf16.gmra.mrb[44].mxu0 %vm3808_vm2, %v4691_v5  ;;  %v4582_v37 = vmax.f32 %v4180_v45, 0.0 }
 0x368   :  { %v4585_v1 = vmax.f32 %v4191_v59, 0.0 }
 0x369   :  { %v4583_v34 = vmax.f32 %v4183_v36, 0.0 }
 0x36a   :  { %v4693_v53 = vpack.c.bf16 %v4585_v1, %v4584_v20 }
 0x36b   :  { %v4692_v3 = vpack.c.bf16 %v4583_v34, %v4582_v37  ;;  %v6776_v22 = vpop.f32.mrb[48].mxu1 }
 0x36c   :  { %v4204_v61 = vadd.f32 %v6776_v22, %v8257_v13  ;;  %v4195_v7 = vpop.f32.mrb[49].mxu1 }
 0x36d   :  { %v4196_v14 = vadd.f32 %v8257_v13, %v4195_v7  ;;  %v6777_v47 = vpop.f32.mrb[50].mxu1  ;;  %6906 = vmatprep.mubr.msk.bf16.mxu0 %vm3808_vm2, %v4692_v3 }
 0x36e   :  { %v4207_v8 = vadd.f32 %v6777_v47, %v8257_v13  ;;  %v4198_v56 = vpop.f32.mrb[51].mxu1  ;;  %v4588_v52 = vmax.f32 %v4204_v61, 0.0 }
 0x36f   :  { %v4199_v28 = vadd.f32 %v8257_v13, %v4198_v56  ;;  %6907 = vmatmul.mubr.msk.bf16.gmra.mrb[48].mxu0 %vm3808_vm2, %v4693_v53  ;;  %v4586_v33 = vmax.f32 %v4196_v14, 0.0 }
 0x370   :  { %v4589_v12 = vmax.f32 %v4207_v8, 0.0 }
 0x371   :  { %v4587_v24 = vmax.f32 %v4199_v28, 0.0 }
 0x372   :  { %v4695_v10 = vpack.c.bf16 %v4589_v12, %v4588_v52 }
 0x373   :  { %v4694_v16 = vpack.c.bf16 %v4587_v24, %v4586_v33  ;;  %v6780_v31 = vpop.f32.mrb[52].mxu1 }
 0x374   :  { %v4220_v18 = vadd.f32 %v6780_v31, %v8257_v13  ;;  %v4211_v62 = vpop.f32.mrb[53].mxu1 }
 0x375   :  { %v4212_v51 = vadd.f32 %v8257_v13, %v4211_v62  ;;  %v6781_v11 = vpop.f32.mrb[54].mxu1  ;;  %6910 = vmatprep.mubr.msk.bf16.mxu0 %vm3808_vm2, %v4694_v16 }
 0x376   :  { %v4223_v35 = vadd.f32 %v6781_v11, %v8257_v13  ;;  %v4214_v46 = vpop.f32.mrb[55].mxu1  ;;  %v4592_v25 = vmax.f32 %v4220_v18, 0.0 }
 0x377   :  { %v4215_v38 = vadd.f32 %v8257_v13, %v4214_v46  ;;  %6911 = vmatmul.mubr.msk.bf16.gmra.mrb[52].mxu0 %vm3808_vm2, %v4695_v10  ;;  %v4590_v54 = vmax.f32 %v4212_v51, 0.0 }
 0x378   :  { %v4593_v27 = vmax.f32 %v4223_v35, 0.0 }
 0x379   :  { %v4591_v42 = vmax.f32 %v4215_v38, 0.0 }
 0x37a   :  { %v4697_v29 = vpack.c.bf16 %v4593_v27, %v4592_v25 }
 0x37b   :  { %v4696_v2 = vpack.c.bf16 %v4591_v42, %v4590_v54  ;;  %v6784_v9 = vpop.f32.mrb[56].mxu1 }
 0x37c   :  { %v4236_v63 = vadd.f32 %v6784_v9, %v8257_v13  ;;  %v4227_v49 = vpop.f32.mrb[57].mxu1  ;;  %v3018_v44 = vpop.permute.xlu0 %3017 }
 0x37d   :  { %v4228_v41 = vadd.f32 %v8257_v13, %v4227_v49  ;;  %v6785_v50 = vpop.f32.mrb[58].mxu1  ;;  %6914 = vmatprep.mubr.msk.bf16.mxu0 %vm3808_vm2, %v4696_v2  ;;  %v3297_v32 = vadd.bf16 %v3018_v44, %v8498_v39 }
 0x37e   :  { %v4239_v48 = vadd.f32 %v6785_v50, %v8257_v13  ;;  %v4230_v0 = vpop.f32.mrb[59].mxu1  ;;  %v3020_v15 = vpop.permute.xlu1 %3019  ;;  %v4596_v58 = vmax.f32 %v4236_v63, 0.0 }
 0x37f   :  { %v4231_v57 = vadd.f32 %v8257_v13, %v4230_v0  ;;  %v3298_v40 = vadd.bf16 %v3020_v15, %v8498_v39  ;;  %6915 = vmatmul.mubr.msk.bf16.gmra.mrb[56].mxu0 %vm3808_vm2, %v4697_v29  ;;  %v4594_v5 = vmax.f32 %v4228_v41, 0.0  ;;  %v3425_v19 = vmax.bf16 %v7198_v60, %v3297_v32 }
 0x380   :  { %v4597_v23 = vmax.f32 %v4239_v48, 0.0  ;;  %v3022_v43 = vpop.permute.xlu0 %3021  ;;  %v599_v29 = vpack.c.bf16 %v7363_v17, %v7363_v17 }
 0x381   :  { %v4595_v30 = vmax.f32 %v4231_v57, 0.0  ;;  %v3426_v45 = vmax.bf16 %v7198_v60, %v3298_v40  ;;  %v3299_v4 = vadd.bf16 %v3022_v43, %v8498_v39 }
 0x382   :  { %v4699_v26 = vpack.c.bf16 %v4597_v23, %v4596_v58  ;;  %v3024_v55 = vpop.permute.xlu1 %3023 }
 0x383   :  { %v4698_v59 = vpack.c.bf16 %v4595_v30, %v4594_v5  ;;  %v6788_v36 = vpop.f32.mrb[60].mxu1  ;;  %v6378_v20 = vcombine.low %v3425_v19, %v3426_v45  ;;  %v3300_v1 = vadd.bf16 %v3024_v55, %v8498_v39  ;;  %v3427_v61 = vmax.bf16 %v7198_v60, %v3299_v4 }
 0x384   :  { %v4252_v37 = vadd.f32 %v6788_v36, %v8257_v13  ;;  %v4243_v34 = vpop.f32.mrb[61].mxu1  ;;  %v3026_v53 = vpop.permute.xlu0 %3025 }
 0x385   :  { %v4244_v3 = vadd.f32 %v8257_v13, %v4243_v34  ;;  %v6789_v22 = vpop.f32.mrb[62].mxu1  ;;  %6918 = vmatprep.mubr.msk.bf16.mxu0 %vm3808_vm2, %v4698_v59  ;;  %v3428_v7 = vmax.bf16 %v7198_v60, %v3300_v1  ;;  %v3301_v14 = vadd.bf16 %v3026_v53, %v8498_v39  ;;  %6838 = vmatprep.mubr.msk.bf16.mxu1 %vm3808_vm2, %v6378_v20 }
 0x386   :  { %v4255_v47 = vadd.f32 %v6789_v22, %v8257_v13  ;;  %v4246_v8 = vpop.f32.mrb[63].mxu1  ;;  %v3028_v56 = vpop.permute.xlu1 %3027  ;;  %v4600_v12 = vmax.f32 %v4252_v37, 0.0  ;;  %v600_v59 = vpack.c.bf16 %v7371_v21, %v7371_v21 }
 0x387   :  { %v4247_v28 = vadd.f32 %v8257_v13, %v4246_v8  ;;  %v6379_v52 = vcombine.low %v3427_v61, %v3428_v7  ;;  %v3302_v24 = vadd.bf16 %v3028_v56, %v8498_v39  ;;  %6919 = vmatmul.mubr.msk.bf16.gmra.mrb[60].mxu0 %vm3808_vm2, %v4699_v26  ;;  %v4598_v10 = vmax.f32 %v4244_v3, 0.0 }
 0x388   :  { %v4601_v33 = vmax.f32 %v4255_v47, 0.0  ;;  %v3030_v31 = vpop.permute.xlu0 %3029  ;;  %v3429_v18 = vmax.bf16 %v7198_v60, %v3301_v14 }
 0x389   :  { %v4599_v16 = vmax.f32 %v4247_v28, 0.0  ;;  %v3430_v51 = vmax.bf16 %v7198_v60, %v3302_v24  ;;  %6839 = vmatmul.mubr.msk.bf16.gmra.mrb[112].mxu1 %vm3808_vm2, %v6379_v52  ;;  %v3303_v13 = vadd.bf16 %v3030_v31, %v8498_v39 }
 0x38a   :  { %v4701_v62 = vpack.c.bf16 %v4601_v33, %v4600_v12  ;;  %v3032_v46 = vpop.permute.xlu1 %3031 }
 0x38b   :  { %v4700_v11 = vpack.c.bf16 %v4599_v16, %v4598_v10  ;;  %v6380_v35 = vcombine.low %v3429_v18, %v3430_v51  ;;  %v3304_v38 = vadd.bf16 %v3032_v46, %v8498_v39  ;;  %v3431_v25 = vmax.bf16 %v7198_v60, %v3303_v13 }
 0x38d   :  { %6922 = vmatprep.mubr.msk.bf16.mxu0 %vm3808_vm2, %v4700_v11  ;;  %6842 = vmatprep.mubr.msk.bf16.mxu1 %vm3808_vm2, %v6380_v35  ;;  %v3432_v27 = vmax.bf16 %v7198_v60, %v3304_v38 }
 0x38e   :  { %v3034_v42 = vpop.permute.xlu0 %3033 }
 0x38f   :  { %6923 = vmatmul.mubr.msk.bf16.gmra.mrb[64].mxu0 %vm3808_vm2, %v4701_v62  ;;  %v6381_v54 = vcombine.low %v3431_v25, %v3432_v27  ;;  %v3305_v2 = vadd.bf16 %v3034_v42, %v599_v29  ;;  %v8567_v25 = vld [vmem:[%s9022_s8 + $0x1] ss:$0 sm:$0xff] }
 0x391   :  { %6843 = vmatmul.mubr.msk.bf16.gmra.mrb[116].mxu1 %vm3808_vm2, %v6381_v54  ;;  %v3433_v49 = vmax.bf16 %v7198_v60, %v3305_v2 }
 0x392   :  { %v3038_v39 = vpop.permute.xlu0 %3037 }
 0x393   :  { %v3036_v9 = vpop.permute.xlu1 %3035  ;;  %v3307_v41 = vadd.bf16 %v3038_v39, %v599_v29 }
 0x394   :  { %v3306_v63 = vadd.bf16 %v3036_v9, %v599_v29 }
 0x395   :  { %v3435_v15 = vmax.bf16 %v7198_v60, %v3307_v41 }
 0x396   :  { %v3434_v44 = vmax.bf16 %v7198_v60, %v3306_v63  ;;  %v3042_v0 = vpop.permute.xlu0 %3041 }
 0x397   :  { %v3040_v50 = vpop.permute.xlu1 %3039  ;;  %v3309_v58 = vadd.bf16 %v3042_v0, %v599_v29 }
 0x398   :  { %v6382_v32 = vcombine.low %v3433_v49, %v3434_v44  ;;  %v3308_v48 = vadd.bf16 %v3040_v50, %v599_v29 }
 0x399   :  { %v3437_v5 = vmax.bf16 %v7198_v60, %v3309_v58 }
 0x39a   :  { %v3436_v57 = vmax.bf16 %v7198_v60, %v3308_v48  ;;  %6846 = vmatprep.mubr.msk.bf16.mxu1 %vm3808_vm2, %v6382_v32 }
 0x39c   :  { %v6383_v17 = vcombine.low %v3435_v15, %v3436_v57 }
 0x39d   :  { %v3044_v23 = vpop.permute.xlu1 %3043 }
 0x39e   :  { %v3310_v40 = vadd.bf16 %v3044_v23, %v599_v29  ;;  %6847 = vmatmul.mubr.msk.bf16.gmra.mrb[120].mxu1 %vm3808_vm2, %v6383_v17 }
 0x3a0   :  { %v3438_v30 = vmax.bf16 %v7198_v60, %v3310_v40  ;;  %v3046_v43 = vpop.permute.xlu0 %3045 }
 0x3a1   :  { %v3311_v26 = vadd.bf16 %v3046_v43, %v599_v29 }
 0x3a2   :  { %v6384_v19 = vcombine.low %v3437_v5, %v3438_v30 }
 0x3a3   :  { %v3048_v45 = vpop.permute.xlu1 %3047  ;;  %v3439_v36 = vmax.bf16 %v7198_v60, %v3311_v26 }
 0x3a4   :  { %v3312_v4 = vadd.bf16 %v3048_v45, %v599_v29  ;;  %6850 = vmatprep.mubr.msk.bf16.mxu1 %vm3808_vm2, %v6384_v19 }
 0x3a6   :  { %v3050_v55 = vpop.permute.xlu0 %3049  ;;  %v3440_v20 = vmax.bf16 %v7198_v60, %v3312_v4 }
 0x3a7   :  { %v3313_v1 = vadd.bf16 %v3050_v55, %v600_v59 }
 0x3a8   :  { %v6385_v37 = vcombine.low %v3439_v36, %v3440_v20  ;;  %v3052_v34 = vpop.permute.xlu1 %3051 }
 0x3a9   :  { %v3314_v53 = vadd.bf16 %v3052_v34, %v600_v59  ;;  %v3441_v22 = vmax.bf16 %v7198_v60, %v3313_v1 }
 0x3aa   :  { %6851 = vmatmul.mubr.msk.bf16.gmra.mrb[124].mxu1 %vm3808_vm2, %v6385_v37  ;;  %v3054_v3 = vpop.permute.xlu0 %3053 }
 0x3ab   :  { %v3442_v61 = vmax.bf16 %v7198_v60, %v3314_v53  ;;  %v3315_v7 = vadd.bf16 %v3054_v3, %v600_v59 }
 0x3ac   :  { %v3056_v14 = vpop.permute.xlu1 %3055 }
 0x3ad   :  { %v6386_v47 = vcombine.low %v3441_v22, %v3442_v61  ;;  %v3316_v21 = vadd.bf16 %v3056_v14, %v600_v59  ;;  %v3443_v8 = vmax.bf16 %v7198_v60, %v3315_v7 }
 0x3af   :  { %v3444_v56 = vmax.bf16 %v7198_v60, %v3316_v21  ;;  %6854 = vmatprep.mubr.msk.bf16.mxu1 %vm3808_vm2, %v6386_v47 }
 0x3b1   :  { %v3058_v28 = vpop.permute.xlu0 %3057  ;;  %v6387_v52 = vcombine.low %v3443_v8, %v3444_v56 }
 0x3b2   :  { %v3317_v12 = vadd.bf16 %v3058_v28, %v600_v59  ;;  %v3060_v33 = vpop.permute.xlu1 %3059 }
 0x3b3   :  { %v3318_v24 = vadd.bf16 %v3060_v33, %v600_v59  ;;  %6855 = vmatmul.mubr.msk.bf16.gmra.mrb[128].mxu1 %vm3808_vm2, %v6387_v52 }
 0x3b4   :  { %v3445_v10 = vmax.bf16 %v7198_v60, %v3317_v12 }
 0x3b5   :  { %v3446_v16 = vmax.bf16 %v7198_v60, %v3318_v24  ;;  %v3062_v31 = vpop.permute.xlu0 %3061 }
 0x3b6   :  { %v3319_v62 = vadd.bf16 %v3062_v31, %v600_v59 }
 0x3b7   :  { %v6388_v18 = vcombine.low %v3445_v10, %v3446_v16 }
 0x3b8   :  { %v3064_v51 = vpop.permute.xlu1 %3063  ;;  %v3447_v13 = vmax.bf16 %v7198_v60, %v3319_v62 }
 0x3b9   :  { %6858 = vmatprep.mubr.msk.bf16.mxu1 %vm3808_vm2, %v6388_v18  ;;  %v3320_v11 = vadd.bf16 %v3064_v51, %v600_v59 }
 0x3bb   :  { %v3448_v35 = vmax.bf16 %v7198_v60, %v3320_v11 }
 0x3bd   :  { %v6389_v46 = vcombine.low %v3447_v13, %v3448_v35 }
 0x3bf   :  { %6859 = vmatmul.mubr.msk.bf16.gmra.mrb[132].mxu1 %vm3808_vm2, %v6389_v46 }
 0x3c0   :  { %7006 = vmatprep.mubr.msk.bf16.mxu1 %vm7196_vm1, %v7195_v6 }
 0x3c6   :  { %v6792_v38 = vpop.f32.mrb[64].mxu1 }
 0x3c7   :  { %v4268_v27 = vadd.f32 %v8567_v25, %v6792_v38  ;;  %v4259_v54 = vpop.f32.mrb[65].mxu1 }
 0x3c8   :  { %v4260_v42 = vadd.f32 %v8567_v25, %v4259_v54  ;;  %v6793_v29 = vpop.f32.mrb[66].mxu1 }
 0x3c9   :  { %v4271_v60 = vadd.f32 %v8567_v25, %v6793_v29  ;;  %v4262_v2 = vpop.f32.mrb[67].mxu1  ;;  %v4604_v39 = vmax.f32 %v4268_v27, 0.0 }
 0x3ca   :  { %v4263_v9 = vadd.f32 %v8567_v25, %v4262_v2  ;;  %v4602_v49 = vmax.f32 %v4260_v42, 0.0 }
 0x3cb   :  { %v4605_v63 = vmax.f32 %v4271_v60, 0.0 }
 0x3cc   :  { %v4603_v44 = vmax.f32 %v4263_v9, 0.0 }
 0x3cd   :  { %v4703_v41 = vpack.c.bf16 %v4605_v63, %v4604_v39 }
 0x3ce   :  { %v4702_v50 = vpack.c.bf16 %v4603_v44, %v4602_v49  ;;  %v6796_v32 = vpop.f32.mrb[68].mxu1  ;;  %v8601_v44 = vld [vmem:[%s9022_s8 + $0x2] ss:$0 sm:$0xff] }
 0x3cf   :  { %v4284_v48 = vadd.f32 %v8567_v25, %v6796_v32  ;;  %v4275_v0 = vpop.f32.mrb[69].mxu1 }
 0x3d0   :  { %v4276_v15 = vadd.f32 %v8567_v25, %v4275_v0  ;;  %v6797_v57 = vpop.f32.mrb[70].mxu1  ;;  %6926 = vmatprep.mubr.msk.bf16.mxu0 %vm3808_vm2, %v4702_v50 }
 0x3d1   :  { %v4287_v17 = vadd.f32 %v8567_v25, %v6797_v57  ;;  %v4278_v58 = vpop.f32.mrb[71].mxu1  ;;  %6927 = vmatmul.mubr.msk.bf16.gmra.mrb[68].mxu0 %vm3808_vm2, %v4703_v41  ;;  %v4608_v40 = vmax.f32 %v4284_v48, 0.0 }
 0x3d2   :  { %v4279_v23 = vadd.f32 %v8567_v25, %v4278_v58  ;;  %v4606_v30 = vmax.f32 %v4276_v15, 0.0 }
 0x3d3   :  { %v4609_v5 = vmax.f32 %v4287_v17, 0.0 }
 0x3d4   :  { %v4607_v43 = vmax.f32 %v4279_v23, 0.0 }
 0x3d5   :  { %v4705_v19 = vpack.c.bf16 %v4609_v5, %v4608_v40 }
 0x3d6   :  { %v4704_v26 = vpack.c.bf16 %v4607_v43, %v4606_v30  ;;  %v6800_v45 = vpop.f32.mrb[72].mxu1 }
 0x3d7   :  { %v4300_v4 = vadd.f32 %v8567_v25, %v6800_v45  ;;  %v4291_v59 = vpop.f32.mrb[73].mxu1 }
 0x3d8   :  { %v4292_v55 = vadd.f32 %v8567_v25, %v4291_v59  ;;  %v6801_v36 = vpop.f32.mrb[74].mxu1  ;;  %6930 = vmatprep.mubr.msk.bf16.mxu0 %vm3808_vm2, %v4704_v26 }
 0x3d9   :  { %v4303_v20 = vadd.f32 %v8567_v25, %v6801_v36  ;;  %v4294_v1 = vpop.f32.mrb[75].mxu1  ;;  %6931 = vmatmul.mubr.msk.bf16.gmra.mrb[72].mxu0 %vm3808_vm2, %v4705_v19  ;;  %v4612_v34 = vmax.f32 %v4300_v4, 0.0 }
 0x3da   :  { %v4295_v37 = vadd.f32 %v8567_v25, %v4294_v1  ;;  %v4610_v3 = vmax.f32 %v4292_v55, 0.0 }
 0x3db   :  { %v4613_v53 = vmax.f32 %v4303_v20, 0.0 }
 0x3dc   :  { %v4611_v22 = vmax.f32 %v4295_v37, 0.0 }
 0x3dd   :  { %v4707_v61 = vpack.c.bf16 %v4613_v53, %v4612_v34 }
 0x3de   :  { %v4706_v7 = vpack.c.bf16 %v4611_v22, %v4610_v3  ;;  %v6804_v14 = vpop.f32.mrb[76].mxu1 }
 0x3df   :  { %v4316_v47 = vadd.f32 %v8567_v25, %v6804_v14  ;;  %v4307_v21 = vpop.f32.mrb[77].mxu1 }
 0x3e0   :  { %v4308_v8 = vadd.f32 %v8567_v25, %v4307_v21  ;;  %v6805_v56 = vpop.f32.mrb[78].mxu1  ;;  %6934 = vmatprep.mubr.msk.bf16.mxu0 %vm3808_vm2, %v4706_v7 }
 0x3e1   :  { %v4319_v28 = vadd.f32 %v8567_v25, %v6805_v56  ;;  %v4310_v52 = vpop.f32.mrb[79].mxu1  ;;  %6935 = vmatmul.mubr.msk.bf16.gmra.mrb[76].mxu0 %vm3808_vm2, %v4707_v61  ;;  %v4616_v33 = vmax.f32 %v4316_v47, 0.0 }
 0x3e2   :  { %v4311_v12 = vadd.f32 %v8567_v25, %v4310_v52  ;;  %v4614_v10 = vmax.f32 %v4308_v8, 0.0 }
 0x3e3   :  { %v4617_v24 = vmax.f32 %v4319_v28, 0.0 }
 0x3e4   :  { %v4615_v16 = vmax.f32 %v4311_v12, 0.0 }
 0x3e5   :  { %v4709_v31 = vpack.c.bf16 %v4617_v24, %v4616_v33 }
 0x3e6   :  { %v4708_v18 = vpack.c.bf16 %v4615_v16, %v4614_v10  ;;  %v6808_v62 = vpop.f32.mrb[80].mxu1 }
 0x3e7   :  { %v4332_v51 = vadd.f32 %v8567_v25, %v6808_v62  ;;  %v4323_v11 = vpop.f32.mrb[81].mxu1 }
 0x3e8   :  { %v4324_v13 = vadd.f32 %v8567_v25, %v4323_v11  ;;  %v6809_v35 = vpop.f32.mrb[82].mxu1  ;;  %6938 = vmatprep.mubr.msk.bf16.mxu0 %vm3808_vm2, %v4708_v18 }
 0x3e9   :  { %v4335_v46 = vadd.f32 %v8567_v25, %v6809_v35  ;;  %v4326_v38 = vpop.f32.mrb[83].mxu1  ;;  %6939 = vmatmul.mubr.msk.bf16.gmra.mrb[80].mxu0 %vm3808_vm2, %v4709_v31  ;;  %v4620_v54 = vmax.f32 %v4332_v51, 0.0 }
 0x3ea   :  { %v4327_v27 = vadd.f32 %v8567_v25, %v4326_v38  ;;  %v4618_v29 = vmax.f32 %v4324_v13, 0.0 }
 0x3eb   :  { %v4621_v42 = vmax.f32 %v4335_v46, 0.0 }
 0x3ec   :  { %v4619_v60 = vmax.f32 %v4327_v27, 0.0 }
 0x3ed   :  { %v4711_v2 = vpack.c.bf16 %v4621_v42, %v4620_v54 }
 0x3ee   :  { %v4710_v9 = vpack.c.bf16 %v4619_v60, %v4618_v29  ;;  %v6812_v39 = vpop.f32.mrb[84].mxu1 }
 0x3ef   :  { %v4348_v63 = vadd.f32 %v8567_v25, %v6812_v39  ;;  %v4339_v49 = vpop.f32.mrb[85].mxu1 }
 0x3f0   :  { %v4340_v41 = vadd.f32 %v8567_v25, %v4339_v49  ;;  %v6813_v50 = vpop.f32.mrb[86].mxu1  ;;  %6942 = vmatprep.mubr.msk.bf16.mxu0 %vm3808_vm2, %v4710_v9 }
 0x3f1   :  { %v6872_v32 = vpop.f32.mrb[12].mxu0  ;;  %v4351_v48 = vadd.f32 %v8567_v25, %v6813_v50  ;;  %v4342_v0 = vpop.f32.mrb[87].mxu1  ;;  %6943 = vmatmul.mubr.msk.bf16.gmra.mrb[84].mxu0 %vm3808_vm2, %v4711_v2  ;;  %v4624_v40 = vmax.f32 %v4348_v63, 0.0 }
 0x3f2   :  { %v5003_v15 = vpop.f32.mrb[13].mxu0  ;;  %v4343_v57 = vadd.f32 %v8567_v25, %v4342_v0  ;;  %v5012_v17 = vadd.f32 %v6872_v32, %v8601_v44  ;;  %v4622_v5 = vmax.f32 %v4340_v41, 0.0 }
 0x3f3   :  { %v5004_v58 = vadd.f32 %v8601_v44, %v5003_v15  ;;  %v6873_v23 = vpop.f32.mrb[14].mxu0  ;;  %v4625_v30 = vmax.f32 %v4351_v48, 0.0 }
 0x3f4   :  { %v5006_v43 = vpop.f32.mrb[15].mxu0  ;;  %v4623_v19 = vmax.f32 %v4343_v57, 0.0  ;;  %v5015_v45 = vadd.f32 %v6873_v23, %v8601_v44  ;;  %v5516_v36 = vmax.f32 %v5012_v17, 0.0 }
 0x3f5   :  { %v5514_v26 = vmax.f32 %v5004_v58, 0.0  ;;  %v5007_v4 = vadd.f32 %v8601_v44, %v5006_v43  ;;  %v4713_v59 = vpack.c.bf16 %v4625_v30, %v4624_v40 }
 0x3f6   :  { %v4712_v55 = vpack.c.bf16 %v4623_v19, %v4622_v5  ;;  %v6816_v1 = vpop.f32.mrb[88].mxu1  ;;  %v5517_v3 = vmax.f32 %v5015_v45, 0.0  ;;  %v5645_v8 = vsel %vm3808_vm2, %v5516_v36, 0.0 }
 0x3f7   :  { %v5515_v20 = vmax.f32 %v5007_v4, 0.0  ;;  %v4364_v37 = vadd.f32 %v8567_v25, %v6816_v1  ;;  %v4355_v34 = vpop.f32.mrb[89].mxu1  ;;  %v5642_v53 = vsel %vm3808_vm2, %v5514_v26, 0.0 }
 0x3f8   :  { %v4356_v61 = vadd.f32 %v8567_v25, %v4355_v34  ;;  %v6817_v7 = vpop.f32.mrb[90].mxu1  ;;  %6946 = vmatprep.mubr.msk.bf16.mxu0 %vm3808_vm2, %v4712_v55  ;;  %v5647_v33 = vsel %vm3808_vm2, %v5517_v3, 0.0 }
 0x3f9   :  { %v5643_v22 = vsel %vm3808_vm2, %v5515_v20, 0.0  ;;  %v4367_v47 = vadd.f32 %v8567_v25, %v6817_v7  ;;  %v4358_v21 = vpop.f32.mrb[91].mxu1  ;;  %6947 = vmatmul.mubr.msk.bf16.gmra.mrb[88].mxu0 %vm3808_vm2, %v4713_v59  ;;  %v4628_v52 = vmax.f32 %v4364_v37, 0.0 }
 0x3fa   :  { %v5644_v14 = vadd.f32 %v5643_v22, %v5642_v53  ;;  %v4359_v56 = vadd.f32 %v8567_v25, %v4358_v21  ;;  %v4626_v24 = vmax.f32 %v4356_v61, 0.0 }
 0x3fb   :  { %v4629_v12 = vmax.f32 %v4367_v47, 0.0 }
 0x3fc   :  { %v5646_v28 = vadd.f32 %v5645_v8, %v5644_v14  ;;  %v4627_v10 = vmax.f32 %v4359_v56, 0.0 }
 0x3fd   :  { %v4715_v16 = vpack.c.bf16 %v4629_v12, %v4628_v52 }
 0x3fe   :  { %v5648_v31 = vadd.f32 %v5647_v33, %v5646_v28  ;;  %v4714_v18 = vpack.c.bf16 %v4627_v10, %v4626_v24 }
 0x3ff   :  { %v6876_v62 = vpop.f32.mrb[16].mxu0  ;;  %v6820_v51 = vpop.f32.mrb[92].mxu1 }
 0x400   :  { %v5028_v11 = vadd.f32 %v6876_v62, %v8601_v44  ;;  %v5019_v13 = vpop.f32.mrb[17].mxu0  ;;  %v4380_v35 = vadd.f32 %v8567_v25, %v6820_v51  ;;  %v4371_v46 = vpop.f32.mrb[93].mxu1  ;;  %6950 = vmatprep.mubr.msk.bf16.mxu0 %vm3808_vm2, %v4714_v18 }
 0x401   :  { %v5020_v38 = vadd.f32 %v8601_v44, %v5019_v13  ;;  %v6877_v27 = vpop.f32.mrb[18].mxu0  ;;  %v4372_v54 = vadd.f32 %v8567_v25, %v4371_v46  ;;  %v6821_v42 = vpop.f32.mrb[94].mxu1  ;;  %6951 = vmatmul.mubr.msk.bf16.gmra.mrb[92].mxu0 %vm3808_vm2, %v4715_v16 }
 0x402   :  { %v5022_v29 = vpop.f32.mrb[19].mxu0  ;;  %v4383_v60 = vadd.f32 %v8567_v25, %v6821_v42  ;;  %v4374_v9 = vpop.f32.mrb[95].mxu1  ;;  %v5031_v39 = vadd.f32 %v6877_v27, %v8601_v44  ;;  %v5520_v49 = vmax.f32 %v5028_v11, 0.0  ;;  %v4632_v50 = vmax.f32 %v4380_v35, 0.0 }
 0x403   :  { %v5518_v2 = vmax.f32 %v5020_v38, 0.0  ;;  %v5023_v63 = vadd.f32 %v8601_v44, %v5022_v29  ;;  %v4375_v41 = vadd.f32 %v8567_v25, %v4374_v9  ;;  %v4630_v15 = vmax.f32 %v4372_v54, 0.0 }
 0x404   :  { %v4633_v32 = vmax.f32 %v4383_v60, 0.0  ;;  %v5521_v23 = vmax.f32 %v5031_v39, 0.0  ;;  %v5653_v45 = vsel %vm3808_vm2, %v5520_v49, 0.0 }
 0x405   :  { %v5649_v48 = vsel %vm3808_vm2, %v5518_v2, 0.0  ;;  %v5519_v0 = vmax.f32 %v5023_v63, 0.0  ;;  %v4631_v17 = vmax.f32 %v4375_v41, 0.0 }
 0x406   :  { %v5650_v57 = vadd.f32 %v5649_v48, %v5648_v31  ;;  %v4717_v58 = vpack.c.bf16 %v4633_v32, %v4632_v50  ;;  %v5655_v3 = vsel %vm3808_vm2, %v5521_v23, 0.0 }
 0x407   :  { %v5651_v40 = vsel %vm3808_vm2, %v5519_v0, 0.0  ;;  %v6880_v5 = vpop.f32.mrb[20].mxu0  ;;  %v4716_v30 = vpack.c.bf16 %v4631_v17, %v4630_v15 }
 0x408   :  { %v5652_v43 = vadd.f32 %v5651_v40, %v5650_v57  ;;  %v6824_v19 = vpop.f32.mrb[96].mxu1  ;;  %v5035_v26 = vpop.f32.mrb[21].mxu0  ;;  %v5044_v55 = vadd.f32 %v6880_v5, %v8601_v44 }
 0x409   :  { %v4396_v4 = vadd.f32 %v8567_v25, %v6824_v19  ;;  %v4387_v59 = vpop.f32.mrb[97].mxu1  ;;  %v5036_v36 = vadd.f32 %v8601_v44, %v5035_v26  ;;  %v6881_v20 = vpop.f32.mrb[22].mxu0  ;;  %6954 = vmatprep.mubr.msk.bf16.mxu0 %vm3808_vm2, %v4716_v30 }
 0x40a   :  { %v5654_v1 = vadd.f32 %v5653_v45, %v5652_v43  ;;  %v4388_v37 = vadd.f32 %v8567_v25, %v4387_v59  ;;  %v6825_v34 = vpop.f32.mrb[98].mxu1  ;;  %v5038_v53 = vpop.f32.mrb[23].mxu0  ;;  %6955 = vmatmul.mubr.msk.bf16.gmra.mrb[96].mxu0 %vm3808_vm2, %v4717_v58  ;;  %v5047_v8 = vadd.f32 %v6881_v20, %v8601_v44  ;;  %v5524_v28 = vmax.f32 %v5044_v55, 0.0 }
 0x40b   :  { %v4399_v22 = vadd.f32 %v8567_v25, %v6825_v34  ;;  %v5522_v61 = vmax.f32 %v5036_v36, 0.0  ;;  %v4390_v7 = vpop.f32.mrb[99].mxu1  ;;  %v5039_v14 = vadd.f32 %v8601_v44, %v5038_v53  ;;  %v4636_v56 = vmax.f32 %v4396_v4, 0.0  ;;  %v7060_v36 = vld [vmem:[%s9020_s6] sm:$0xff]  }
 0x40c   :  { %v5656_v47 = vadd.f32 %v5655_v3, %v5654_v1  ;;  %v4391_v21 = vadd.f32 %v8567_v25, %v4390_v7  ;;  %v4634_v24 = vmax.f32 %v4388_v37, 0.0  ;;  %v5525_v11 = vmax.f32 %v5047_v8, 0.0  ;;  %6999 = vmatpush3.bf16.msra.mxu1 %v7060_v36 }
 0x40d   :  { %v4637_v52 = vmax.f32 %v4399_v22, 0.0  ;;  %v5523_v12 = vmax.f32 %v5039_v14, 0.0  ;;  %v5663_v31 = vsel %vm3808_vm2, %v5522_v61, 0.0  ;;  %v5666_v46 = vsel %vm3808_vm2, %v5524_v28, 0.0  ;;  %7000 = vmatprep.subr.bf16.mxu1 %v7195_v6 }
 0x40e   :  { %v5657_v33 = vrot.slane %v5656_v47, 4  ;;  %v4635_v10 = vmax.f32 %v4391_v21, 0.0  ;;  %v5668_v41 = vsel %vm3808_vm2, %v5525_v11, 0.0 }
 0x40f   :  { %v4719_v16 = vpack.c.bf16 %v4637_v52, %v4636_v56  ;;  %v5664_v18 = vsel %vm3808_vm2, %v5523_v12, 0.0 }
 0x410   :  { %v5658_v62 = vadd.f32 %v5657_v33, %v5656_v47  ;;  %v4718_v51 = vpack.c.bf16 %v4635_v10, %v4634_v24  ;;  %v5665_v13 = vadd.f32 %v5664_v18, %v5663_v31  ;;  %v6828_v35 = vpop.f32.mrb[100].mxu1 }
 0x411   :  { %v4412_v38 = vadd.f32 %v8567_v25, %v6828_v35  ;;  %v4403_v27 = vpop.f32.mrb[101].mxu1  ;;  %v6884_v60 = vpop.f32.mrb[24].mxu0 }
 0x412   :  { %v5667_v54 = vadd.f32 %v5666_v46, %v5665_v13  ;;  %v4404_v42 = vadd.f32 %v8567_v25, %v4403_v27  ;;  %v6829_v29 = vpop.f32.mrb[102].mxu1  ;;  %6958 = vmatprep.mubr.msk.bf16.mxu0 %vm3808_vm2, %v4718_v51  ;;  %v5659_v2 = vrot.slane %v5658_v62, 2  ;;  %v5060_v63 = vadd.f32 %v6884_v60, %v8601_v44  ;;  %v5051_v49 = vpop.f32.mrb[25].mxu0 }
 0x413   :  { %v4415_v9 = vadd.f32 %v8567_v25, %v6829_v29  ;;  %v4406_v39 = vpop.f32.mrb[103].mxu1  ;;  %6959 = vmatmul.mubr.msk.bf16.gmra.mrb[100].mxu0 %vm3808_vm2, %v4719_v16  ;;  %v5052_v32 = vadd.f32 %v8601_v44, %v5051_v49  ;;  %v6885_v48 = vpop.f32.mrb[26].mxu0  ;;  %v4640_v0 = vmax.f32 %v4412_v38, 0.0 }
 0x414   :  { %v4407_v50 = vadd.f32 %v8567_v25, %v4406_v39  ;;  %v5669_v57 = vadd.f32 %v5668_v41, %v5667_v54  ;;  %v5063_v17 = vadd.f32 %v6885_v48, %v8601_v44  ;;  %v5054_v58 = vpop.f32.mrb[27].mxu0  ;;  %v4638_v23 = vmax.f32 %v4404_v42, 0.0 }
 0x415   :  { %v4641_v15 = vmax.f32 %v4415_v9, 0.0  ;;  %v5526_v5 = vmax.f32 %v5052_v32, 0.0  ;;  %v5055_v30 = vadd.f32 %v8601_v44, %v5054_v58  ;;  %v5660_v43 = vadd.f32 %v5659_v2, %v5658_v62 }
 0x416   :  { %v4639_v40 = vmax.f32 %v4407_v50, 0.0  ;;  %v5528_v26 = vmax.f32 %v5060_v63, 0.0  ;;  %v5529_v59 = vmax.f32 %v5063_v17, 0.0 }
 0x417   :  { %v4721_v19 = vpack.c.bf16 %v4641_v15, %v4640_v0  ;;  %v5670_v4 = vsel %vm3808_vm2, %v5526_v5, 0.0  ;;  %v5527_v55 = vmax.f32 %v5055_v30, 0.0  ;;  %v5661_v3 = vrot.slane %v5660_v43, 1 }
 0x418   :  { %v4720_v45 = vpack.c.bf16 %v4639_v40, %v4638_v23  ;;  %v5671_v20 = vadd.f32 %v5670_v4, %v5669_v57  ;;  %v6832_v1 = vpop.f32.mrb[104].mxu1  ;;  %v5674_v47 = vsel %vm3808_vm2, %v5528_v26, 0.0  ;;  %v5676_v21 = vsel %vm3808_vm2, %v5529_v59, 0.0 }
 0x419   :  { %v5672_v37 = vsel %vm3808_vm2, %v5527_v55, 0.0  ;;  %v4428_v34 = vadd.f32 %v8567_v25, %v6832_v1  ;;  %v4419_v53 = vpop.f32.mrb[105].mxu1  ;;  %v5662_v9 = vadd.f32 %v5661_v3, %v5660_v43 }
 0x41a   :  { %6962 = vmatprep.mubr.msk.bf16.mxu0 %vm3808_vm2, %v4720_v45  ;;  %v5673_v22 = vadd.f32 %v5672_v37, %v5671_v20  ;;  %v4420_v61 = vadd.f32 %v8567_v25, %v4419_v53  ;;  %v6833_v7 = vpop.f32.mrb[106].mxu1  ;;  %v6888_v14 = vpop.f32.mrb[28].mxu0 }
 0x41b   :  { %6963 = vmatmul.mubr.msk.bf16.gmra.mrb[104].mxu0 %vm3808_vm2, %v4721_v19  ;;  %v4431_v8 = vadd.f32 %v8567_v25, %v6833_v7  ;;  %v4422_v56 = vpop.f32.mrb[107].mxu1  ;;  %v5076_v28 = vadd.f32 %v6888_v14, %v8601_v44  ;;  %v5067_v52 = vpop.f32.mrb[29].mxu0  ;;  %v4644_v33 = vmax.f32 %v4428_v34, 0.0 }
 0x41c   :  { %v5675_v12 = vadd.f32 %v5674_v47, %v5673_v22  ;;  %v4423_v24 = vadd.f32 %v8567_v25, %v4422_v56  ;;  %v5068_v10 = vadd.f32 %v8601_v44, %v5067_v52  ;;  %v6889_v16 = vpop.f32.mrb[30].mxu0  ;;  %v4642_v31 = vmax.f32 %v4420_v61, 0.0 }
 0x41d   :  { %v4645_v18 = vmax.f32 %v4431_v8, 0.0  ;;  %v5532_v62 = vmax.f32 %v5076_v28, 0.0  ;;  %v5079_v51 = vadd.f32 %v6889_v16, %v8601_v44  ;;  %v5070_v11 = vpop.f32.mrb[31].mxu0  ;;  %v5978_v8 = vpack.c.bf16 %v5662_v9, %v5662_v9 }
 0x41e   :  { %v5677_v13 = vadd.f32 %v5676_v21, %v5675_v12  ;;  %v4643_v35 = vmax.f32 %v4423_v24, 0.0  ;;  %v5530_v46 = vmax.f32 %v5068_v10, 0.0  ;;  %v5071_v38 = vadd.f32 %v8601_v44, %v5070_v11 }
 0x41f   :  { %v4723_v27 = vpack.c.bf16 %v4645_v18, %v4644_v33  ;;  %v5533_v54 = vmax.f32 %v5079_v51, 0.0  ;;  %v5687_v39 = vsel %vm3808_vm2, %v5532_v62, 0.0  ;;  %v6025_v11 = vunpack.c.l.b16 %v5978_v8 }
 0x420   :  { %v5678_v42 = vrot.slane %v5677_v13, 4  ;;  %v4722_v29 = vpack.c.bf16 %v4643_v35, %v4642_v31  ;;  %v5531_v60 = vmax.f32 %v5071_v38, 0.0  ;;  %v6836_v2 = vpop.f32.mrb[108].mxu1  ;;  %v5684_v50 = vsel %vm3808_vm2, %v5530_v46, 0.0 }
 0x421   :  { %v4444_v63 = vadd.f32 %v8567_v25, %v6836_v2  ;;  %v4435_v49 = vpop.f32.mrb[109].mxu1  ;;  %v5689_v57 = vsel %vm3808_vm2, %v5533_v54, 0.0 }
 0x422   :  { %v5679_v41 = vadd.f32 %v5678_v42, %v5677_v13  ;;  %v5685_v32 = vsel %vm3808_vm2, %v5531_v60, 0.0  ;;  %v4436_v48 = vadd.f32 %v8567_v25, %v4435_v49  ;;  %v6837_v0 = vpop.f32.mrb[110].mxu1  ;;  %6966 = vmatprep.mubr.msk.bf16.mxu0 %vm3808_vm2, %v4722_v29  ;;  %v6892_v15 = vpop.f32.mrb[32].mxu0 }
 0x423   :  { %v5686_v17 = vadd.f32 %v5685_v32, %v5684_v50  ;;  %v4447_v58 = vadd.f32 %v8567_v25, %v6837_v0  ;;  %v4438_v23 = vpop.f32.mrb[111].mxu1  ;;  %v5092_v40 = vadd.f32 %v6892_v15, %v8601_v44  ;;  %6967 = vmatmul.mubr.msk.bf16.gmra.mrb[108].mxu0 %vm3808_vm2, %v4723_v27  ;;  %v5083_v5 = vpop.f32.mrb[33].mxu0  ;;  %v4648_v43 = vmax.f32 %v4444_v63, 0.0 }
 0x424   :  { %v5680_v30 = vrot.slane %v5679_v41, 2  ;;  %v4439_v19 = vadd.f32 %v8567_v25, %v4438_v23  ;;  %v5084_v26 = vadd.f32 %v8601_v44, %v5083_v5  ;;  %v6893_v45 = vpop.f32.mrb[34].mxu0  ;;  %v4646_v59 = vmax.f32 %v4436_v48, 0.0 }
 0x425   :  { %v5688_v4 = vadd.f32 %v5687_v39, %v5686_v17  ;;  %v4649_v55 = vmax.f32 %v4447_v58, 0.0  ;;  %v5095_v36 = vadd.f32 %v6893_v45, %v8601_v44  ;;  %v5086_v20 = vpop.f32.mrb[35].mxu0  ;;  %v5536_v22 = vmax.f32 %v5092_v40, 0.0 }
 0x426   :  { %v5681_v1 = vadd.f32 %v5680_v30, %v5679_v41  ;;  %v4647_v37 = vmax.f32 %v4439_v19, 0.0  ;;  %v5534_v34 = vmax.f32 %v5084_v26, 0.0  ;;  %v5087_v53 = vadd.f32 %v8601_v44, %v5086_v20 }
 0x427   :  { %v4725_v3 = vpack.c.bf16 %v4649_v55, %v4648_v43  ;;  %v5690_v61 = vadd.f32 %v5689_v57, %v5688_v4  ;;  %v5537_v28 = vmax.f32 %v5095_v36, 0.0  ;;  %v5695_v31 = vsel %vm3808_vm2, %v5536_v22, 0.0 }
 0x428   :  { %v5682_v7 = vrot.slane %v5681_v1, 1  ;;  %v4724_v14 = vpack.c.bf16 %v4647_v37, %v4646_v59  ;;  %v5691_v47 = vsel %vm3808_vm2, %v5534_v34, 0.0  ;;  %v5535_v21 = vmax.f32 %v5087_v53, 0.0 }
 0x429   :  { %v5692_v56 = vadd.f32 %v5691_v47, %v5690_v61  ;;  %v5697_v13 = vsel %vm3808_vm2, %v5537_v28, 0.0 }
 0x42a   :  { %v5683_v52 = vadd.f32 %v5682_v7, %v5681_v1  ;;  %v5693_v12 = vsel %vm3808_vm2, %v5535_v21, 0.0  ;;  %6970 = vmatprep.mubr.msk.bf16.mxu0 %vm3808_vm2, %v4724_v14  ;;  %v6896_v33 = vpop.f32.mrb[36].mxu0 }
 0x42b   :  { %v5694_v24 = vadd.f32 %v5693_v12, %v5692_v56  ;;  %6971 = vmatmul.mubr.msk.bf16.gmra.mrb[112].mxu0 %vm3808_vm2, %v4725_v3  ;;  %v5099_v10 = vpop.f32.mrb[37].mxu0  ;;  %v5108_v18 = vadd.f32 %v6896_v33, %v8601_v44 }
 0x42c   :  { %v5979_v16 = vpack.c.bf16 %v5683_v52, %v5683_v52  ;;  %v5100_v62 = vadd.f32 %v8601_v44, %v5099_v10  ;;  %v6897_v51 = vpop.f32.mrb[38].mxu0 }
 0x42d   :  { %v5696_v35 = vadd.f32 %v5695_v31, %v5694_v24  ;;  %v5102_v46 = vpop.f32.mrb[39].mxu0  ;;  %v5111_v54 = vadd.f32 %v6897_v51, %v8601_v44  ;;  %v5540_v2 = vmax.f32 %v5108_v18, 0.0 }
 0x42e   :  { %v6026_v38 = vunpack.c.l.b16 %v5979_v16  ;;  %v5538_v27 = vmax.f32 %v5100_v62, 0.0  ;;  %v5103_v42 = vadd.f32 %v8601_v44, %v5102_v46 }
 0x42f   :  { %v5698_v29 = vadd.f32 %v5697_v13, %v5696_v35  ;;  %v5541_v49 = vmax.f32 %v5111_v54, 0.0  ;;  %v5708_v15 = vsel %vm3808_vm2, %v5540_v2, 0.0 }
 0x430   :  { %v6042_v60 = vsel %vm6041_vm3, %v6026_v38, %v6025_v11  ;;  %v5539_v9 = vmax.f32 %v5103_v42, 0.0  ;;  %v5705_v63 = vsel %vm3808_vm2, %v5538_v27, 0.0 }
 0x431   :  { %v5699_v39 = vrot.slane %v5698_v29, 4  ;;  %v5710_v30 = vsel %vm3808_vm2, %v5541_v49, 0.0 }
 0x432   :  { %v5706_v41 = vsel %vm3808_vm2, %v5539_v9, 0.0  ;;  %v6900_v50 = vpop.f32.mrb[40].mxu0 }
 0x433   :  { %v5700_v32 = vadd.f32 %v5699_v39, %v5698_v29  ;;  %v5707_v48 = vadd.f32 %v5706_v41, %v5705_v63  ;;  %v5115_v0 = vpop.f32.mrb[41].mxu0  ;;  %v5124_v57 = vadd.f32 %v6900_v50, %v8601_v44 }
 0x434   :  { %v5116_v17 = vadd.f32 %v8601_v44, %v5115_v0  ;;  %v6901_v58 = vpop.f32.mrb[42].mxu0 }
 0x435   :  { %v5701_v23 = vrot.slane %v5700_v32, 2  ;;  %v5709_v40 = vadd.f32 %v5708_v15, %v5707_v48  ;;  %v5118_v5 = vpop.f32.mrb[43].mxu0  ;;  %v5127_v19 = vadd.f32 %v6901_v58, %v8601_v44  ;;  %v5544_v59 = vmax.f32 %v5124_v57, 0.0 }
 0x436   :  { %v5542_v43 = vmax.f32 %v5116_v17, 0.0  ;;  %v5119_v26 = vadd.f32 %v8601_v44, %v5118_v5 }
 0x437   :  { %v5702_v45 = vadd.f32 %v5701_v23, %v5700_v32  ;;  %v5711_v4 = vadd.f32 %v5710_v30, %v5709_v40  ;;  %v5545_v37 = vmax.f32 %v5127_v19, 0.0  ;;  %v5716_v7 = vsel %vm3808_vm2, %v5544_v59, 0.0 }
 0x438   :  { %v5712_v55 = vsel %vm3808_vm2, %v5542_v43, 0.0  ;;  %v5543_v36 = vmax.f32 %v5119_v26, 0.0 }
 0x439   :  { %v5703_v20 = vrot.slane %v5702_v45, 1  ;;  %v5713_v1 = vadd.f32 %v5712_v55, %v5711_v4  ;;  %v5718_v52 = vsel %vm3808_vm2, %v5545_v37, 0.0 }
 0x43a   :  { %v5714_v34 = vsel %vm3808_vm2, %v5543_v36, 0.0  ;;  %v6904_v53 = vpop.f32.mrb[44].mxu0 }
 0x43b   :  { %v5704_v3 = vadd.f32 %v5703_v20, %v5702_v45  ;;  %v5715_v22 = vadd.f32 %v5714_v34, %v5713_v1  ;;  %v5131_v61 = vpop.f32.mrb[45].mxu0  ;;  %v5140_v14 = vadd.f32 %v6904_v53, %v8601_v44 }
 0x43c   :  { %v5132_v47 = vadd.f32 %v8601_v44, %v5131_v61  ;;  %v6905_v21 = vpop.f32.mrb[46].mxu0 }
 0x43d   :  { %v5980_v8 = vpack.c.bf16 %v5704_v3, %v5704_v3  ;;  %v5717_v56 = vadd.f32 %v5716_v7, %v5715_v22  ;;  %v5134_v28 = vpop.f32.mrb[47].mxu0  ;;  %v5143_v33 = vadd.f32 %v6905_v21, %v8601_v44  ;;  %v5548_v31 = vmax.f32 %v5140_v14, 0.0 }
 0x43e   :  { %v5546_v12 = vmax.f32 %v5132_v47, 0.0  ;;  %v5135_v24 = vadd.f32 %v8601_v44, %v5134_v28 }
 0x43f   :  { %v6027_v10 = vunpack.c.l.b16 %v5980_v8  ;;  %v5719_v16 = vadd.f32 %v5718_v52, %v5717_v56  ;;  %v5549_v13 = vmax.f32 %v5143_v33, 0.0  ;;  %v5729_v42 = vsel %vm3808_vm2, %v5548_v31, 0.0 }
 0x440   :  { %v5547_v18 = vmax.f32 %v5135_v24, 0.0  ;;  %v5726_v11 = vsel %vm3808_vm2, %v5546_v12, 0.0 }
 0x441   :  { %v6044_v62 = vsel %vm6043_vm4, %v6027_v10, %v6042_v60  ;;  %v5720_v51 = vrot.slane %v5719_v16, 4  ;;  %v5731_v49 = vsel %vm3808_vm2, %v5549_v13, 0.0 }
 0x442   :  { %v5727_v35 = vsel %vm3808_vm2, %v5547_v18, 0.0  ;;  %v6908_v46 = vpop.f32.mrb[48].mxu0 }
 0x443   :  { %v5721_v38 = vadd.f32 %v5720_v51, %v5719_v16  ;;  %v5728_v27 = vadd.f32 %v5727_v35, %v5726_v11  ;;  %v5147_v54 = vpop.f32.mrb[49].mxu0  ;;  %v5156_v29 = vadd.f32 %v6908_v46, %v8601_v44 }
 0x444   :  { %v5148_v2 = vadd.f32 %v8601_v44, %v5147_v54  ;;  %v6909_v9 = vpop.f32.mrb[50].mxu0 }
 0x445   :  { %v5722_v39 = vrot.slane %v5721_v38, 2  ;;  %v5730_v63 = vadd.f32 %v5729_v42, %v5728_v27  ;;  %v5150_v60 = vpop.f32.mrb[51].mxu0  ;;  %v5159_v50 = vadd.f32 %v6909_v9, %v8601_v44  ;;  %v5552_v15 = vmax.f32 %v5156_v29, 0.0 }
 0x446   :  { %v5550_v41 = vmax.f32 %v5148_v2, 0.0  ;;  %v5151_v32 = vadd.f32 %v8601_v44, %v5150_v60  ;;  %v7061_v60 = vld [vmem:[%s9020_s6 + $0x8] sm:$0xff]  }
 0x447   :  { %v5723_v48 = vadd.f32 %v5722_v39, %v5721_v38  ;;  %v5732_v0 = vadd.f32 %v5731_v49, %v5730_v63  ;;  %v5553_v40 = vmax.f32 %v5159_v50, 0.0  ;;  %v5737_v45 = vsel %vm3808_vm2, %v5552_v15, 0.0  ;;  %7001 = vmatpush3.bf16.msra.mxu1 %v7061_v60 }
 0x448   :  { %v5733_v57 = vsel %vm3808_vm2, %v5550_v41, 0.0  ;;  %v5551_v17 = vmax.f32 %v5151_v32, 0.0  ;;  %7002 = vmatprep.subr.bf16.mxu1 %v7195_v6 }
 0x449   :  { %v5724_v58 = vrot.slane %v5723_v48, 1  ;;  %v5734_v23 = vadd.f32 %v5733_v57, %v5732_v0  ;;  %v5739_v37 = vsel %vm3808_vm2, %v5553_v40, 0.0 }
 0x44a   :  { %v5735_v5 = vsel %vm3808_vm2, %v5551_v17, 0.0  ;;  %v6912_v30 = vpop.f32.mrb[52].mxu0 }
 0x44b   :  { %v5725_v43 = vadd.f32 %v5724_v58, %v5723_v48  ;;  %v5736_v19 = vadd.f32 %v5735_v5, %v5734_v23  ;;  %v5163_v26 = vpop.f32.mrb[53].mxu0  ;;  %v5172_v4 = vadd.f32 %v6912_v30, %v8601_v44 }
 0x44c   :  { %v5164_v59 = vadd.f32 %v8601_v44, %v5163_v26  ;;  %v6913_v55 = vpop.f32.mrb[54].mxu0 }
 0x44d   :  { %v5981_v36 = vpack.c.bf16 %v5725_v43, %v5725_v43  ;;  %v5738_v20 = vadd.f32 %v5737_v45, %v5736_v19  ;;  %v5166_v1 = vpop.f32.mrb[55].mxu0  ;;  %v5175_v53 = vadd.f32 %v6913_v55, %v8601_v44  ;;  %v5556_v7 = vmax.f32 %v5172_v4, 0.0 }
 0x44e   :  { %v5554_v34 = vmax.f32 %v5164_v59, 0.0  ;;  %v5167_v3 = vadd.f32 %v8601_v44, %v5166_v1 }
 0x44f   :  { %v6028_v22 = vunpack.c.l.b16 %v5981_v36  ;;  %v5740_v61 = vadd.f32 %v5739_v37, %v5738_v20  ;;  %v5557_v56 = vmax.f32 %v5175_v53, 0.0  ;;  %v5750_v10 = vsel %vm3808_vm2, %v5556_v7, 0.0 }
 0x450   :  { %v5555_v14 = vmax.f32 %v5167_v3, 0.0  ;;  %v5747_v8 = vsel %vm3808_vm2, %v5554_v34, 0.0 }
 0x451   :  { %v6046_v47 = vsel %vm6045_vm5, %v6028_v22, %v6044_v62  ;;  %v5741_v21 = vrot.slane %v5740_v61, 4  ;;  %v5752_v35 = vsel %vm3808_vm2, %v5557_v56, 0.0 }
 0x452   :  { %v5748_v28 = vsel %vm3808_vm2, %v5555_v14, 0.0  ;;  %v6916_v52 = vpop.f32.mrb[56].mxu0 }
 0x453   :  { %v5742_v12 = vadd.f32 %v5741_v21, %v5740_v61  ;;  %v5749_v33 = vadd.f32 %v5748_v28, %v5747_v8  ;;  %v5179_v24 = vpop.f32.mrb[57].mxu0  ;;  %v5188_v16 = vadd.f32 %v6916_v52, %v8601_v44 }
 0x454   :  { %v5180_v31 = vadd.f32 %v8601_v44, %v5179_v24  ;;  %v6917_v18 = vpop.f32.mrb[58].mxu0 }
 0x455   :  { %v5743_v51 = vrot.slane %v5742_v12, 2  ;;  %v5751_v11 = vadd.f32 %v5750_v10, %v5749_v33  ;;  %v5191_v62 = vadd.f32 %v6917_v18, %v8601_v44  ;;  %v5182_v13 = vpop.f32.mrb[59].mxu0  ;;  %v5560_v42 = vmax.f32 %v5188_v16, 0.0 }
 0x456   :  { %v5558_v46 = vmax.f32 %v5180_v31, 0.0  ;;  %v5183_v38 = vadd.f32 %v8601_v44, %v5182_v13 }
 0x457   :  { %v5744_v27 = vadd.f32 %v5743_v51, %v5742_v12  ;;  %v5753_v54 = vadd.f32 %v5752_v35, %v5751_v11  ;;  %v5561_v63 = vmax.f32 %v5191_v62, 0.0  ;;  %v5758_v0 = vsel %vm3808_vm2, %v5560_v42, 0.0 }
 0x458   :  { %v5754_v29 = vsel %vm3808_vm2, %v5558_v46, 0.0  ;;  %v5559_v2 = vmax.f32 %v5183_v38, 0.0 }
 0x459   :  { %v5745_v9 = vrot.slane %v5744_v27, 1  ;;  %v5755_v39 = vadd.f32 %v5754_v29, %v5753_v54  ;;  %v5760_v40 = vsel %vm3808_vm2, %v5561_v63, 0.0 }
 0x45a   :  { %v5756_v49 = vsel %vm3808_vm2, %v5559_v2, 0.0  ;;  %v6920_v41 = vpop.f32.mrb[60].mxu0 }
 0x45b   :  { %v5746_v50 = vadd.f32 %v5745_v9, %v5744_v27  ;;  %v5757_v32 = vadd.f32 %v5756_v49, %v5755_v39  ;;  %v5195_v48 = vpop.f32.mrb[61].mxu0  ;;  %v5204_v15 = vadd.f32 %v6920_v41, %v8601_v44  ;;  %v8773_v27 = vld [vmem:[%s9022_s8 + $0x1] ss:$0 sm:$0xff] }
 0x45c   :  { %v5196_v57 = vadd.f32 %v8601_v44, %v5195_v48  ;;  %v6840_v17 = vpop.f32.mrb[112].mxu1  ;;  %v6921_v58 = vpop.f32.mrb[62].mxu0 }
 0x45d   :  { %v5982_v23 = vpack.c.bf16 %v5746_v50, %v5746_v50  ;;  %v5759_v5 = vadd.f32 %v5758_v0, %v5757_v32  ;;  %v4460_v30 = vadd.f32 %v8567_v25, %v6840_v17  ;;  %v4451_v43 = vpop.f32.mrb[113].mxu1  ;;  %v5198_v19 = vpop.f32.mrb[63].mxu0  ;;  %v5207_v45 = vadd.f32 %v6921_v58, %v8601_v44 }
 0x45e   :  { %v5562_v26 = vmax.f32 %v5196_v57, 0.0  ;;  %v4452_v4 = vadd.f32 %v8567_v25, %v4451_v43  ;;  %v5199_v59 = vadd.f32 %v8601_v44, %v5198_v19  ;;  %v6841_v55 = vpop.f32.mrb[114].mxu1  ;;  %v5564_v37 = vmax.f32 %v5204_v15, 0.0 }
 0x45f   :  { %v6029_v36 = vunpack.c.l.b16 %v5982_v23  ;;  %v5761_v20 = vadd.f32 %v5760_v40, %v5759_v5  ;;  %v4454_v1 = vpop.f32.mrb[115].mxu1  ;;  %v4652_v34 = vmax.f32 %v4460_v30, 0.0  ;;  %v4463_v61 = vadd.f32 %v8567_v25, %v6841_v55 }
 0x460   :  { %v5563_v53 = vmax.f32 %v5199_v59, 0.0  ;;  %v4455_v7 = vadd.f32 %v8567_v25, %v4454_v1  ;;  %v5768_v14 = vsel %vm3808_vm2, %v5562_v26, 0.0  ;;  %v5565_v21 = vmax.f32 %v5207_v45, 0.0 }
 0x461   :  { %v8760_v3 = vsel %vm6047_vm6, %v6029_v36, %v6046_v47  ;;  %v5762_v22 = vrot.slane %v5761_v20, 4  ;;  %v4650_v8 = vmax.f32 %v4452_v4, 0.0  ;;  %v4653_v33 = vmax.f32 %v4463_v61, 0.0 }
 0x462   :  { %v5769_v56 = vsel %vm3808_vm2, %v5563_v53, 0.0  ;;  %v6924_v28 = vpop.f32.mrb[64].mxu0  ;;  %v4651_v24 = vmax.f32 %v4455_v7, 0.0  ;;  %v5771_v47 = vsel %vm3808_vm2, %v5564_v37, 0.0  ;;  %v5773_v46 = vsel %vm3808_vm2, %v5565_v21, 0.0 }
 0x463   :  { %v5763_v52 = vadd.f32 %v5762_v22, %v5761_v20  ;;  %v5770_v12 = vadd.f32 %v5769_v56, %v5768_v14  ;;  %v5211_v10 = vpop.f32.mrb[65].mxu0  ;;  %v5220_v16 = vadd.f32 %v6924_v28, %v8601_v44  ;;  %v4727_v11 = vpack.c.bf16 %v4653_v33, %v4652_v34 }
 0x464   :  { %v5212_v31 = vadd.f32 %v8601_v44, %v5211_v10  ;;  %v6925_v18 = vpop.f32.mrb[66].mxu0  ;;  %v4726_v62 = vpack.c.bf16 %v4651_v24, %v4650_v8  ;;  %v6844_v13 = vpop.f32.mrb[116].mxu1 }
 0x465   :  { %v5764_v25 = vrot.slane %v5763_v52, 2  ;;  %v5772_v51 = vadd.f32 %v5771_v47, %v5770_v12  ;;  %v5214_v35 = vpop.f32.mrb[67].mxu0  ;;  %v4476_v54 = vadd.f32 %v8773_v27, %v6844_v13  ;;  %v4467_v42 = vpop.f32.mrb[117].mxu1  ;;  %v5223_v9 = vadd.f32 %v6925_v18, %v8601_v44 }
 0x466   :  { %v5566_v38 = vmax.f32 %v5212_v31, 0.0  ;;  %v5215_v39 = vadd.f32 %v8601_v44, %v5214_v35  ;;  %v6845_v63 = vpop.f32.mrb[118].mxu1  ;;  %6974 = vmatprep.mubr.msk.bf16.mxu0 %vm3808_vm2, %v4726_v62  ;;  %v4468_v49 = vadd.f32 %v8773_v27, %v4467_v42  ;;  %v5568_v32 = vmax.f32 %v5220_v16, 0.0 }
 0x467   :  { %v5765_v29 = vadd.f32 %v5764_v25, %v5763_v52  ;;  %v5774_v2 = vadd.f32 %v5773_v46, %v5772_v51  ;;  %v4470_v41 = vpop.f32.mrb[119].mxu1  ;;  %6975 = vmatmul.mubr.msk.bf16.gmra.mrb[116].mxu0 %vm3808_vm2, %v4727_v11  ;;  %v4479_v15 = vadd.f32 %v8773_v27, %v6845_v63  ;;  %v4656_v44 = vmax.f32 %v4476_v54, 0.0 }
 0x468   :  { %v5775_v60 = vsel %vm3808_vm2, %v5566_v38, 0.0  ;;  %v5567_v0 = vmax.f32 %v5215_v39, 0.0  ;;  %v4471_v57 = vadd.f32 %v8773_v27, %v4470_v41  ;;  %v5569_v58 = vmax.f32 %v5223_v9, 0.0 }
 0x469   :  { %v5766_v50 = vrot.slane %v5765_v29, 1  ;;  %v5776_v48 = vadd.f32 %v5775_v60, %v5774_v2  ;;  %v4654_v40 = vmax.f32 %v4468_v49, 0.0  ;;  %v4657_v30 = vmax.f32 %v4479_v15, 0.0 }
 0x46a   :  { %v5777_v23 = vsel %vm3808_vm2, %v5567_v0, 0.0  ;;  %v4655_v43 = vmax.f32 %v4471_v57, 0.0  ;;  %v5779_v26 = vsel %vm3808_vm2, %v5568_v32, 0.0  ;;  %v5781_v36 = vsel %vm3808_vm2, %v5569_v58, 0.0 }
 0x46b   :  { %v5767_v17 = vadd.f32 %v5766_v50, %v5765_v29  ;;  %v5778_v5 = vadd.f32 %v5777_v23, %v5776_v48  ;;  %v4729_v4 = vpack.c.bf16 %v4657_v30, %v4656_v44 }
 0x46c   :  { %v4728_v59 = vpack.c.bf16 %v4655_v43, %v4654_v40 }
 0x46d   :  { %v5983_v19 = vpack.c.bf16 %v5767_v17, %v5767_v17  ;;  %v5780_v45 = vadd.f32 %v5779_v26, %v5778_v5 }
 0x46e   :  { %6978 = vmatprep.mubr.msk.bf16.mxu0 %vm3808_vm2, %v4728_v59 }
 0x46f   :  { %v6030_v55 = vunpack.c.l.b16 %v5983_v19  ;;  %v5782_v20 = vadd.f32 %v5781_v36, %v5780_v45  ;;  %6979 = vmatmul.mubr.msk.bf16.gmra.mrb[120].mxu0 %vm3808_vm2, %v4729_v4 }
 0x471   :  { %v6050_v1 = vsel %vm6049_vm7, %v6030_v55, %v8760_v3  ;;  %v5783_v37 = vrot.slane %v5782_v20, 4  ;;  %v6848_v34 = vpop.f32.mrb[120].mxu1 }
 0x472   :  { %v4492_v53 = vadd.f32 %v8773_v27, %v6848_v34  ;;  %v4483_v22 = vpop.f32.mrb[121].mxu1 }
 0x473   :  { %v5784_v61 = vadd.f32 %v5783_v37, %v5782_v20  ;;  %v4484_v7 = vadd.f32 %v8773_v27, %v4483_v22  ;;  %v6849_v14 = vpop.f32.mrb[122].mxu1  ;;  %v7062_v22 = vld [vmem:[%s9020_s6 + $0x10] sm:$0xff]  }
 0x474   :  { %v4495_v21 = vadd.f32 %v8773_v27, %v6849_v14  ;;  %v4486_v8 = vpop.f32.mrb[123].mxu1  ;;  %v4660_v52 = vmax.f32 %v4492_v53, 0.0  ;;  %7003 = vmatpush3.bf16.msra.mxu1 %v7062_v22 }
 0x475   :  { %v5785_v56 = vrot.slane %v5784_v61, 2  ;;  %v4487_v28 = vadd.f32 %v8773_v27, %v4486_v8  ;;  %v4658_v33 = vmax.f32 %v4484_v7, 0.0  ;;  %7004 = vmatprep.subr.bf16.mxu1 %v7195_v6  ;;  %v8827_v7 = vld [vmem:[%s9022_s8 + $0x2] ss:$0 sm:$0xff] }
 0x476   :  { %v4661_v12 = vmax.f32 %v4495_v21, 0.0 }
 0x477   :  { %v5786_v3 = vadd.f32 %v5785_v56, %v5784_v61  ;;  %v4659_v24 = vmax.f32 %v4487_v28, 0.0 }
 0x478   :  { %v4731_v10 = vpack.c.bf16 %v4661_v12, %v4660_v52 }
 0x479   :  { %v5787_v47 = vrot.slane %v5786_v3, 1  ;;  %v4730_v16 = vpack.c.bf16 %v4659_v24, %v4658_v33 }
 0x47b   :  { %v5788_v31 = vadd.f32 %v5787_v47, %v5786_v3  ;;  %6982 = vmatprep.mubr.msk.bf16.mxu0 %vm3808_vm2, %v4730_v16 }
 0x47c   :  { %6983 = vmatmul.mubr.msk.bf16.gmra.mrb[124].mxu0 %vm3808_vm2, %v4731_v10 }
 0x47d   :  { %v5984_v18 = vpack.c.bf16 %v5788_v31, %v5788_v31  ;;  %v6852_v25 = vpop.f32.mrb[124].mxu1 }
 0x47e   :  { %v4508_v51 = vadd.f32 %v8773_v27, %v6852_v25  ;;  %v4499_v11 = vpop.f32.mrb[125].mxu1 }
 0x47f   :  { %v6031_v62 = vunpack.c.l.b16 %v5984_v18  ;;  %v4500_v13 = vadd.f32 %v8773_v27, %v4499_v11  ;;  %v6853_v35 = vpop.f32.mrb[126].mxu1 }
 0x480   :  { %v4511_v46 = vadd.f32 %v8773_v27, %v6853_v35  ;;  %v4502_v38 = vpop.f32.mrb[127].mxu1  ;;  %v4664_v29 = vmax.f32 %v4508_v51, 0.0 }
 0x481   :  { %v8801_v54 = vsel %vm6051_vm8, %v6031_v62, %v6050_v1  ;;  %v4503_v42 = vadd.f32 %v8773_v27, %v4502_v38  ;;  %v4662_v9 = vmax.f32 %v4500_v13, 0.0 }
 0x482   :  { %v4665_v2 = vmax.f32 %v4511_v46, 0.0 }
 0x483   :  { %v4663_v39 = vmax.f32 %v4503_v42, 0.0 }
 0x484   :  { %v4733_v63 = vpack.c.bf16 %v4665_v2, %v4664_v29 }
 0x485   :  { %v4732_v60 = vpack.c.bf16 %v4663_v39, %v4662_v9 }
 0x486   :  { %v6856_v49 = vpop.f32.mrb[128].mxu1 }
 0x487   :  { %v4524_v41 = vadd.f32 %v8773_v27, %v6856_v49  ;;  %6986 = vmatprep.mubr.msk.bf16.mxu0 %vm3808_vm2, %v4732_v60  ;;  %v4515_v50 = vpop.f32.mrb[129].mxu1 }
 0x488   :  { %v4516_v32 = vadd.f32 %v8773_v27, %v4515_v50  ;;  %6987 = vmatmul.mubr.msk.bf16.gmra.mrb[128].mxu0 %vm3808_vm2, %v4733_v63  ;;  %v6857_v48 = vpop.f32.mrb[130].mxu1 }
 0x489   :  { %v4527_v0 = vadd.f32 %v8773_v27, %v6857_v48  ;;  %v4518_v15 = vpop.f32.mrb[131].mxu1  ;;  %v4668_v17 = vmax.f32 %v4524_v41, 0.0 }
 0x48a   :  { %v4519_v57 = vadd.f32 %v8773_v27, %v4518_v15  ;;  %v4666_v58 = vmax.f32 %v4516_v32, 0.0 }
 0x48b   :  { %v4669_v44 = vmax.f32 %v4527_v0, 0.0 }
 0x48c   :  { %v4667_v23 = vmax.f32 %v4519_v57, 0.0 }
 0x48d   :  { %v4735_v40 = vpack.c.bf16 %v4669_v44, %v4668_v17 }
 0x48e   :  { %v4734_v5 = vpack.c.bf16 %v4667_v23, %v4666_v58 }
 0x490   :  { %6990 = vmatprep.mubr.msk.bf16.mxu0 %vm3808_vm2, %v4734_v5 }
 0x491   :  { %6991 = vmatmul.mubr.msk.bf16.gmra.mrb[132].mxu0 %vm3808_vm2, %v4735_v40 }
 0x492   :  { %v6860_v30 = vpop.f32.mrb[132].mxu1 }
 0x493   :  { %v4540_v43 = vadd.f32 %v8773_v27, %v6860_v30  ;;  %v4531_v19 = vpop.f32.mrb[133].mxu1 }
 0x494   :  { %v4532_v26 = vadd.f32 %v8773_v27, %v4531_v19  ;;  %v6861_v45 = vpop.f32.mrb[134].mxu1 }
 0x495   :  { %v4543_v4 = vadd.f32 %v8773_v27, %v6861_v45  ;;  %v4534_v59 = vpop.f32.mrb[135].mxu1  ;;  %v4672_v36 = vmax.f32 %v4540_v43, 0.0 }
 0x496   :  { %v4535_v55 = vadd.f32 %v8773_v27, %v4534_v59  ;;  %v4670_v1 = vmax.f32 %v4532_v26, 0.0 }
 0x497   :  { %v4673_v20 = vmax.f32 %v4543_v4, 0.0 }
 0x498   :  { %v4671_v37 = vmax.f32 %v4535_v55, 0.0 }
 0x499   :  { %v4737_v34 = vpack.c.bf16 %v4673_v20, %v4672_v36 }
 0x49a   :  { %v4736_v53 = vpack.c.bf16 %v4671_v37, %v4670_v1 }
 0x49c   :  { %6994 = vmatprep.mubr.msk.bf16.mxu0 %vm3808_vm2, %v4736_v53 }
 0x49d   :  { %6995 = vmatmul.mubr.msk.bf16.gmra.mrb[136].mxu0 %vm3808_vm2, %v4737_v34 }
 0x49e   :  { %7018 = vmatprep.mubr.msk.bf16.mxu0 %vm7196_vm1, %v7195_v6 }
 0x4a4   :  { %v6928_v27 = vpop.f32.mrb[68].mxu0 }
 0x4a5   :  { %v5227_v61 = vpop.f32.mrb[69].mxu0  ;;  %v5236_v14 = vadd.f32 %v8827_v7, %v6928_v27 }
 0x4a6   :  { %v5228_v21 = vadd.f32 %v8827_v7, %v5227_v61  ;;  %v6929_v8 = vpop.f32.mrb[70].mxu0 }
 0x4a7   :  { %v5230_v56 = vpop.f32.mrb[71].mxu0  ;;  %v5239_v52 = vadd.f32 %v8827_v7, %v6929_v8  ;;  %v5572_v3 = vmax.f32 %v5236_v14, 0.0 }
 0x4a8   :  { %v5570_v28 = vmax.f32 %v5228_v21, 0.0  ;;  %v5231_v12 = vadd.f32 %v8827_v7, %v5230_v56 }
 0x4a9   :  { %v5573_v10 = vmax.f32 %v5239_v52, 0.0  ;;  %v5792_v25 = vsel %vm3808_vm2, %v5572_v3, 0.0 }
 0x4aa   :  { %v5571_v33 = vmax.f32 %v5231_v12, 0.0  ;;  %v5789_v24 = vsel %vm3808_vm2, %v5570_v28, 0.0 }
 0x4ab   :  { %v5794_v46 = vsel %vm3808_vm2, %v5573_v10, 0.0 }
 0x4ac   :  { %v5790_v47 = vsel %vm3808_vm2, %v5571_v33, 0.0  ;;  %v6932_v16 = vpop.f32.mrb[72].mxu0 }
 0x4ad   :  { %v5791_v31 = vadd.f32 %v5790_v47, %v5789_v24  ;;  %v5243_v18 = vpop.f32.mrb[73].mxu0  ;;  %v5252_v51 = vadd.f32 %v8827_v7, %v6932_v16 }
 0x4ae   :  { %v5244_v11 = vadd.f32 %v8827_v7, %v5243_v18  ;;  %v6933_v62 = vpop.f32.mrb[74].mxu0 }
 0x4af   :  { %v5793_v13 = vadd.f32 %v5792_v25, %v5791_v31  ;;  %v5246_v35 = vpop.f32.mrb[75].mxu0  ;;  %v5255_v42 = vadd.f32 %v8827_v7, %v6933_v62  ;;  %v5576_v9 = vmax.f32 %v5252_v51, 0.0 }
 0x4b0   :  { %v5574_v38 = vmax.f32 %v5244_v11, 0.0  ;;  %v5247_v29 = vadd.f32 %v8827_v7, %v5246_v35 }
 0x4b1   :  { %v5795_v2 = vadd.f32 %v5794_v46, %v5793_v13  ;;  %v5577_v49 = vmax.f32 %v5255_v42, 0.0  ;;  %v5800_v0 = vsel %vm3808_vm2, %v5576_v9, 0.0 }
 0x4b2   :  { %v5796_v39 = vsel %vm3808_vm2, %v5574_v38, 0.0  ;;  %v5575_v63 = vmax.f32 %v5247_v29, 0.0 }
 0x4b3   :  { %v5797_v60 = vadd.f32 %v5796_v39, %v5795_v2  ;;  %v5802_v23 = vsel %vm3808_vm2, %v5577_v49, 0.0 }
 0x4b4   :  { %v5798_v41 = vsel %vm3808_vm2, %v5575_v63, 0.0  ;;  %v6936_v50 = vpop.f32.mrb[76].mxu0 }
 0x4b5   :  { %v5799_v32 = vadd.f32 %v5798_v41, %v5797_v60  ;;  %v5259_v48 = vpop.f32.mrb[77].mxu0  ;;  %v5268_v15 = vadd.f32 %v8827_v7, %v6936_v50 }
 0x4b6   :  { %v5260_v57 = vadd.f32 %v8827_v7, %v5259_v48  ;;  %v6937_v17 = vpop.f32.mrb[78].mxu0 }
 0x4b7   :  { %v5801_v44 = vadd.f32 %v5800_v0, %v5799_v32  ;;  %v5262_v58 = vpop.f32.mrb[79].mxu0  ;;  %v5271_v5 = vadd.f32 %v8827_v7, %v6937_v17  ;;  %v5580_v19 = vmax.f32 %v5268_v15, 0.0 }
 0x4b8   :  { %v5578_v40 = vmax.f32 %v5260_v57, 0.0  ;;  %v5263_v30 = vadd.f32 %v8827_v7, %v5262_v58 }
 0x4b9   :  { %v5803_v43 = vadd.f32 %v5802_v23, %v5801_v44  ;;  %v5581_v59 = vmax.f32 %v5271_v5, 0.0  ;;  %v5813_v34 = vsel %vm3808_vm2, %v5580_v19, 0.0 }
 0x4ba   :  { %v5579_v26 = vmax.f32 %v5263_v30, 0.0  ;;  %v5810_v4 = vsel %vm3808_vm2, %v5578_v40, 0.0 }
 0x4bb   :  { %v5804_v45 = vrot.slane %v5803_v43, 4  ;;  %v5815_v8 = vsel %vm3808_vm2, %v5581_v59, 0.0 }
 0x4bc   :  { %v5811_v55 = vsel %vm3808_vm2, %v5579_v26, 0.0  ;;  %v6940_v36 = vpop.f32.mrb[80].mxu0 }
 0x4bd   :  { %v5805_v20 = vadd.f32 %v5804_v45, %v5803_v43  ;;  %v5812_v1 = vadd.f32 %v5811_v55, %v5810_v4  ;;  %v5275_v37 = vpop.f32.mrb[81].mxu0  ;;  %v5284_v53 = vadd.f32 %v8827_v7, %v6940_v36 }
 0x4be   :  { %v5276_v22 = vadd.f32 %v8827_v7, %v5275_v37  ;;  %v6941_v27 = vpop.f32.mrb[82].mxu0 }
 0x4bf   :  { %v5806_v61 = vrot.slane %v5805_v20, 2  ;;  %v5814_v14 = vadd.f32 %v5813_v34, %v5812_v1  ;;  %v5278_v21 = vpop.f32.mrb[83].mxu0  ;;  %v5287_v28 = vadd.f32 %v8827_v7, %v6941_v27  ;;  %v5584_v33 = vmax.f32 %v5284_v53, 0.0 }
 0x4c0   :  { %v5582_v56 = vmax.f32 %v5276_v22, 0.0  ;;  %v5279_v52 = vadd.f32 %v8827_v7, %v5278_v21 }
 0x4c1   :  { %v5807_v12 = vadd.f32 %v5806_v61, %v5805_v20  ;;  %v5816_v3 = vadd.f32 %v5815_v8, %v5814_v14  ;;  %v5585_v31 = vmax.f32 %v5287_v28, 0.0  ;;  %v5821_v13 = vsel %vm3808_vm2, %v5584_v33, 0.0 }
 0x4c2   :  { %v5817_v24 = vsel %vm3808_vm2, %v5582_v56, 0.0  ;;  %v5583_v10 = vmax.f32 %v5279_v52, 0.0 }
 0x4c3   :  { %v5808_v47 = vrot.slane %v5807_v12, 1  ;;  %v5818_v16 = vadd.f32 %v5817_v24, %v5816_v3  ;;  %v5823_v9 = vsel %vm3808_vm2, %v5585_v31, 0.0 }
 0x4c4   :  { %v5819_v18 = vsel %vm3808_vm2, %v5583_v10, 0.0  ;;  %v6944_v25 = vpop.f32.mrb[84].mxu0 }
 0x4c5   :  { %v5809_v51 = vadd.f32 %v5808_v47, %v5807_v12  ;;  %v5820_v11 = vadd.f32 %v5819_v18, %v5818_v16  ;;  %v5291_v62 = vpop.f32.mrb[85].mxu0  ;;  %v5300_v35 = vadd.f32 %v8827_v7, %v6944_v25 }
 0x4c6   :  { %v5292_v46 = vadd.f32 %v8827_v7, %v5291_v62  ;;  %v6945_v38 = vpop.f32.mrb[86].mxu0 }
 0x4c7   :  { %v5985_v42 = vpack.c.bf16 %v5809_v51, %v5809_v51  ;;  %v5822_v29 = vadd.f32 %v5821_v13, %v5820_v11  ;;  %v5294_v2 = vpop.f32.mrb[87].mxu0  ;;  %v5303_v63 = vadd.f32 %v8827_v7, %v6945_v38  ;;  %v5588_v50 = vmax.f32 %v5300_v35, 0.0 }
 0x4c8   :  { %v5586_v39 = vmax.f32 %v5292_v46, 0.0  ;;  %v5295_v60 = vadd.f32 %v8827_v7, %v5294_v2 }
 0x4c9   :  { %v6032_v49 = vunpack.c.l.b16 %v5985_v42  ;;  %v5824_v41 = vadd.f32 %v5823_v9, %v5822_v29  ;;  %v5589_v57 = vmax.f32 %v5303_v63, 0.0  ;;  %v5834_v40 = vsel %vm3808_vm2, %v5588_v50, 0.0 }
 0x4ca   :  { %v5587_v32 = vmax.f32 %v5295_v60, 0.0  ;;  %v5831_v15 = vsel %vm3808_vm2, %v5586_v39, 0.0 }
 0x4cb   :  { %v5825_v48 = vrot.slane %v5824_v41, 4  ;;  %v8867_v0 = vsel %vm6053_vm9, %v6032_v49, %v8801_v54  ;;  %v5836_v54 = vsel %vm3808_vm2, %v5589_v57, 0.0 }
 0x4cc   :  { %v5832_v17 = vsel %vm3808_vm2, %v5587_v32, 0.0  ;;  %v6948_v44 = vpop.f32.mrb[88].mxu0 }
 0x4cd   :  { %v5833_v58 = vadd.f32 %v5832_v17, %v5831_v15  ;;  %v5307_v23 = vpop.f32.mrb[89].mxu0  ;;  %v5316_v5 = vadd.f32 %v8827_v7, %v6948_v44  ;;  %v5826_v19 = vadd.f32 %v5825_v48, %v5824_v41 }
 0x4ce   :  { %v5308_v30 = vadd.f32 %v8827_v7, %v5307_v23  ;;  %v6949_v43 = vpop.f32.mrb[90].mxu0 }
 0x4cf   :  { %v5835_v26 = vadd.f32 %v5834_v40, %v5833_v58  ;;  %v5310_v45 = vpop.f32.mrb[91].mxu0  ;;  %v5319_v59 = vadd.f32 %v8827_v7, %v6949_v43  ;;  %v5592_v20 = vmax.f32 %v5316_v5, 0.0  ;;  %v5827_v34 = vrot.slane %v5826_v19, 2 }
 0x4d0   :  { %v5590_v4 = vmax.f32 %v5308_v30, 0.0  ;;  %v5311_v55 = vadd.f32 %v8827_v7, %v5310_v45  ;;  %v7063_v30 = vld [vmem:[%s9020_s6 + $0x18] sm:$0xff]  }
 0x4d1   :  { %v5837_v36 = vadd.f32 %v5836_v54, %v5835_v26  ;;  %v5593_v22 = vmax.f32 %v5319_v59, 0.0  ;;  %v5842_v8 = vsel %vm3808_vm2, %v5592_v20, 0.0  ;;  %v5828_v12 = vadd.f32 %v5827_v34, %v5826_v19  ;;  %7005 = vmatpush3.bf16.msra.mxu1 %v7063_v30 }
 0x4d2   :  { %v5838_v1 = vsel %vm3808_vm2, %v5590_v4, 0.0  ;;  %v5591_v37 = vmax.f32 %v5311_v55, 0.0 }
 0x4d3   :  { %v5839_v53 = vadd.f32 %v5838_v1, %v5837_v36  ;;  %v5844_v24 = vsel %vm3808_vm2, %v5593_v22, 0.0  ;;  %v5829_v11 = vrot.slane %v5828_v12, 1 }
 0x4d4   :  { %v5840_v27 = vsel %vm3808_vm2, %v5591_v37, 0.0  ;;  %v6952_v61 = vpop.f32.mrb[92].mxu0 }
 0x4d5   :  { %v5841_v14 = vadd.f32 %v5840_v27, %v5839_v53  ;;  %v5323_v21 = vpop.f32.mrb[93].mxu0  ;;  %v5332_v56 = vadd.f32 %v8827_v7, %v6952_v61  ;;  %v5830_v41 = vadd.f32 %v5829_v11, %v5828_v12 }
 0x4d6   :  { %v5324_v28 = vadd.f32 %v8827_v7, %v5323_v21  ;;  %v6953_v52 = vpop.f32.mrb[94].mxu0 }
 0x4d7   :  { %v5843_v3 = vadd.f32 %v5842_v8, %v5841_v14  ;;  %v5326_v33 = vpop.f32.mrb[95].mxu0  ;;  %v5335_v47 = vadd.f32 %v8827_v7, %v6953_v52  ;;  %v5596_v18 = vmax.f32 %v5332_v56, 0.0  ;;  %v5986_v43 = vpack.c.bf16 %v5830_v41, %v5830_v41 }
 0x4d8   :  { %v5594_v10 = vmax.f32 %v5324_v28, 0.0  ;;  %v5327_v16 = vadd.f32 %v8827_v7, %v5326_v33 }
 0x4d9   :  { %v5845_v31 = vadd.f32 %v5844_v24, %v5843_v3  ;;  %v5597_v13 = vmax.f32 %v5335_v47, 0.0  ;;  %v5855_v29 = vsel %vm3808_vm2, %v5596_v18, 0.0  ;;  %v6033_v53 = vunpack.c.l.b16 %v5986_v43 }
 0x4da   :  { %v5595_v25 = vmax.f32 %v5327_v16, 0.0  ;;  %v5852_v62 = vsel %vm3808_vm2, %v5594_v10, 0.0 }
 0x4db   :  { %v5846_v51 = vrot.slane %v5845_v31, 4  ;;  %v5857_v50 = vsel %vm3808_vm2, %v5597_v13, 0.0 }
 0x4dc   :  { %v5853_v35 = vsel %vm3808_vm2, %v5595_v25, 0.0 }
 0x4dd   :  { %v5847_v46 = vadd.f32 %v5846_v51, %v5845_v31  ;;  %v5854_v38 = vadd.f32 %v5853_v35, %v5852_v62  ;;  %v6956_v42 = vpop.f32.mrb[96].mxu0 }
 0x4de   :  { %v5339_v2 = vpop.f32.mrb[97].mxu0  ;;  %v5348_v63 = vadd.f32 %v8827_v7, %v6956_v42 }
 0x4df   :  { %v5848_v9 = vrot.slane %v5847_v46, 2  ;;  %v5856_v39 = vadd.f32 %v5855_v29, %v5854_v38  ;;  %v5340_v60 = vadd.f32 %v8827_v7, %v5339_v2  ;;  %v6957_v49 = vpop.f32.mrb[98].mxu0 }
 0x4e0   :  { %v5351_v32 = vadd.f32 %v8827_v7, %v6957_v49  ;;  %v5342_v48 = vpop.f32.mrb[99].mxu0  ;;  %v5600_v23 = vmax.f32 %v5348_v63, 0.0 }
 0x4e1   :  { %v5849_v15 = vadd.f32 %v5848_v9, %v5847_v46  ;;  %v5598_v57 = vmax.f32 %v5340_v60, 0.0  ;;  %v5858_v17 = vadd.f32 %v5857_v50, %v5856_v39  ;;  %v5343_v44 = vadd.f32 %v8827_v7, %v5342_v48 }
 0x4e2   :  { %v5601_v26 = vmax.f32 %v5351_v32, 0.0  ;;  %v5863_v20 = vsel %vm3808_vm2, %v5600_v23, 0.0 }
 0x4e3   :  { %v5850_v58 = vrot.slane %v5849_v15, 1  ;;  %v5859_v40 = vsel %vm3808_vm2, %v5598_v57, 0.0  ;;  %v5599_v5 = vmax.f32 %v5343_v44, 0.0 }
 0x4e4   :  { %v5860_v19 = vadd.f32 %v5859_v40, %v5858_v17  ;;  %v5865_v22 = vsel %vm3808_vm2, %v5601_v26, 0.0 }
 0x4e5   :  { %v5851_v45 = vadd.f32 %v5850_v58, %v5849_v15  ;;  %v5861_v54 = vsel %vm3808_vm2, %v5599_v5, 0.0 }
 0x4e6   :  { %v6960_v4 = vpop.f32.mrb[100].mxu0  ;;  %v5862_v59 = vadd.f32 %v5861_v54, %v5860_v19 }
 0x4e7   :  { %v5355_v55 = vpop.f32.mrb[101].mxu0  ;;  %v5987_v36 = vpack.c.bf16 %v5851_v45, %v5851_v45  ;;  %v5364_v1 = vadd.f32 %v8827_v7, %v6960_v4 }
 0x4e8   :  { %v5356_v37 = vadd.f32 %v8827_v7, %v5355_v55  ;;  %v6961_v34 = vpop.f32.mrb[102].mxu0  ;;  %v5864_v27 = vadd.f32 %v5863_v20, %v5862_v59  ;;  %v7064_v20 = vld [vmem:[#allocation8] sm:$0xff]  }
 0x4e9   :  { %v5358_v61 = vpop.f32.mrb[103].mxu0  ;;  %v6034_v14 = vunpack.c.l.b16 %v5987_v36  ;;  %v5367_v8 = vadd.f32 %v8827_v7, %v6961_v34  ;;  %v5604_v12 = vmax.f32 %v5364_v1, 0.0  ;;  %7011 = vmatpush3.bf16.msra.mxu0 %v7064_v20 }
 0x4ea   :  { %v5602_v21 = vmax.f32 %v5356_v37, 0.0  ;;  %v5359_v56 = vadd.f32 %v8827_v7, %v5358_v61  ;;  %v5866_v28 = vadd.f32 %v5865_v22, %v5864_v27  ;;  %7012 = vmatprep.subr.bf16.mxu0 %v7195_v6 }
 0x4eb   :  { %v6055_v52 = vsel %vm6041_vm3, %v6034_v14, %v6033_v53  ;;  %v5605_v10 = vmax.f32 %v5367_v8, 0.0  ;;  %v5876_v51 = vsel %vm3808_vm2, %v5604_v12, 0.0 }
 0x4ec   :  { %v5603_v3 = vmax.f32 %v5359_v56, 0.0  ;;  %v5867_v33 = vrot.slane %v5866_v28, 4  ;;  %v5873_v24 = vsel %vm3808_vm2, %v5602_v21, 0.0 }
 0x4ed   :  { %v5878_v42 = vsel %vm3808_vm2, %v5605_v10, 0.0 }
 0x4ee   :  { %v5874_v47 = vsel %vm3808_vm2, %v5603_v3, 0.0  ;;  %v6964_v16 = vpop.f32.mrb[104].mxu0  ;;  %v5868_v31 = vadd.f32 %v5867_v33, %v5866_v28 }
 0x4ef   :  { %v5875_v18 = vadd.f32 %v5874_v47, %v5873_v24  ;;  %v5371_v25 = vpop.f32.mrb[105].mxu0  ;;  %v5380_v11 = vadd.f32 %v8827_v7, %v6964_v16 }
 0x4f0   :  { %v5372_v62 = vadd.f32 %v8827_v7, %v5371_v25  ;;  %v6965_v13 = vpop.f32.mrb[106].mxu0  ;;  %v5869_v35 = vrot.slane %v5868_v31, 2 }
 0x4f1   :  { %v5877_v46 = vadd.f32 %v5876_v51, %v5875_v18  ;;  %v5374_v38 = vpop.f32.mrb[107].mxu0  ;;  %v5383_v2 = vadd.f32 %v8827_v7, %v6965_v13  ;;  %v5608_v60 = vmax.f32 %v5380_v11, 0.0 }
 0x4f2   :  { %v5606_v29 = vmax.f32 %v5372_v62, 0.0  ;;  %v5375_v9 = vadd.f32 %v8827_v7, %v5374_v38  ;;  %v5870_v39 = vadd.f32 %v5869_v35, %v5868_v31 }
 0x4f3   :  { %v5879_v63 = vadd.f32 %v5878_v42, %v5877_v46  ;;  %v5609_v48 = vmax.f32 %v5383_v2, 0.0  ;;  %v5884_v58 = vsel %vm3808_vm2, %v5608_v60, 0.0 }
 0x4f4   :  { %v5880_v49 = vsel %vm3808_vm2, %v5606_v29, 0.0  ;;  %v5607_v41 = vmax.f32 %v5375_v9, 0.0  ;;  %v5871_v50 = vrot.slane %v5870_v39, 1 }
 0x4f5   :  { %v5881_v32 = vadd.f32 %v5880_v49, %v5879_v63  ;;  %v5886_v26 = vsel %vm3808_vm2, %v5609_v48, 0.0 }
 0x4f6   :  { %v5882_v15 = vsel %vm3808_vm2, %v5607_v41, 0.0  ;;  %v5872_v57 = vadd.f32 %v5871_v50, %v5870_v39  ;;  %v6968_v44 = vpop.f32.mrb[108].mxu0 }
 0x4f7   :  { %v5883_v17 = vadd.f32 %v5882_v15, %v5881_v32  ;;  %v5387_v23 = vpop.f32.mrb[109].mxu0  ;;  %v5396_v30 = vadd.f32 %v8827_v7, %v6968_v44 }
 0x4f8   :  { %v5988_v40 = vpack.c.bf16 %v5872_v57, %v5872_v57  ;;  %v5388_v43 = vadd.f32 %v8827_v7, %v5387_v23  ;;  %v6969_v19 = vpop.f32.mrb[110].mxu0 }
 0x4f9   :  { %v5885_v5 = vadd.f32 %v5884_v58, %v5883_v17  ;;  %v5399_v45 = vadd.f32 %v8827_v7, %v6969_v19  ;;  %v5390_v54 = vpop.f32.mrb[111].mxu0  ;;  %v5612_v34 = vmax.f32 %v5396_v30, 0.0  ;;  %v7065_v17 = vld [vmem:[#allocation8 + $0x8] sm:$0xff]   ;;  %v7066_v58 = vld [vmem:[#allocation8 + $0x10] sm:$0xff]  }
 0x4fa   :  { %v6035_v4 = vunpack.c.l.b16 %v5988_v40  ;;  %v5610_v55 = vmax.f32 %v5388_v43, 0.0  ;;  %v5391_v36 = vadd.f32 %v8827_v7, %v5390_v54  ;;  %7013 = vmatpush3.bf16.msra.mxu0 %v7065_v17 }
 0x4fb   :  { %v5887_v59 = vadd.f32 %v5886_v26, %v5885_v5  ;;  %v5613_v22 = vmax.f32 %v5399_v45, 0.0  ;;  %v5897_v12 = vsel %vm3808_vm2, %v5612_v34, 0.0  ;;  %7014 = vmatprep.subr.bf16.mxu0 %v7195_v6  ;;  %v7067_v5 = vld [vmem:[#allocation8 + $0x18] sm:$0xff]  }
 0x4fc   :  { %v6056_v1 = vsel %vm6043_vm4, %v6035_v4, %v6055_v52  ;;  %v5611_v53 = vmax.f32 %v5391_v36, 0.0  ;;  %v5894_v61 = vsel %vm3808_vm2, %v5610_v55, 0.0 }
 0x4fd   :  { %v5888_v37 = vrot.slane %v5887_v59, 4  ;;  %v5899_v24 = vsel %vm3808_vm2, %v5613_v22, 0.0 }
 0x4fe   :  { %v5895_v14 = vsel %vm3808_vm2, %v5611_v53, 0.0  ;;  %v6972_v21 = vpop.f32.mrb[112].mxu0  ;;  %7015 = vmatpush3.bf16.msra.mxu0 %v7066_v58 }
 0x4ff   :  { %v5889_v27 = vadd.f32 %v5888_v37, %v5887_v59  ;;  %v5896_v8 = vadd.f32 %v5895_v14, %v5894_v61  ;;  %v5403_v56 = vpop.f32.mrb[113].mxu0  ;;  %v5412_v52 = vadd.f32 %v8827_v7, %v6972_v21  ;;  %7016 = vmatprep.subr.bf16.mxu0 %v7195_v6 }
 0x500   :  { %v5404_v3 = vadd.f32 %v8827_v7, %v5403_v56  ;;  %v6973_v33 = vpop.f32.mrb[114].mxu0 }
 0x501   :  { %v5890_v28 = vrot.slane %v5889_v27, 2  ;;  %v5898_v10 = vadd.f32 %v5897_v12, %v5896_v8  ;;  %v5406_v47 = vpop.f32.mrb[115].mxu0  ;;  %v5415_v18 = vadd.f32 %v8827_v7, %v6973_v33  ;;  %v5616_v62 = vmax.f32 %v5412_v52, 0.0 }
 0x502   :  { %v5614_v31 = vmax.f32 %v5404_v3, 0.0  ;;  %v5407_v25 = vadd.f32 %v8827_v7, %v5406_v47  ;;  %7017 = vmatpush3.bf16.msra.mxu0 %v7067_v5 }
 0x503   :  { %v5891_v16 = vadd.f32 %v5890_v28, %v5889_v27  ;;  %v5900_v51 = vadd.f32 %v5899_v24, %v5898_v10  ;;  %v5617_v42 = vmax.f32 %v5415_v18, 0.0  ;;  %v5905_v39 = vsel %vm3808_vm2, %v5616_v62, 0.0 }
 0x504   :  { %v5901_v13 = vsel %vm3808_vm2, %v5614_v31, 0.0  ;;  %v5615_v35 = vmax.f32 %v5407_v25, 0.0 }
 0x505   :  { %v5892_v11 = vrot.slane %v5891_v16, 1  ;;  %v5902_v46 = vadd.f32 %v5901_v13, %v5900_v51  ;;  %v5907_v49 = vsel %vm3808_vm2, %v5617_v42, 0.0 }
 0x506   :  { %v5903_v29 = vsel %vm3808_vm2, %v5615_v35, 0.0 }
 0x507   :  { %v5893_v38 = vadd.f32 %v5892_v11, %v5891_v16  ;;  %v5904_v2 = vadd.f32 %v5903_v29, %v5902_v46 }
 0x509   :  { %v5989_v9 = vpack.c.bf16 %v5893_v38, %v5893_v38  ;;  %v5906_v63 = vadd.f32 %v5905_v39, %v5904_v2 }
 0x50b   :  { %v6036_v60 = vunpack.c.l.b16 %v5989_v9  ;;  %v5908_v41 = vadd.f32 %v5907_v49, %v5906_v63 }
 0x50d   :  { %v6057_v50 = vsel %vm6045_vm5, %v6036_v60, %v6056_v1  ;;  %v5909_v32 = vrot.slane %v5908_v41, 4 }
 0x50f   :  { %v5910_v48 = vadd.f32 %v5909_v32, %v5908_v41 }
 0x511   :  { %v5911_v15 = vrot.slane %v5910_v48, 2 }
 0x513   :  { %v5912_v57 = vadd.f32 %v5911_v15, %v5910_v48 }
 0x515   :  { %v5913_v44 = vrot.slane %v5912_v57, 1 }
 0x517   :  { %v5914_v23 = vadd.f32 %v5913_v44, %v5912_v57 }
 0x519   :  { %v5990_v40 = vpack.c.bf16 %v5914_v23, %v5914_v23 }
 0x51b   :  { %v6037_v30 = vunpack.c.l.b16 %v5990_v40 }
 0x51d   :  { %v8939_v43 = vsel %vm6047_vm6, %v6037_v30, %v6057_v50 }
 0x53a   :  { %v6976_v19 = vpop.f32.mrb[116].mxu0 }
 0x53b   :  { %v5419_v26 = vpop.f32.mrb[117].mxu0  ;;  %v5428_v45 = vadd.f32 %v8827_v7, %v6976_v19 }
 0x53c   :  { %v5420_v54 = vadd.f32 %v8827_v7, %v5419_v26  ;;  %v6977_v4 = vpop.f32.mrb[118].mxu0 }
 0x53d   :  { %v5422_v59 = vpop.f32.mrb[119].mxu0  ;;  %v5431_v36 = vadd.f32 %v8827_v7, %v6977_v4  ;;  %v5620_v1 = vmax.f32 %v5428_v45, 0.0 }
 0x53e   :  { %v5618_v55 = vmax.f32 %v5420_v54, 0.0  ;;  %v5423_v20 = vadd.f32 %v8827_v7, %v5422_v59 }
 0x53f   :  { %v5621_v34 = vmax.f32 %v5431_v36, 0.0  ;;  %v5918_v61 = vsel %vm3808_vm2, %v5620_v1, 0.0 }
 0x540   :  { %v5619_v6 = vmax.f32 %v5423_v20, 0.0  ;;  %v5915_v37 = vsel %vm3808_vm2, %v5618_v55, 0.0 }
 0x541   :  { %v5920_v12 = vsel %vm3808_vm2, %v5621_v34, 0.0 }
 0x542   :  { %v5916_v53 = vsel %vm3808_vm2, %v5619_v6, 0.0  ;;  %v6980_v27 = vpop.f32.mrb[120].mxu0 }
 0x543   :  { %v5917_v22 = vadd.f32 %v5916_v53, %v5915_v37  ;;  %v5435_v14 = vpop.f32.mrb[121].mxu0  ;;  %v5444_v8 = vadd.f32 %v8827_v7, %v6980_v27 }
 0x544   :  { %v5436_v56 = vadd.f32 %v8827_v7, %v5435_v14  ;;  %v6981_v28 = vpop.f32.mrb[122].mxu0 }
 0x545   :  { %v5919_v21 = vadd.f32 %v5918_v61, %v5917_v22  ;;  %v5438_v52 = vpop.f32.mrb[123].mxu0  ;;  %v5447_v24 = vadd.f32 %v8827_v7, %v6981_v28  ;;  %v5624_v47 = vmax.f32 %v5444_v8, 0.0 }
 0x546   :  { %v5622_v3 = vmax.f32 %v5436_v56, 0.0  ;;  %v5439_v10 = vadd.f32 %v8827_v7, %v5438_v52 }
 0x547   :  { %v5921_v33 = vadd.f32 %v5920_v12, %v5919_v21  ;;  %v5625_v25 = vmax.f32 %v5447_v24, 0.0  ;;  %v5926_v62 = vsel %vm3808_vm2, %v5624_v47, 0.0 }
 0x548   :  { %v5922_v16 = vsel %vm3808_vm2, %v5622_v3, 0.0  ;;  %v5623_v31 = vmax.f32 %v5439_v10, 0.0 }
 0x549   :  { %v5923_v18 = vadd.f32 %v5922_v16, %v5921_v33  ;;  %v5928_v35 = vsel %vm3808_vm2, %v5625_v25, 0.0 }
 0x54a   :  { %v5924_v51 = vsel %vm3808_vm2, %v5623_v31, 0.0 }
 0x54b   :  { %v5925_v11 = vadd.f32 %v5924_v51, %v5923_v18 }
 0x54d   :  { %v5927_v13 = vadd.f32 %v5926_v62, %v5925_v11 }
 0x54f   :  { %v6984_v46 = vpop.f32.mrb[124].mxu0  ;;  %v5929_v38 = vadd.f32 %v5928_v35, %v5927_v13 }
 0x550   :  { %v5451_v42 = vpop.f32.mrb[125].mxu0  ;;  %v5460_v29 = vadd.f32 %v8827_v7, %v6984_v46 }
 0x551   :  { %v5452_v2 = vadd.f32 %v8827_v7, %v5451_v42  ;;  %v6985_v9 = vpop.f32.mrb[126].mxu0  ;;  %v5930_v39 = vrot.slane %v5929_v38, 4 }
 0x552   :  { %v5454_v63 = vpop.f32.mrb[127].mxu0  ;;  %v5463_v49 = vadd.f32 %v8827_v7, %v6985_v9  ;;  %v5628_v32 = vmax.f32 %v5460_v29, 0.0 }
 0x553   :  { %v5626_v60 = vmax.f32 %v5452_v2, 0.0  ;;  %v5455_v41 = vadd.f32 %v8827_v7, %v5454_v63  ;;  %v5931_v50 = vadd.f32 %v5930_v39, %v5929_v38 }
 0x554   :  { %v5629_v17 = vmax.f32 %v5463_v49, 0.0  ;;  %v5939_v40 = vsel %vm3808_vm2, %v5628_v32, 0.0 }
 0x555   :  { %v5627_v48 = vmax.f32 %v5455_v41, 0.0  ;;  %v5932_v15 = vrot.slane %v5931_v50, 2  ;;  %v5936_v57 = vsel %vm3808_vm2, %v5626_v60, 0.0 }
 0x556   :  { %v5941_v19 = vsel %vm3808_vm2, %v5629_v17, 0.0 }
 0x557   :  { %v5937_v44 = vsel %vm3808_vm2, %v5627_v48, 0.0  ;;  %v5933_v58 = vadd.f32 %v5932_v15, %v5931_v50 }
 0x558   :  { %v5938_v23 = vadd.f32 %v5937_v44, %v5936_v57 }
 0x559   :  { %v5934_v5 = vrot.slane %v5933_v58, 1 }
 0x55a   :  { %v5940_v30 = vadd.f32 %v5939_v40, %v5938_v23 }
 0x55b   :  { %v6988_v26 = vpop.f32.mrb[128].mxu0  ;;  %v5935_v45 = vadd.f32 %v5934_v5, %v5933_v58 }
 0x55c   :  { %v5467_v54 = vpop.f32.mrb[129].mxu0  ;;  %v5942_v4 = vadd.f32 %v5941_v19, %v5940_v30  ;;  %v5476_v59 = vadd.f32 %v8827_v7, %v6988_v26 }
 0x55d   :  { %v5468_v55 = vadd.f32 %v8827_v7, %v5467_v54  ;;  %v6989_v36 = vpop.f32.mrb[130].mxu0  ;;  %v5991_v20 = vpack.c.bf16 %v5935_v45, %v5935_v45 }
 0x55e   :  { %v5470_v1 = vpop.f32.mrb[131].mxu0  ;;  %v5479_v37 = vadd.f32 %v8827_v7, %v6989_v36  ;;  %v5632_v22 = vmax.f32 %v5476_v59, 0.0 }
 0x55f   :  { %v5630_v6 = vmax.f32 %v5468_v55, 0.0  ;;  %v5471_v34 = vadd.f32 %v8827_v7, %v5470_v1  ;;  %v6038_v53 = vunpack.c.l.b16 %v5991_v20 }
 0x560   :  { %v5633_v8 = vmax.f32 %v5479_v37, 0.0  ;;  %v5947_v52 = vsel %vm3808_vm2, %v5632_v22, 0.0 }
 0x561   :  { %v5943_v27 = vsel %vm3808_vm2, %v5630_v6, 0.0  ;;  %v5631_v61 = vmax.f32 %v5471_v34, 0.0  ;;  %v6059_v14 = vsel %vm6049_vm7, %v6038_v53, %v8939_v43 }
 0x562   :  { %v5944_v21 = vadd.f32 %v5943_v27, %v5942_v4  ;;  %v5949_v16 = vsel %vm3808_vm2, %v5633_v8, 0.0 }
 0x563   :  { %v5945_v56 = vsel %vm3808_vm2, %v5631_v61, 0.0 }
 0x564   :  { %v5946_v28 = vadd.f32 %v5945_v56, %v5944_v21  ;;  %v6992_v12 = vpop.f32.mrb[132].mxu0 }
 0x565   :  { %v5483_v3 = vpop.f32.mrb[133].mxu0  ;;  %v5492_v24 = vadd.f32 %v8827_v7, %v6992_v12 }
 0x566   :  { %v5948_v33 = vadd.f32 %v5947_v52, %v5946_v28  ;;  %v5484_v10 = vadd.f32 %v8827_v7, %v5483_v3  ;;  %v6993_v47 = vpop.f32.mrb[134].mxu0 }
 0x567   :  { %v5486_v31 = vpop.f32.mrb[135].mxu0  ;;  %v5495_v25 = vadd.f32 %v8827_v7, %v6993_v47  ;;  %v5636_v62 = vmax.f32 %v5492_v24, 0.0 }
 0x568   :  { %v5950_v18 = vadd.f32 %v5949_v16, %v5948_v33  ;;  %v5634_v43 = vmax.f32 %v5484_v10, 0.0  ;;  %v5487_v51 = vadd.f32 %v8827_v7, %v5486_v31 }
 0x569   :  { %v5637_v38 = vmax.f32 %v5495_v25, 0.0  ;;  %v5960_v9 = vsel %vm3808_vm2, %v5636_v62, 0.0 }
 0x56a   :  { %v5951_v11 = vrot.slane %v5950_v18, 4  ;;  %v5635_v13 = vmax.f32 %v5487_v51, 0.0  ;;  %v5957_v46 = vsel %vm3808_vm2, %v5634_v43, 0.0 }
 0x56b   :  { %v5962_v60 = vsel %vm3808_vm2, %v5637_v38, 0.0 }
 0x56c   :  { %v5952_v35 = vadd.f32 %v5951_v11, %v5950_v18  ;;  %v5958_v42 = vsel %vm3808_vm2, %v5635_v13, 0.0 }
 0x56d   :  { %v5959_v29 = vadd.f32 %v5958_v42, %v5957_v46 }
 0x56e   :  { %v5953_v2 = vrot.slane %v5952_v35, 2 }
 0x56f   :  { %v5961_v39 = vadd.f32 %v5960_v9, %v5959_v29 }
 0x570   :  { %v5954_v63 = vadd.f32 %v5953_v2, %v5952_v35  ;;  %v6996_v49 = vpop.f32.mrb[136].mxu0 }
 0x571   :  { %v5499_v41 = vpop.f32.mrb[137].mxu0  ;;  %v5963_v50 = vadd.f32 %v5962_v60, %v5961_v39  ;;  %v5508_v48 = vadd.f32 %v8827_v7, %v6996_v49 }
 0x572   :  { %v5955_v32 = vrot.slane %v5954_v63, 1  ;;  %v5500_v15 = vadd.f32 %v8827_v7, %v5499_v41  ;;  %v6997_v57 = vpop.f32.mrb[138].mxu0 }
 0x573   :  { %v5502_v17 = vpop.f32.mrb[139].mxu0  ;;  %v5511_v23 = vadd.f32 %v8827_v7, %v6997_v57  ;;  %v5640_v30 = vmax.f32 %v5508_v48, 0.0 }
 0x574   :  { %v5956_v44 = vadd.f32 %v5955_v32, %v5954_v63  ;;  %v5638_v58 = vmax.f32 %v5500_v15, 0.0  ;;  %v5503_v40 = vadd.f32 %v8827_v7, %v5502_v17 }
 0x575   :  { %v5641_v4 = vmax.f32 %v5511_v23, 0.0  ;;  %v5968_v20 = vsel %vm3808_vm2, %v5640_v30, 0.0 }
 0x576   :  { %v5992_v5 = vpack.c.bf16 %v5956_v44, %v5956_v44  ;;  %v5964_v19 = vsel %vm3808_vm2, %v5638_v58, 0.0  ;;  %v5639_v26 = vmax.f32 %v5503_v40, 0.0 }
 0x577   :  { %v5965_v45 = vadd.f32 %v5964_v19, %v5963_v50  ;;  %v5970_v6 = vsel %vm3808_vm2, %v5641_v4, 0.0 }
 0x578   :  { %v6039_v54 = vunpack.c.l.b16 %v5992_v5  ;;  %v5966_v59 = vsel %vm3808_vm2, %v5639_v26, 0.0 }
 0x579   :  { %v5967_v55 = vadd.f32 %v5966_v59, %v5965_v45 }
 0x57a   :  { %v6060_v36 = vsel %vm6051_vm8, %v6039_v54, %v6059_v14  ;;  %v6527_v14 = vld [vmem:[%s9022_s8 + $0x3] ss:$0 sm:$0xff] }
 0x57b   :  { %v5969_v1 = vadd.f32 %v5968_v20, %v5967_v55 }
 0x57d   :  { %v5971_v37 = vadd.f32 %v5970_v6, %v5969_v1 }
 0x57f   :  { %v5972_v7 = vrot.slane %v5971_v37, 4 }
 0x581   :  { %v5973_v34 = vadd.f32 %v5972_v7, %v5971_v37 }
 0x583   :  { %v5974_v53 = vrot.slane %v5973_v34, 2 }
 0x585   :  { %v5975_v22 = vadd.f32 %v5974_v53, %v5973_v34 }
 0x587   :  { %v5976_v27 = vrot.slane %v5975_v22, 1 }
 0x589   :  { %v5977_v61 = vadd.f32 %v5976_v27, %v5975_v22 }
 0x58b   :  { %v5993_v21 = vpack.c.bf16 %v5977_v61, %v5977_v61 }
 0x58d   :  { %v6040_v8 = vunpack.c.l.b16 %v5993_v21 }
 0x58f   :  { %v6061_v56 = vsel %vm6053_vm9, %v6040_v8, %v6060_v36 }
 0x590   :  { %v6062_v28 = vpack.c.b16 %v6061_v56, %v8867_v0  ;;  %v6533_v0 = vld [vmem:[%s9022_s8 + $0x4] ss:$0 sm:$0xff] }
 0x592   :  { %7007 = vmatmul.mubr.msk.bf16.vlgmr.msra.gmra.mrb[136].mxu1 %vm3808_vm2, %v6062_v28 }
 0x665   :  { %v6124_v12 = vpop.f32.mrb[136].mxu1 }
 0x666   :  { %v6125_v52 = vadd.f32 %v6527_v14, %v6124_v12  ;;  %v7008_v3 = vpop.f32.mrb[137].mxu1 }
 0x667   :  { %v6127_v33 = vpop.f32.mrb[138].mxu1 }
 0x668   :  { %v6128_v24 = vadd.f32 %v6527_v14, %v6127_v33  ;;  %v7009_v10 = vpop.f32.mrb[139].mxu1  ;;  %v6131_v47 = vmax.f32 %v6125_v52, 0.0 }
 0x66a   :  { %v6132_v16 = vmax.f32 %v6128_v24, 0.0 }
 0x66c   :  { %v6133_v31 = vpack.c.bf16 %v6132_v16, %v6131_v47 }
 0x66e   :  { %7019 = vmatmul.mubr.msk.bf16.vlgmr.msra.gmra.mrb[140].mxu0 %vm3808_vm2, %v6133_v31 }
 0x741   :  { %v6210_v18 = vpop.f32.mrb[140].mxu0 }
 0x742   :  { %v6211_v43 = vadd.f32 %v6533_v0, %v6210_v18  ;;  %v7020_v25 = vpop.f32.mrb[141].mxu0 }
 0x743   :  { %v6213_v51 = vpop.f32.mrb[142].mxu0 }
 0x744   :  { %6217 = vst [vmem:[#allocation10] sm:$0xff] %v6211_v43  ;;  %v6214_v11 = vadd.f32 %v6533_v0, %v6213_v51  ;;  %v7021_v62 = vpop.f32.mrb[143].mxu0 }
 0x746   :  { %6218 = vst [vmem:[#allocation10 + $0x8] sm:$0xff] %v6214_v11 }
 0x747   :  { %7170 = shalt.err (!%p7167_p8)
}
 0x748   :  { %s7171_s19 = scalar_lea.hbm %s9023_s9, 256 }
 0x749   :  { %p7172_p9 = scmp.ne.s32.totalorder %s9023_s9, %s7171_s19  ;;  %p7175_p10 = scmp.lt.u32.totalorder %s7171_s19, %s9023_s9 }
 0x74b   :  { %p7177_p11 = pnand %p7175_p10, %p7172_p9 }
 0x74d   :  { %7180 = shalt.err (!%p7177_p11)
}
 0x74e   :  { %s7200_s21 = smov 128   ;;  %s7201_s25 = smov 8  }
 0x74f   :  { %6230 = dma.vmem_to_hbm [thread:$0]  %s6225_s7, 256, %s9023_s9, [#allocation4], %s7200_s21, %s7200_s21, %s7201_s25  }
 0x750   :  { %7187 = dma.done.wait [#allocation4], 256  }
 0x751   :  { %7188 = vsyncadd [#allocation4], 4294967040 }
 0x752   :  { %6234 = vsyncpa [#allocation3], 1 }
 0x753   :  { %6235 = vsyncpa [#allocation6], 1 }
 0x754   :  { %6236 = vsyncpa [#allocation9], 1 }
 0x755   :  { %6237 = vsyncpa [#allocation4], 1 }

</bundles_post_ra>
